<compile_context>
chip_gen: v5e
topology: v5e:2x2
jax: 0.10.0
libtpu: 0.0.40
codegen_flags: <defaults>
</compile_context>

<pallas_src>
import functools

import jax
import jax.numpy as jnp
from jax import lax
from jax.experimental import pallas as pl
from jax.experimental.pallas import tpu as pltpu


def _noam_kernel(off_ref, left_ref, right_ref, gmat_ref, out_ref,
                 rpad_ref, gcorr_ref, *, W, T, extra_radius, Cg):
    """One (image, row-tile) grid step.

    off_ref  : (K*2, TW)          f32   extra offsets (row 2k = x, 2k+1 = y)
    left_ref : (C, TW)            bf16  left features of this row tile
    right_ref: (C, HW)            bf16  full right image (changes only with n)
    gmat_ref : (G, C)             bf16  0/1 group-membership indicator
    out_ref  : (G, K, TW)         f32   per-group, per-tap correlations
    rpad_ref : (T, C, TW+2*dmax)  bf16  per-tile padded right strips (scratch)
    gcorr_ref: (S, G, TW)         f32   per-shift group sums, S = (2*Rt+1)^2
    """
    C, TW = left_ref.shape
    G = gmat_ref.shape[0]
    HW = right_ref.shape[1]
    K = 9
    Rt = 1 + extra_radius
    dmax = Rt * W + Rt
    SUB = tuple(range(-extra_radius, extra_radius + 1))
    t = pl.program_id(1)

    # ---- once per image: build the zero-padded right strips -----------------
    # (the right block index only changes when n changes, i.e. at t == 0)
    @pl.when(t == 0)
    def _fill():
        zhalo = jnp.zeros((C, dmax), jnp.bfloat16)
        for tt in range(T):
            base = tt * TW
            hi0 = dmax + TW
            rpad_ref[tt, :, dmax:hi0] = right_ref[:, base:base + TW]
            if tt == 0:
                rpad_ref[tt, :, 0:dmax] = zhalo
            else:
                rpad_ref[tt, :, 0:dmax] = right_ref[:, base - dmax:base]
            if tt == T - 1:
                rpad_ref[tt, :, hi0:hi0 + dmax] = zhalo
            else:
                rpad_ref[tt, :, hi0:hi0 + dmax] = right_ref[:, base + TW:base + TW + dmax]

    left = left_ref[...]                      # (C, TW) bf16
    gmat = gmat_ref[...]                      # (G, C)  bf16

    def strip_slice(start):
        if T == 1:                            # static index in the common path
            return rpad_ref[0, :, start:start + TW]
        return rpad_ref[t, :, start:start + TW]

    # ---- 25 integer shifts: per-group channel sums (lane-wide MXU matmuls) --
    s = 0
    for dy in range(-Rt, Rt + 1):
        for dx in range(-Rt, Rt + 1):
            shifted = strip_slice(dmax + dy * W + dx)          # (C, TW) bf16
            prod = left * shifted                              # bf16 VPU
            gcorr_ref[s] = jnp.dot(gmat, prod,
                                   preferred_element_type=jnp.float32)
            s += 1

    # ---- combine: tap-outer, weights built on the fly, single store per tap -
    xpix = lax.broadcasted_iota(jnp.int32, (1, TW), 1) % W     # pixel x (per row tile)
    xmask = {}
    for d in range(-Rt, Rt + 1):
        if d != 0:
            xs = xpix + d
            xmask[d] = jnp.logical_and(xs >= 0, xs < W).astype(jnp.float32)

    DXW = (-1, -1, -1, 0, 0, 0, 1, 1, 1)
    DYW = (-1, 0, 1, -1, 0, 1, -1, 0, 1)
    inv_cg = 1.0 / Cg
    for k in range(K):
        ex = off_ref[2 * k:2 * k + 1, :]                       # (1, TW) f32
        ey = off_ref[2 * k + 1:2 * k + 2, :]
        fx = jnp.floor(ex)
        tx = ex - fx
        fxi = fx.astype(jnp.int32)
        fy = jnp.floor(ey)
        ty = ey - fy
        fyi = fy.astype(jnp.int32)
        zero = jnp.zeros_like(tx)

        wx = {}
        wy = {}
        for r in SUB:
            hx = (jnp.where(fxi == r, 1.0 - tx, zero)
                  + jnp.where(fxi == r - 1, tx, zero))
            d = DXW[k] + r
            if d != 0:                                         # fold row-wrap mask
                hx = hx * xmask[d]
            wx[r] = hx
            wy[r] = (jnp.where(fyi == r, 1.0 - ty, zero)
                     + jnp.where(fyi == r - 1, ty, zero))

        acc = jnp.zeros((G, TW), jnp.float32)
        for ry in SUB:
            dy = DYW[k] + ry
            for rx in SUB:
                dx = DXW[k] + rx
                sidx = (dy + Rt) * (2 * Rt + 1) + (dx + Rt)
                acc = acc + (wy[ry] * wx[rx]) * gcorr_ref[sidx]
        out_ref[:, k, :] = inv_cg * acc


def noam_forward(left, right, extra_offset, groups=8, extra_radius=1,
                 max_tile_elems=4096):
    """Pallas implementation of NOAM.forward (att=None path).

    Assumes |extra_offset| <= extra_radius (the module is used with offsets in
    [-1, 1]); larger offsets would require widening the shift stencil.
    """
    N, C, H, W = left.shape
    G = groups
    assert C % G == 0
    Cg = C // G
    K = 9
    HW = H * W
    Rt = 1 + extra_radius
    dmax = Rt * W + Rt

    # Row tiling: whole rows per tile so the flat-shift stencil and x-validity
    # iota are tile-invariant.  Single tile for small images (the test path).
    Th, T = H, 1
    if HW > max_tile_elems:
        for cand in range(H // 2, Rt, -1):
            tw = cand * W
            if H % cand == 0 and tw <= max_tile_elems and tw % 128 == 0 and tw >= dmax:
                Th = cand
                break
        T = H // Th
    TW = Th * W

    off = extra_offset.astype(jnp.float32).reshape(N, K * 2, HW)
    left_flat = left.astype(jnp.bfloat16).reshape(N, C, HW)
    right_flat = right.astype(jnp.bfloat16).reshape(N, C, HW)
    # 0/1 group-membership indicator (exact in bf16); the 1/Cg mean is folded
    # into the per-tap scaling inside the kernel.
    gmat = jnp.repeat(jnp.eye(G, dtype=jnp.bfloat16), Cg, axis=1)       # (G, C)

    kernel = functools.partial(_noam_kernel, W=W, T=T,
                               extra_radius=extra_radius, Cg=Cg)

    out = pl.pallas_call(
        kernel,
        out_shape=jax.ShapeDtypeStruct((N, G, K, HW), jnp.float32),
        grid=(N, T),
        in_specs=[
            pl.BlockSpec((None, K * 2, TW), lambda n, t: (n, 0, t)),
            pl.BlockSpec((None, C, TW), lambda n, t: (n, 0, t)),
            pl.BlockSpec((None, C, HW), lambda n, t: (n, 0, 0)),
            pl.BlockSpec((G, C), lambda n, t: (0, 0)),
        ],
        out_specs=pl.BlockSpec((None, G, K, TW), lambda n, t: (n, 0, 0, t)),
        scratch_shapes=[
            pltpu.VMEM((T, C, TW + 2 * dmax), jnp.bfloat16),
            pltpu.VMEM(((2 * Rt + 1) ** 2, G, TW), jnp.float32),
        ],
        compiler_params=pltpu.CompilerParams(
            dimension_semantics=("parallel", "arbitrary"),
            vmem_limit_bytes=48 * 1024 * 1024),
    )(off, left_flat, right_flat, gmat)

    # (N, G, K, HW) is already in the final channel order (channel = g*9 + k).
    return out.reshape(N, G * K, H, W)


def noam_reference(left, right, extra_offset, groups=8):
    """Pure-JAX reference mirroring the PyTorch forward (for verification)."""
    N, C, H, W = left.shape
    G, Cg, K = groups, C // groups, 9
    dx = jnp.array([-1, -1, -1, 0, 0, 0, 1, 1, 1], jnp.float32)
    dy = jnp.array([-1, 0, 1, -1, 0, 1, -1, 0, 1], jnp.float32)
    eo = extra_offset.reshape(N, K, 2, H, W).astype(jnp.float32)

    ww = jnp.arange(W, dtype=jnp.float32)
    hh = jnp.arange(H, dtype=jnp.float32)
    x = ww[None, None, None, :] + dx[None, :, None, None] + eo[:, :, 0]
    y = hh[None, None, :, None] + dy[None, :, None, None] + eo[:, :, 1]

    x0 = jnp.floor(x); y0 = jnp.floor(y)
    x1 = x0 + 1.0;     y1 = y0 + 1.0
    wa = (x1 - x) * (y1 - y); wb = (x1 - x) * (y - y0)
    wc = (x - x0) * (y1 - y); wd = (x - x0) * (y - y0)

    Hp, Wp = H + 2, W + 2
    rpad = jnp.pad(right.astype(jnp.float32),
                   ((0, 0), (0, 0), (1, 1), (1, 1))).reshape(N, C, Hp * Wp)
    cx = lambda v: jnp.clip(v.astype(jnp.int32) + 1, 0, Wp - 1)
    cy = lambda v: jnp.clip(v.astype(jnp.int32) + 1, 0, Hp - 1)
    x0i, x1i, y0i, y1i = cx(x0), cx(x1), cy(y0), cy(y1)

    def gather(idx):  # idx: (N, K, H, W) -> (N, C, K, H, W)
        return rpad[jnp.arange(N)[:, None, None, None, None],
                    jnp.arange(C)[None, :, None, None, None],
                    idx[:, None, :, :, :]]

    sampled = (gather(x0i + y0i * Wp) * wa[:, None]
               + gather(x0i + y1i * Wp) * wb[:, None]
               + gather(x1i + y0i * Wp) * wc[:, None]
               + gather(x1i + y1i * Wp) * wd[:, None])        # (N, C, K, H, W)
    prod = left.astype(jnp.float32)[:, :, None] * sampled
    corr = prod.reshape(N, G, Cg, K, H, W).mean(axis=2)        # (N, G, K, H, W)
    return corr.reshape(N, G * K, H, W)


if __name__ == "__main__":
    key = jax.random.PRNGKey(0)
    k1, k2, k3 = jax.random.split(key, 3)

    N, C, H, W = 2, 16, 8, 8       # C divisible by groups=8
    left = jax.random.normal(k1, (N, C, H, W), jnp.float32)
    right = jax.random.normal(k2, (N, C, H, W), jnp.float32)
    # extra_offset: [N, search_num*2, H, W] = [N, 18, H, W], offsets in [-1, 1]
    extra_offset = jax.random.uniform(k3, (N, 18, H, W), jnp.float32,
                                      minval=-1.0, maxval=1.0)

    out = noam_forward(left, right, extra_offset)
    out = jax.block_until_ready(out)
    assert out.shape == (N, 72, H, W), out.shape

    # The kernel keeps left/right in bf16 (HBM/VMEM bandwidth) with f32
    # accumulation, so compare against the reference on bf16-quantized inputs.
    lq = left.astype(jnp.bfloat16).astype(jnp.float32)
    rq = right.astype(jnp.bfloat16).astype(jnp.float32)
    ref = noam_reference(lq, rq, extra_offset)
    max_err = float(jnp.max(jnp.abs(out - ref)))
    assert jnp.allclose(out, ref, rtol=3e-2, atol=3e-2), max_err

    print("KERNEL_OK")
</pallas_src>

<mosaic_0001>
module attributes {stable_mosaic.version = 11 : i64} {
  func.func @_noam_kernel(%arg0: i32, %arg1: i32, %arg2: memref<1x18x64xf32, #tpu.memory_space<vmem>>, %arg3: memref<1x16x64xbf16, #tpu.memory_space<vmem>>, %arg4: memref<1x16x64xbf16, #tpu.memory_space<vmem>>, %arg5: memref<8x16xbf16, #tpu.memory_space<vmem>>, %arg6: memref<1x8x9x64xf32, #tpu.memory_space<vmem>>, %arg7: memref<1x16x100xbf16, #tpu.memory_space<vmem>>, %arg8: memref<25x8x64xf32, #tpu.memory_space<vmem>>) attributes {dimension_semantics = [#tpu.dimension_semantics<parallel>, #tpu.dimension_semantics<arbitrary>], iteration_bounds = array<i64: 2, 1>, scalar_prefetch = 0 : i64, scratch_operands = 2 : i64, tpu.core_type = #tpu.core_type<tc>, window_params = [{transform_indices = @transform_0, window_bounds = array<i64: 1, 18, 64>}, {transform_indices = @transform_1, window_bounds = array<i64: 1, 16, 64>}, {transform_indices = @transform_2, window_bounds = array<i64: 1, 16, 64>}, {pipeline_mode = #tpu.pipeline_mode<synchronous>, transform_indices = @transform_3, window_bounds = array<i64: 8, 16>}, {transform_indices = @transform_4, window_bounds = array<i64: 1, 8, 9, 64>}]} {
    %c0_i32 = arith.constant 0 : i32
    %0 = arith.cmpi eq, %arg1, %c0_i32 : i32
    %1 = arith.extui %0 : i1 to i32
    %c0_i32_0 = arith.constant 0 : i32
    %2 = arith.cmpi ne, %1, %c0_i32_0 : i32
    scf.if %2 {
      %cst_681 = arith.constant 0.000000e+00 : bf16
      %1377 = vector.broadcast %cst_681 : bf16 to vector<16x18xbf16>
      %c0_682 = arith.constant 0 : index
      %c0_683 = arith.constant 0 : index
      %c0_684 = arith.constant 0 : index
      %1378 = vector.load %arg4[%c0_682, %c0_683, %c0_684] : memref<1x16x64xbf16, #tpu.memory_space<vmem>>, vector<1x16x64xbf16>
      %1379 = vector.shape_cast %1378 : vector<1x16x64xbf16> to vector<16x64xbf16>
      %c0_685 = arith.constant 0 : index
      %c0_686 = arith.constant 0 : index
      %c18_687 = arith.constant 18 : index
      %1380 = vector.load %arg7[%c0_685, %c0_686, %c18_687] : memref<1x16x100xbf16, #tpu.memory_space<vmem>>, vector<1x16x64xbf16>
      %1381 = vector.shape_cast %1380 : vector<1x16x64xbf16> to vector<16x64xbf16>
      %1382 = vector.shape_cast %1379 : vector<16x64xbf16> to vector<1x16x64xbf16>
      tpu.vector_store %arg7[%c0_685, %c0_686, %c18_687], %1382 {strides = array<i32>} : memref<1x16x100xbf16, #tpu.memory_space<vmem>>, vector<1x16x64xbf16>,
      %c0_688 = arith.constant 0 : index
      %c0_689 = arith.constant 0 : index
      %c0_690 = arith.constant 0 : index
      %1383 = vector.load %arg7[%c0_688, %c0_689, %c0_690] : memref<1x16x100xbf16, #tpu.memory_space<vmem>>, vector<1x16x18xbf16>
      %1384 = vector.shape_cast %1383 : vector<1x16x18xbf16> to vector<16x18xbf16>
      %1385 = vector.shape_cast %1377 : vector<16x18xbf16> to vector<1x16x18xbf16>
      tpu.vector_store %arg7[%c0_688, %c0_689, %c0_690], %1385 {strides = array<i32>} : memref<1x16x100xbf16, #tpu.memory_space<vmem>>, vector<1x16x18xbf16>,
      %c0_691 = arith.constant 0 : index
      %c0_692 = arith.constant 0 : index
      %c82 = arith.constant 82 : index
      %1386 = vector.load %arg7[%c0_691, %c0_692, %c82] : memref<1x16x100xbf16, #tpu.memory_space<vmem>>, vector<1x16x18xbf16>
      %1387 = vector.shape_cast %1386 : vector<1x16x18xbf16> to vector<16x18xbf16>
      %1388 = vector.shape_cast %1377 : vector<16x18xbf16> to vector<1x16x18xbf16>
      tpu.vector_store %arg7[%c0_691, %c0_692, %c82], %1388 {strides = array<i32>} : memref<1x16x100xbf16, #tpu.memory_space<vmem>>, vector<1x16x18xbf16>,
    } else {
    }
    %c0 = arith.constant 0 : index
    %c0_1 = arith.constant 0 : index
    %c0_2 = arith.constant 0 : index
    %3 = vector.load %arg3[%c0, %c0_1, %c0_2] : memref<1x16x64xbf16, #tpu.memory_space<vmem>>, vector<1x16x64xbf16>
    %4 = vector.shape_cast %3 : vector<1x16x64xbf16> to vector<16x64xbf16>
    %c0_3 = arith.constant 0 : index
    %c0_4 = arith.constant 0 : index
    %5 = vector.load %arg5[%c0_3, %c0_4] : memref<8x16xbf16, #tpu.memory_space<vmem>>, vector<8x16xbf16>
    %c0_5 = arith.constant 0 : index
    %c0_6 = arith.constant 0 : index
    %c0_7 = arith.constant 0 : index
    %6 = vector.load %arg7[%c0_5, %c0_6, %c0_7] : memref<1x16x100xbf16, #tpu.memory_space<vmem>>, vector<1x16x64xbf16>
    %7 = vector.shape_cast %6 : vector<1x16x64xbf16> to vector<16x64xbf16>
    %8 = arith.mulf %4, %7 : vector<16x64xbf16>
    %cst = arith.constant dense<0.000000e+00> : vector<8x64xf32>
    %9 = tpu.matmul %5, %8, %cst {dimension_numbers = #tpu.dot_dimension_numbers<[1], [0], [0], [1], [0, 0, 1, 1], [], []>} : vector<8x16xbf16>, vector<16x64xbf16>, vector<8x64xf32> -> vector<8x64xf32>
    %c0_8 = arith.constant 0 : index
    %c0_9 = arith.constant 0 : index
    %c0_10 = arith.constant 0 : index
    %10 = vector.load %arg8[%c0_8, %c0_9, %c0_10] : memref<25x8x64xf32, #tpu.memory_space<vmem>>, vector<1x8x64xf32>
    %11 = vector.shape_cast %10 : vector<1x8x64xf32> to vector<8x64xf32>
    %12 = vector.shape_cast %9 : vector<8x64xf32> to vector<1x8x64xf32>
    tpu.vector_store %arg8[%c0_8, %c0_9, %c0_10], %12 {strides = array<i32>} : memref<25x8x64xf32, #tpu.memory_space<vmem>>, vector<1x8x64xf32>,
    %c0_11 = arith.constant 0 : index
    %c0_12 = arith.constant 0 : index
    %c1 = arith.constant 1 : index
    %13 = vector.load %arg7[%c0_11, %c0_12, %c1] : memref<1x16x100xbf16, #tpu.memory_space<vmem>>, vector<1x16x64xbf16>
    %14 = vector.shape_cast %13 : vector<1x16x64xbf16> to vector<16x64xbf16>
    %15 = arith.mulf %4, %14 : vector<16x64xbf16>
    %cst_13 = arith.constant dense<0.000000e+00> : vector<8x64xf32>
    %16 = tpu.matmul %5, %15, %cst_13 {dimension_numbers = #tpu.dot_dimension_numbers<[1], [0], [0], [1], [0, 0, 1, 1], [], []>} : vector<8x16xbf16>, vector<16x64xbf16>, vector<8x64xf32> -> vector<8x64xf32>
    %c1_14 = arith.constant 1 : index
    %c0_15 = arith.constant 0 : index
    %c0_16 = arith.constant 0 : index
    %17 = vector.load %arg8[%c1_14, %c0_15, %c0_16] : memref<25x8x64xf32, #tpu.memory_space<vmem>>, vector<1x8x64xf32>
    %18 = vector.shape_cast %17 : vector<1x8x64xf32> to vector<8x64xf32>
    %19 = vector.shape_cast %16 : vector<8x64xf32> to vector<1x8x64xf32>
    tpu.vector_store %arg8[%c1_14, %c0_15, %c0_16], %19 {strides = array<i32>} : memref<25x8x64xf32, #tpu.memory_space<vmem>>, vector<1x8x64xf32>,
    %c0_17 = arith.constant 0 : index
    %c0_18 = arith.constant 0 : index
    %c2 = arith.constant 2 : index
    %20 = vector.load %arg7[%c0_17, %c0_18, %c2] : memref<1x16x100xbf16, #tpu.memory_space<vmem>>, vector<1x16x64xbf16>
    %21 = vector.shape_cast %20 : vector<1x16x64xbf16> to vector<16x64xbf16>
    %22 = arith.mulf %4, %21 : vector<16x64xbf16>
    %cst_19 = arith.constant dense<0.000000e+00> : vector<8x64xf32>
    %23 = tpu.matmul %5, %22, %cst_19 {dimension_numbers = #tpu.dot_dimension_numbers<[1], [0], [0], [1], [0, 0, 1, 1], [], []>} : vector<8x16xbf16>, vector<16x64xbf16>, vector<8x64xf32> -> vector<8x64xf32>
    %c2_20 = arith.constant 2 : index
    %c0_21 = arith.constant 0 : index
    %c0_22 = arith.constant 0 : index
    %24 = vector.load %arg8[%c2_20, %c0_21, %c0_22] : memref<25x8x64xf32, #tpu.memory_space<vmem>>, vector<1x8x64xf32>
    %25 = vector.shape_cast %24 : vector<1x8x64xf32> to vector<8x64xf32>
    %26 = vector.shape_cast %23 : vector<8x64xf32> to vector<1x8x64xf32>
    tpu.vector_store %arg8[%c2_20, %c0_21, %c0_22], %26 {strides = array<i32>} : memref<25x8x64xf32, #tpu.memory_space<vmem>>, vector<1x8x64xf32>,
    %c0_23 = arith.constant 0 : index
    %c0_24 = arith.constant 0 : index
    %c3 = arith.constant 3 : index
    %27 = vector.load %arg7[%c0_23, %c0_24, %c3] : memref<1x16x100xbf16, #tpu.memory_space<vmem>>, vector<1x16x64xbf16>
    %28 = vector.shape_cast %27 : vector<1x16x64xbf16> to vector<16x64xbf16>
    %29 = arith.mulf %4, %28 : vector<16x64xbf16>
    %cst_25 = arith.constant dense<0.000000e+00> : vector<8x64xf32>
    %30 = tpu.matmul %5, %29, %cst_25 {dimension_numbers = #tpu.dot_dimension_numbers<[1], [0], [0], [1], [0, 0, 1, 1], [], []>} : vector<8x16xbf16>, vector<16x64xbf16>, vector<8x64xf32> -> vector<8x64xf32>
    %c3_26 = arith.constant 3 : index
    %c0_27 = arith.constant 0 : index
    %c0_28 = arith.constant 0 : index
    %31 = vector.load %arg8[%c3_26, %c0_27, %c0_28] : memref<25x8x64xf32, #tpu.memory_space<vmem>>, vector<1x8x64xf32>
    %32 = vector.shape_cast %31 : vector<1x8x64xf32> to vector<8x64xf32>
    %33 = vector.shape_cast %30 : vector<8x64xf32> to vector<1x8x64xf32>
    tpu.vector_store %arg8[%c3_26, %c0_27, %c0_28], %33 {strides = array<i32>} : memref<25x8x64xf32, #tpu.memory_space<vmem>>, vector<1x8x64xf32>,
    %c0_29 = arith.constant 0 : index
    %c0_30 = arith.constant 0 : index
    %c4 = arith.constant 4 : index
    %34 = vector.load %arg7[%c0_29, %c0_30, %c4] : memref<1x16x100xbf16, #tpu.memory_space<vmem>>, vector<1x16x64xbf16>
    %35 = vector.shape_cast %34 : vector<1x16x64xbf16> to vector<16x64xbf16>
    %36 = arith.mulf %4, %35 : vector<16x64xbf16>
    %cst_31 = arith.constant dense<0.000000e+00> : vector<8x64xf32>
    %37 = tpu.matmul %5, %36, %cst_31 {dimension_numbers = #tpu.dot_dimension_numbers<[1], [0], [0], [1], [0, 0, 1, 1], [], []>} : vector<8x16xbf16>, vector<16x64xbf16>, vector<8x64xf32> -> vector<8x64xf32>
    %c4_32 = arith.constant 4 : index
    %c0_33 = arith.constant 0 : index
    %c0_34 = arith.constant 0 : index
    %38 = vector.load %arg8[%c4_32, %c0_33, %c0_34] : memref<25x8x64xf32, #tpu.memory_space<vmem>>, vector<1x8x64xf32>
    %39 = vector.shape_cast %38 : vector<1x8x64xf32> to vector<8x64xf32>
    %40 = vector.shape_cast %37 : vector<8x64xf32> to vector<1x8x64xf32>
    tpu.vector_store %arg8[%c4_32, %c0_33, %c0_34], %40 {strides = array<i32>} : memref<25x8x64xf32, #tpu.memory_space<vmem>>, vector<1x8x64xf32>,
    %c0_35 = arith.constant 0 : index
    %c0_36 = arith.constant 0 : index
    %c8 = arith.constant 8 : index
    %41 = vector.load %arg7[%c0_35, %c0_36, %c8] : memref<1x16x100xbf16, #tpu.memory_space<vmem>>, vector<1x16x64xbf16>
    %42 = vector.shape_cast %41 : vector<1x16x64xbf16> to vector<16x64xbf16>
    %43 = arith.mulf %4, %42 : vector<16x64xbf16>
    %cst_37 = arith.constant dense<0.000000e+00> : vector<8x64xf32>
    %44 = tpu.matmul %5, %43, %cst_37 {dimension_numbers = #tpu.dot_dimension_numbers<[1], [0], [0], [1], [0, 0, 1, 1], [], []>} : vector<8x16xbf16>, vector<16x64xbf16>, vector<8x64xf32> -> vector<8x64xf32>
    %c5 = arith.constant 5 : index
    %c0_38 = arith.constant 0 : index
    %c0_39 = arith.constant 0 : index
    %45 = vector.load %arg8[%c5, %c0_38, %c0_39] : memref<25x8x64xf32, #tpu.memory_space<vmem>>, vector<1x8x64xf32>
    %46 = vector.shape_cast %45 : vector<1x8x64xf32> to vector<8x64xf32>
    %47 = vector.shape_cast %44 : vector<8x64xf32> to vector<1x8x64xf32>
    tpu.vector_store %arg8[%c5, %c0_38, %c0_39], %47 {strides = array<i32>} : memref<25x8x64xf32, #tpu.memory_space<vmem>>, vector<1x8x64xf32>,
    %c0_40 = arith.constant 0 : index
    %c0_41 = arith.constant 0 : index
    %c9 = arith.constant 9 : index
    %48 = vector.load %arg7[%c0_40, %c0_41, %c9] : memref<1x16x100xbf16, #tpu.memory_space<vmem>>, vector<1x16x64xbf16>
    %49 = vector.shape_cast %48 : vector<1x16x64xbf16> to vector<16x64xbf16>
    %50 = arith.mulf %4, %49 : vector<16x64xbf16>
    %cst_42 = arith.constant dense<0.000000e+00> : vector<8x64xf32>
    %51 = tpu.matmul %5, %50, %cst_42 {dimension_numbers = #tpu.dot_dimension_numbers<[1], [0], [0], [1], [0, 0, 1, 1], [], []>} : vector<8x16xbf16>, vector<16x64xbf16>, vector<8x64xf32> -> vector<8x64xf32>
    %c6 = arith.constant 6 : index
    %c0_43 = arith.constant 0 : index
    %c0_44 = arith.constant 0 : index
    %52 = vector.load %arg8[%c6, %c0_43, %c0_44] : memref<25x8x64xf32, #tpu.memory_space<vmem>>, vector<1x8x64xf32>
    %53 = vector.shape_cast %52 : vector<1x8x64xf32> to vector<8x64xf32>
    %54 = vector.shape_cast %51 : vector<8x64xf32> to vector<1x8x64xf32>
    tpu.vector_store %arg8[%c6, %c0_43, %c0_44], %54 {strides = array<i32>} : memref<25x8x64xf32, #tpu.memory_space<vmem>>, vector<1x8x64xf32>,
    %c0_45 = arith.constant 0 : index
    %c0_46 = arith.constant 0 : index
    %c10 = arith.constant 10 : index
    %55 = vector.load %arg7[%c0_45, %c0_46, %c10] : memref<1x16x100xbf16, #tpu.memory_space<vmem>>, vector<1x16x64xbf16>
    %56 = vector.shape_cast %55 : vector<1x16x64xbf16> to vector<16x64xbf16>
    %57 = arith.mulf %4, %56 : vector<16x64xbf16>
    %cst_47 = arith.constant dense<0.000000e+00> : vector<8x64xf32>
    %58 = tpu.matmul %5, %57, %cst_47 {dimension_numbers = #tpu.dot_dimension_numbers<[1], [0], [0], [1], [0, 0, 1, 1], [], []>} : vector<8x16xbf16>, vector<16x64xbf16>, vector<8x64xf32> -> vector<8x64xf32>
    %c7 = arith.constant 7 : index
    %c0_48 = arith.constant 0 : index
    %c0_49 = arith.constant 0 : index
    %59 = vector.load %arg8[%c7, %c0_48, %c0_49] : memref<25x8x64xf32, #tpu.memory_space<vmem>>, vector<1x8x64xf32>
    %60 = vector.shape_cast %59 : vector<1x8x64xf32> to vector<8x64xf32>
    %61 = vector.shape_cast %58 : vector<8x64xf32> to vector<1x8x64xf32>
    tpu.vector_store %arg8[%c7, %c0_48, %c0_49], %61 {strides = array<i32>} : memref<25x8x64xf32, #tpu.memory_space<vmem>>, vector<1x8x64xf32>,
    %c0_50 = arith.constant 0 : index
    %c0_51 = arith.constant 0 : index
    %c11 = arith.constant 11 : index
    %62 = vector.load %arg7[%c0_50, %c0_51, %c11] : memref<1x16x100xbf16, #tpu.memory_space<vmem>>, vector<1x16x64xbf16>
    %63 = vector.shape_cast %62 : vector<1x16x64xbf16> to vector<16x64xbf16>
    %64 = arith.mulf %4, %63 : vector<16x64xbf16>
    %cst_52 = arith.constant dense<0.000000e+00> : vector<8x64xf32>
    %65 = tpu.matmul %5, %64, %cst_52 {dimension_numbers = #tpu.dot_dimension_numbers<[1], [0], [0], [1], [0, 0, 1, 1], [], []>} : vector<8x16xbf16>, vector<16x64xbf16>, vector<8x64xf32> -> vector<8x64xf32>
    %c8_53 = arith.constant 8 : index
    %c0_54 = arith.constant 0 : index
    %c0_55 = arith.constant 0 : index
    %66 = vector.load %arg8[%c8_53, %c0_54, %c0_55] : memref<25x8x64xf32, #tpu.memory_space<vmem>>, vector<1x8x64xf32>
    %67 = vector.shape_cast %66 : vector<1x8x64xf32> to vector<8x64xf32>
    %68 = vector.shape_cast %65 : vector<8x64xf32> to vector<1x8x64xf32>
    tpu.vector_store %arg8[%c8_53, %c0_54, %c0_55], %68 {strides = array<i32>} : memref<25x8x64xf32, #tpu.memory_space<vmem>>, vector<1x8x64xf32>,
    %c0_56 = arith.constant 0 : index
    %c0_57 = arith.constant 0 : index
    %c12 = arith.constant 12 : index
    %69 = vector.load %arg7[%c0_56, %c0_57, %c12] : memref<1x16x100xbf16, #tpu.memory_space<vmem>>, vector<1x16x64xbf16>
    %70 = vector.shape_cast %69 : vector<1x16x64xbf16> to vector<16x64xbf16>
    %71 = arith.mulf %4, %70 : vector<16x64xbf16>
    %cst_58 = arith.constant dense<0.000000e+00> : vector<8x64xf32>
    %72 = tpu.matmul %5, %71, %cst_58 {dimension_numbers = #tpu.dot_dimension_numbers<[1], [0], [0], [1], [0, 0, 1, 1], [], []>} : vector<8x16xbf16>, vector<16x64xbf16>, vector<8x64xf32> -> vector<8x64xf32>
    %c9_59 = arith.constant 9 : index
    %c0_60 = arith.constant 0 : index
    %c0_61 = arith.constant 0 : index
    %73 = vector.load %arg8[%c9_59, %c0_60, %c0_61] : memref<25x8x64xf32, #tpu.memory_space<vmem>>, vector<1x8x64xf32>
    %74 = vector.shape_cast %73 : vector<1x8x64xf32> to vector<8x64xf32>
    %75 = vector.shape_cast %72 : vector<8x64xf32> to vector<1x8x64xf32>
    tpu.vector_store %arg8[%c9_59, %c0_60, %c0_61], %75 {strides = array<i32>} : memref<25x8x64xf32, #tpu.memory_space<vmem>>, vector<1x8x64xf32>,
    %c0_62 = arith.constant 0 : index
    %c0_63 = arith.constant 0 : index
    %c16 = arith.constant 16 : index
    %76 = vector.load %arg7[%c0_62, %c0_63, %c16] : memref<1x16x100xbf16, #tpu.memory_space<vmem>>, vector<1x16x64xbf16>
    %77 = vector.shape_cast %76 : vector<1x16x64xbf16> to vector<16x64xbf16>
    %78 = arith.mulf %4, %77 : vector<16x64xbf16>
    %cst_64 = arith.constant dense<0.000000e+00> : vector<8x64xf32>
    %79 = tpu.matmul %5, %78, %cst_64 {dimension_numbers = #tpu.dot_dimension_numbers<[1], [0], [0], [1], [0, 0, 1, 1], [], []>} : vector<8x16xbf16>, vector<16x64xbf16>, vector<8x64xf32> -> vector<8x64xf32>
    %c10_65 = arith.constant 10 : index
    %c0_66 = arith.constant 0 : index
    %c0_67 = arith.constant 0 : index
    %80 = vector.load %arg8[%c10_65, %c0_66, %c0_67] : memref<25x8x64xf32, #tpu.memory_space<vmem>>, vector<1x8x64xf32>
    %81 = vector.shape_cast %80 : vector<1x8x64xf32> to vector<8x64xf32>
    %82 = vector.shape_cast %79 : vector<8x64xf32> to vector<1x8x64xf32>
    tpu.vector_store %arg8[%c10_65, %c0_66, %c0_67], %82 {strides = array<i32>} : memref<25x8x64xf32, #tpu.memory_space<vmem>>, vector<1x8x64xf32>,
    %c0_68 = arith.constant 0 : index
    %c0_69 = arith.constant 0 : index
    %c17 = arith.constant 17 : index
    %83 = vector.load %arg7[%c0_68, %c0_69, %c17] : memref<1x16x100xbf16, #tpu.memory_space<vmem>>, vector<1x16x64xbf16>
    %84 = vector.shape_cast %83 : vector<1x16x64xbf16> to vector<16x64xbf16>
    %85 = arith.mulf %4, %84 : vector<16x64xbf16>
    %cst_70 = arith.constant dense<0.000000e+00> : vector<8x64xf32>
    %86 = tpu.matmul %5, %85, %cst_70 {dimension_numbers = #tpu.dot_dimension_numbers<[1], [0], [0], [1], [0, 0, 1, 1], [], []>} : vector<8x16xbf16>, vector<16x64xbf16>, vector<8x64xf32> -> vector<8x64xf32>
    %c11_71 = arith.constant 11 : index
    %c0_72 = arith.constant 0 : index
    %c0_73 = arith.constant 0 : index
    %87 = vector.load %arg8[%c11_71, %c0_72, %c0_73] : memref<25x8x64xf32, #tpu.memory_space<vmem>>, vector<1x8x64xf32>
    %88 = vector.shape_cast %87 : vector<1x8x64xf32> to vector<8x64xf32>
    %89 = vector.shape_cast %86 : vector<8x64xf32> to vector<1x8x64xf32>
    tpu.vector_store %arg8[%c11_71, %c0_72, %c0_73], %89 {strides = array<i32>} : memref<25x8x64xf32, #tpu.memory_space<vmem>>, vector<1x8x64xf32>,
    %c0_74 = arith.constant 0 : index
    %c0_75 = arith.constant 0 : index
    %c18 = arith.constant 18 : index
    %90 = vector.load %arg7[%c0_74, %c0_75, %c18] : memref<1x16x100xbf16, #tpu.memory_space<vmem>>, vector<1x16x64xbf16>
    %91 = vector.shape_cast %90 : vector<1x16x64xbf16> to vector<16x64xbf16>
    %92 = arith.mulf %4, %91 : vector<16x64xbf16>
    %cst_76 = arith.constant dense<0.000000e+00> : vector<8x64xf32>
    %93 = tpu.matmul %5, %92, %cst_76 {dimension_numbers = #tpu.dot_dimension_numbers<[1], [0], [0], [1], [0, 0, 1, 1], [], []>} : vector<8x16xbf16>, vector<16x64xbf16>, vector<8x64xf32> -> vector<8x64xf32>
    %c12_77 = arith.constant 12 : index
    %c0_78 = arith.constant 0 : index
    %c0_79 = arith.constant 0 : index
    %94 = vector.load %arg8[%c12_77, %c0_78, %c0_79] : memref<25x8x64xf32, #tpu.memory_space<vmem>>, vector<1x8x64xf32>
    %95 = vector.shape_cast %94 : vector<1x8x64xf32> to vector<8x64xf32>
    %96 = vector.shape_cast %93 : vector<8x64xf32> to vector<1x8x64xf32>
    tpu.vector_store %arg8[%c12_77, %c0_78, %c0_79], %96 {strides = array<i32>} : memref<25x8x64xf32, #tpu.memory_space<vmem>>, vector<1x8x64xf32>,
    %c0_80 = arith.constant 0 : index
    %c0_81 = arith.constant 0 : index
    %c19 = arith.constant 19 : index
    %97 = vector.load %arg7[%c0_80, %c0_81, %c19] : memref<1x16x100xbf16, #tpu.memory_space<vmem>>, vector<1x16x64xbf16>
    %98 = vector.shape_cast %97 : vector<1x16x64xbf16> to vector<16x64xbf16>
    %99 = arith.mulf %4, %98 : vector<16x64xbf16>
    %cst_82 = arith.constant dense<0.000000e+00> : vector<8x64xf32>
    %100 = tpu.matmul %5, %99, %cst_82 {dimension_numbers = #tpu.dot_dimension_numbers<[1], [0], [0], [1], [0, 0, 1, 1], [], []>} : vector<8x16xbf16>, vector<16x64xbf16>, vector<8x64xf32> -> vector<8x64xf32>
    %c13 = arith.constant 13 : index
    %c0_83 = arith.constant 0 : index
    %c0_84 = arith.constant 0 : index
    %101 = vector.load %arg8[%c13, %c0_83, %c0_84] : memref<25x8x64xf32, #tpu.memory_space<vmem>>, vector<1x8x64xf32>
    %102 = vector.shape_cast %101 : vector<1x8x64xf32> to vector<8x64xf32>
    %103 = vector.shape_cast %100 : vector<8x64xf32> to vector<1x8x64xf32>
    tpu.vector_store %arg8[%c13, %c0_83, %c0_84], %103 {strides = array<i32>} : memref<25x8x64xf32, #tpu.memory_space<vmem>>, vector<1x8x64xf32>,
    %c0_85 = arith.constant 0 : index
    %c0_86 = arith.constant 0 : index
    %c20 = arith.constant 20 : index
    %104 = vector.load %arg7[%c0_85, %c0_86, %c20] : memref<1x16x100xbf16, #tpu.memory_space<vmem>>, vector<1x16x64xbf16>
    %105 = vector.shape_cast %104 : vector<1x16x64xbf16> to vector<16x64xbf16>
    %106 = arith.mulf %4, %105 : vector<16x64xbf16>
    %cst_87 = arith.constant dense<0.000000e+00> : vector<8x64xf32>
    %107 = tpu.matmul %5, %106, %cst_87 {dimension_numbers = #tpu.dot_dimension_numbers<[1], [0], [0], [1], [0, 0, 1, 1], [], []>} : vector<8x16xbf16>, vector<16x64xbf16>, vector<8x64xf32> -> vector<8x64xf32>
    %c14 = arith.constant 14 : index
    %c0_88 = arith.constant 0 : index
    %c0_89 = arith.constant 0 : index
    %108 = vector.load %arg8[%c14, %c0_88, %c0_89] : memref<25x8x64xf32, #tpu.memory_space<vmem>>, vector<1x8x64xf32>
    %109 = vector.shape_cast %108 : vector<1x8x64xf32> to vector<8x64xf32>
    %110 = vector.shape_cast %107 : vector<8x64xf32> to vector<1x8x64xf32>
    tpu.vector_store %arg8[%c14, %c0_88, %c0_89], %110 {strides = array<i32>} : memref<25x8x64xf32, #tpu.memory_space<vmem>>, vector<1x8x64xf32>,
    %c0_90 = arith.constant 0 : index
    %c0_91 = arith.constant 0 : index
    %c24 = arith.constant 24 : index
    %111 = vector.load %arg7[%c0_90, %c0_91, %c24] : memref<1x16x100xbf16, #tpu.memory_space<vmem>>, vector<1x16x64xbf16>
    %112 = vector.shape_cast %111 : vector<1x16x64xbf16> to vector<16x64xbf16>
    %113 = arith.mulf %4, %112 : vector<16x64xbf16>
    %cst_92 = arith.constant dense<0.000000e+00> : vector<8x64xf32>
    %114 = tpu.matmul %5, %113, %cst_92 {dimension_numbers = #tpu.dot_dimension_numbers<[1], [0], [0], [1], [0, 0, 1, 1], [], []>} : vector<8x16xbf16>, vector<16x64xbf16>, vector<8x64xf32> -> vector<8x64xf32>
    %c15 = arith.constant 15 : index
    %c0_93 = arith.constant 0 : index
    %c0_94 = arith.constant 0 : index
    %115 = vector.load %arg8[%c15, %c0_93, %c0_94] : memref<25x8x64xf32, #tpu.memory_space<vmem>>, vector<1x8x64xf32>
    %116 = vector.shape_cast %115 : vector<1x8x64xf32> to vector<8x64xf32>
    %117 = vector.shape_cast %114 : vector<8x64xf32> to vector<1x8x64xf32>
    tpu.vector_store %arg8[%c15, %c0_93, %c0_94], %117 {strides = array<i32>} : memref<25x8x64xf32, #tpu.memory_space<vmem>>, vector<1x8x64xf32>,
    %c0_95 = arith.constant 0 : index
    %c0_96 = arith.constant 0 : index
    %c25 = arith.constant 25 : index
    %118 = vector.load %arg7[%c0_95, %c0_96, %c25] : memref<1x16x100xbf16, #tpu.memory_space<vmem>>, vector<1x16x64xbf16>
    %119 = vector.shape_cast %118 : vector<1x16x64xbf16> to vector<16x64xbf16>
    %120 = arith.mulf %4, %119 : vector<16x64xbf16>
    %cst_97 = arith.constant dense<0.000000e+00> : vector<8x64xf32>
    %121 = tpu.matmul %5, %120, %cst_97 {dimension_numbers = #tpu.dot_dimension_numbers<[1], [0], [0], [1], [0, 0, 1, 1], [], []>} : vector<8x16xbf16>, vector<16x64xbf16>, vector<8x64xf32> -> vector<8x64xf32>
    %c16_98 = arith.constant 16 : index
    %c0_99 = arith.constant 0 : index
    %c0_100 = arith.constant 0 : index
    %122 = vector.load %arg8[%c16_98, %c0_99, %c0_100] : memref<25x8x64xf32, #tpu.memory_space<vmem>>, vector<1x8x64xf32>
    %123 = vector.shape_cast %122 : vector<1x8x64xf32> to vector<8x64xf32>
    %124 = vector.shape_cast %121 : vector<8x64xf32> to vector<1x8x64xf32>
    tpu.vector_store %arg8[%c16_98, %c0_99, %c0_100], %124 {strides = array<i32>} : memref<25x8x64xf32, #tpu.memory_space<vmem>>, vector<1x8x64xf32>,
    %c0_101 = arith.constant 0 : index
    %c0_102 = arith.constant 0 : index
    %c26 = arith.constant 26 : index
    %125 = vector.load %arg7[%c0_101, %c0_102, %c26] : memref<1x16x100xbf16, #tpu.memory_space<vmem>>, vector<1x16x64xbf16>
    %126 = vector.shape_cast %125 : vector<1x16x64xbf16> to vector<16x64xbf16>
    %127 = arith.mulf %4, %126 : vector<16x64xbf16>
    %cst_103 = arith.constant dense<0.000000e+00> : vector<8x64xf32>
    %128 = tpu.matmul %5, %127, %cst_103 {dimension_numbers = #tpu.dot_dimension_numbers<[1], [0], [0], [1], [0, 0, 1, 1], [], []>} : vector<8x16xbf16>, vector<16x64xbf16>, vector<8x64xf32> -> vector<8x64xf32>
    %c17_104 = arith.constant 17 : index
    %c0_105 = arith.constant 0 : index
    %c0_106 = arith.constant 0 : index
    %129 = vector.load %arg8[%c17_104, %c0_105, %c0_106] : memref<25x8x64xf32, #tpu.memory_space<vmem>>, vector<1x8x64xf32>
    %130 = vector.shape_cast %129 : vector<1x8x64xf32> to vector<8x64xf32>
    %131 = vector.shape_cast %128 : vector<8x64xf32> to vector<1x8x64xf32>
    tpu.vector_store %arg8[%c17_104, %c0_105, %c0_106], %131 {strides = array<i32>} : memref<25x8x64xf32, #tpu.memory_space<vmem>>, vector<1x8x64xf32>,
    %c0_107 = arith.constant 0 : index
    %c0_108 = arith.constant 0 : index
    %c27 = arith.constant 27 : index
    %132 = vector.load %arg7[%c0_107, %c0_108, %c27] : memref<1x16x100xbf16, #tpu.memory_space<vmem>>, vector<1x16x64xbf16>
    %133 = vector.shape_cast %132 : vector<1x16x64xbf16> to vector<16x64xbf16>
    %134 = arith.mulf %4, %133 : vector<16x64xbf16>
    %cst_109 = arith.constant dense<0.000000e+00> : vector<8x64xf32>
    %135 = tpu.matmul %5, %134, %cst_109 {dimension_numbers = #tpu.dot_dimension_numbers<[1], [0], [0], [1], [0, 0, 1, 1], [], []>} : vector<8x16xbf16>, vector<16x64xbf16>, vector<8x64xf32> -> vector<8x64xf32>
    %c18_110 = arith.constant 18 : index
    %c0_111 = arith.constant 0 : index
    %c0_112 = arith.constant 0 : index
    %136 = vector.load %arg8[%c18_110, %c0_111, %c0_112] : memref<25x8x64xf32, #tpu.memory_space<vmem>>, vector<1x8x64xf32>
    %137 = vector.shape_cast %136 : vector<1x8x64xf32> to vector<8x64xf32>
    %138 = vector.shape_cast %135 : vector<8x64xf32> to vector<1x8x64xf32>
    tpu.vector_store %arg8[%c18_110, %c0_111, %c0_112], %138 {strides = array<i32>} : memref<25x8x64xf32, #tpu.memory_space<vmem>>, vector<1x8x64xf32>,
    %c0_113 = arith.constant 0 : index
    %c0_114 = arith.constant 0 : index
    %c28 = arith.constant 28 : index
    %139 = vector.load %arg7[%c0_113, %c0_114, %c28] : memref<1x16x100xbf16, #tpu.memory_space<vmem>>, vector<1x16x64xbf16>
    %140 = vector.shape_cast %139 : vector<1x16x64xbf16> to vector<16x64xbf16>
    %141 = arith.mulf %4, %140 : vector<16x64xbf16>
    %cst_115 = arith.constant dense<0.000000e+00> : vector<8x64xf32>
    %142 = tpu.matmul %5, %141, %cst_115 {dimension_numbers = #tpu.dot_dimension_numbers<[1], [0], [0], [1], [0, 0, 1, 1], [], []>} : vector<8x16xbf16>, vector<16x64xbf16>, vector<8x64xf32> -> vector<8x64xf32>
    %c19_116 = arith.constant 19 : index
    %c0_117 = arith.constant 0 : index
    %c0_118 = arith.constant 0 : index
    %143 = vector.load %arg8[%c19_116, %c0_117, %c0_118] : memref<25x8x64xf32, #tpu.memory_space<vmem>>, vector<1x8x64xf32>
    %144 = vector.shape_cast %143 : vector<1x8x64xf32> to vector<8x64xf32>
    %145 = vector.shape_cast %142 : vector<8x64xf32> to vector<1x8x64xf32>
    tpu.vector_store %arg8[%c19_116, %c0_117, %c0_118], %145 {strides = array<i32>} : memref<25x8x64xf32, #tpu.memory_space<vmem>>, vector<1x8x64xf32>,
    %c0_119 = arith.constant 0 : index
    %c0_120 = arith.constant 0 : index
    %c32 = arith.constant 32 : index
    %146 = vector.load %arg7[%c0_119, %c0_120, %c32] : memref<1x16x100xbf16, #tpu.memory_space<vmem>>, vector<1x16x64xbf16>
    %147 = vector.shape_cast %146 : vector<1x16x64xbf16> to vector<16x64xbf16>
    %148 = arith.mulf %4, %147 : vector<16x64xbf16>
    %cst_121 = arith.constant dense<0.000000e+00> : vector<8x64xf32>
    %149 = tpu.matmul %5, %148, %cst_121 {dimension_numbers = #tpu.dot_dimension_numbers<[1], [0], [0], [1], [0, 0, 1, 1], [], []>} : vector<8x16xbf16>, vector<16x64xbf16>, vector<8x64xf32> -> vector<8x64xf32>
    %c20_122 = arith.constant 20 : index
    %c0_123 = arith.constant 0 : index
    %c0_124 = arith.constant 0 : index
    %150 = vector.load %arg8[%c20_122, %c0_123, %c0_124] : memref<25x8x64xf32, #tpu.memory_space<vmem>>, vector<1x8x64xf32>
    %151 = vector.shape_cast %150 : vector<1x8x64xf32> to vector<8x64xf32>
    %152 = vector.shape_cast %149 : vector<8x64xf32> to vector<1x8x64xf32>
    tpu.vector_store %arg8[%c20_122, %c0_123, %c0_124], %152 {strides = array<i32>} : memref<25x8x64xf32, #tpu.memory_space<vmem>>, vector<1x8x64xf32>,
    %c0_125 = arith.constant 0 : index
    %c0_126 = arith.constant 0 : index
    %c33 = arith.constant 33 : index
    %153 = vector.load %arg7[%c0_125, %c0_126, %c33] : memref<1x16x100xbf16, #tpu.memory_space<vmem>>, vector<1x16x64xbf16>
    %154 = vector.shape_cast %153 : vector<1x16x64xbf16> to vector<16x64xbf16>
    %155 = arith.mulf %4, %154 : vector<16x64xbf16>
    %cst_127 = arith.constant dense<0.000000e+00> : vector<8x64xf32>
    %156 = tpu.matmul %5, %155, %cst_127 {dimension_numbers = #tpu.dot_dimension_numbers<[1], [0], [0], [1], [0, 0, 1, 1], [], []>} : vector<8x16xbf16>, vector<16x64xbf16>, vector<8x64xf32> -> vector<8x64xf32>
    %c21 = arith.constant 21 : index
    %c0_128 = arith.constant 0 : index
    %c0_129 = arith.constant 0 : index
    %157 = vector.load %arg8[%c21, %c0_128, %c0_129] : memref<25x8x64xf32, #tpu.memory_space<vmem>>, vector<1x8x64xf32>
    %158 = vector.shape_cast %157 : vector<1x8x64xf32> to vector<8x64xf32>
    %159 = vector.shape_cast %156 : vector<8x64xf32> to vector<1x8x64xf32>
    tpu.vector_store %arg8[%c21, %c0_128, %c0_129], %159 {strides = array<i32>} : memref<25x8x64xf32, #tpu.memory_space<vmem>>, vector<1x8x64xf32>,
    %c0_130 = arith.constant 0 : index
    %c0_131 = arith.constant 0 : index
    %c34 = arith.constant 34 : index
    %160 = vector.load %arg7[%c0_130, %c0_131, %c34] : memref<1x16x100xbf16, #tpu.memory_space<vmem>>, vector<1x16x64xbf16>
    %161 = vector.shape_cast %160 : vector<1x16x64xbf16> to vector<16x64xbf16>
    %162 = arith.mulf %4, %161 : vector<16x64xbf16>
    %cst_132 = arith.constant dense<0.000000e+00> : vector<8x64xf32>
    %163 = tpu.matmul %5, %162, %cst_132 {dimension_numbers = #tpu.dot_dimension_numbers<[1], [0], [0], [1], [0, 0, 1, 1], [], []>} : vector<8x16xbf16>, vector<16x64xbf16>, vector<8x64xf32> -> vector<8x64xf32>
    %c22 = arith.constant 22 : index
    %c0_133 = arith.constant 0 : index
    %c0_134 = arith.constant 0 : index
    %164 = vector.load %arg8[%c22, %c0_133, %c0_134] : memref<25x8x64xf32, #tpu.memory_space<vmem>>, vector<1x8x64xf32>
    %165 = vector.shape_cast %164 : vector<1x8x64xf32> to vector<8x64xf32>
    %166 = vector.shape_cast %163 : vector<8x64xf32> to vector<1x8x64xf32>
    tpu.vector_store %arg8[%c22, %c0_133, %c0_134], %166 {strides = array<i32>} : memref<25x8x64xf32, #tpu.memory_space<vmem>>, vector<1x8x64xf32>,
    %c0_135 = arith.constant 0 : index
    %c0_136 = arith.constant 0 : index
    %c35 = arith.constant 35 : index
    %167 = vector.load %arg7[%c0_135, %c0_136, %c35] : memref<1x16x100xbf16, #tpu.memory_space<vmem>>, vector<1x16x64xbf16>
    %168 = vector.shape_cast %167 : vector<1x16x64xbf16> to vector<16x64xbf16>
    %169 = arith.mulf %4, %168 : vector<16x64xbf16>
    %cst_137 = arith.constant dense<0.000000e+00> : vector<8x64xf32>
    %170 = tpu.matmul %5, %169, %cst_137 {dimension_numbers = #tpu.dot_dimension_numbers<[1], [0], [0], [1], [0, 0, 1, 1], [], []>} : vector<8x16xbf16>, vector<16x64xbf16>, vector<8x64xf32> -> vector<8x64xf32>
    %c23 = arith.constant 23 : index
    %c0_138 = arith.constant 0 : index
    %c0_139 = arith.constant 0 : index
    %171 = vector.load %arg8[%c23, %c0_138, %c0_139] : memref<25x8x64xf32, #tpu.memory_space<vmem>>, vector<1x8x64xf32>
    %172 = vector.shape_cast %171 : vector<1x8x64xf32> to vector<8x64xf32>
    %173 = vector.shape_cast %170 : vector<8x64xf32> to vector<1x8x64xf32>
    tpu.vector_store %arg8[%c23, %c0_138, %c0_139], %173 {strides = array<i32>} : memref<25x8x64xf32, #tpu.memory_space<vmem>>, vector<1x8x64xf32>,
    %c0_140 = arith.constant 0 : index
    %c0_141 = arith.constant 0 : index
    %c36 = arith.constant 36 : index
    %174 = vector.load %arg7[%c0_140, %c0_141, %c36] : memref<1x16x100xbf16, #tpu.memory_space<vmem>>, vector<1x16x64xbf16>
    %175 = vector.shape_cast %174 : vector<1x16x64xbf16> to vector<16x64xbf16>
    %176 = arith.mulf %4, %175 : vector<16x64xbf16>
    %cst_142 = arith.constant dense<0.000000e+00> : vector<8x64xf32>
    %177 = tpu.matmul %5, %176, %cst_142 {dimension_numbers = #tpu.dot_dimension_numbers<[1], [0], [0], [1], [0, 0, 1, 1], [], []>} : vector<8x16xbf16>, vector<16x64xbf16>, vector<8x64xf32> -> vector<8x64xf32>
    %c24_143 = arith.constant 24 : index
    %c0_144 = arith.constant 0 : index
    %c0_145 = arith.constant 0 : index
    %178 = vector.load %arg8[%c24_143, %c0_144, %c0_145] : memref<25x8x64xf32, #tpu.memory_space<vmem>>, vector<1x8x64xf32>
    %179 = vector.shape_cast %178 : vector<1x8x64xf32> to vector<8x64xf32>
    %180 = vector.shape_cast %177 : vector<8x64xf32> to vector<1x8x64xf32>
    tpu.vector_store %arg8[%c24_143, %c0_144, %c0_145], %180 {strides = array<i32>} : memref<25x8x64xf32, #tpu.memory_space<vmem>>, vector<1x8x64xf32>,
    %181 = tpu.iota {dimensions = array<i32: 1>} : vector<1x64xi32>
    %c8_i32 = arith.constant 8 : i32
    %c0_i32_146 = arith.constant 0 : i32
    %182 = arith.cmpi eq, %c8_i32, %c0_i32_146 : i32
    %c1_i32 = arith.constant 1 : i32
    %183 = arith.select %182, %c1_i32, %c8_i32 : i32
    %184 = vector.broadcast %183 : i32 to vector<1x64xi32>
    %185 = arith.remsi %181, %184 : vector<1x64xi32>
    %c0_i32_147 = arith.constant 0 : i32
    %186 = vector.broadcast %c0_i32_147 : i32 to vector<1x64xi32>
    %187 = arith.cmpi ne, %185, %186 : vector<1x64xi32>
    %c0_i32_148 = arith.constant 0 : i32
    %188 = vector.broadcast %c0_i32_148 : i32 to vector<1x64xi32>
    %189 = arith.cmpi slt, %185, %188 : vector<1x64xi32>
    %c0_i32_149 = arith.constant 0 : i32
    %190 = arith.cmpi slt, %183, %c0_i32_149 : i32
    %191 = vector.broadcast %190 : i1 to vector<1x64xi1>
    %192 = vector.broadcast %191 : vector<1x64xi1> to vector<1x64xi1>
    %193 = arith.xori %189, %192 : vector<1x64xi1>
    %194 = arith.andi %193, %187 : vector<1x64xi1>
    %195 = vector.broadcast %183 : i32 to vector<1x64xi32>
    %196 = arith.addi %185, %195 : vector<1x64xi32>
    %197 = arith.select %194, %196, %185 : vector<1x64xi1>, vector<1x64xi32>
    %c-2_i32 = arith.constant -2 : i32
    %198 = vector.broadcast %c-2_i32 : i32 to vector<1x64xi32>
    %199 = arith.addi %197, %198 : vector<1x64xi32>
    %c0_i32_150 = arith.constant 0 : i32
    %200 = vector.broadcast %c0_i32_150 : i32 to vector<1x64xi32>
    %201 = arith.cmpi sge, %199, %200 : vector<1x64xi32>
    %c8_i32_151 = arith.constant 8 : i32
    %202 = vector.broadcast %c8_i32_151 : i32 to vector<1x64xi32>
    %203 = arith.cmpi slt, %199, %202 : vector<1x64xi32>
    %204 = arith.andi %201, %203 : vector<1x64xi1>
    %205 = arith.extui %204 : vector<1x64xi1> to vector<1x64xi32>
    %206 = arith.sitofp %205 : vector<1x64xi32> to vector<1x64xf32>
    %c-1_i32 = arith.constant -1 : i32
    %207 = vector.broadcast %c-1_i32 : i32 to vector<1x64xi32>
    %208 = arith.addi %197, %207 : vector<1x64xi32>
    %c0_i32_152 = arith.constant 0 : i32
    %209 = vector.broadcast %c0_i32_152 : i32 to vector<1x64xi32>
    %210 = arith.cmpi sge, %208, %209 : vector<1x64xi32>
    %c8_i32_153 = arith.constant 8 : i32
    %211 = vector.broadcast %c8_i32_153 : i32 to vector<1x64xi32>
    %212 = arith.cmpi slt, %208, %211 : vector<1x64xi32>
    %213 = arith.andi %210, %212 : vector<1x64xi1>
    %214 = arith.extui %213 : vector<1x64xi1> to vector<1x64xi32>
    %215 = arith.sitofp %214 : vector<1x64xi32> to vector<1x64xf32>
    %c1_i32_154 = arith.constant 1 : i32
    %216 = vector.broadcast %c1_i32_154 : i32 to vector<1x64xi32>
    %217 = arith.addi %197, %216 : vector<1x64xi32>
    %c0_i32_155 = arith.constant 0 : i32
    %218 = vector.broadcast %c0_i32_155 : i32 to vector<1x64xi32>
    %219 = arith.cmpi sge, %217, %218 : vector<1x64xi32>
    %c8_i32_156 = arith.constant 8 : i32
    %220 = vector.broadcast %c8_i32_156 : i32 to vector<1x64xi32>
    %221 = arith.cmpi slt, %217, %220 : vector<1x64xi32>
    %222 = arith.andi %219, %221 : vector<1x64xi1>
    %223 = arith.extui %222 : vector<1x64xi1> to vector<1x64xi32>
    %224 = arith.sitofp %223 : vector<1x64xi32> to vector<1x64xf32>
    %c2_i32 = arith.constant 2 : i32
    %225 = vector.broadcast %c2_i32 : i32 to vector<1x64xi32>
    %226 = arith.addi %197, %225 : vector<1x64xi32>
    %c0_i32_157 = arith.constant 0 : i32
    %227 = vector.broadcast %c0_i32_157 : i32 to vector<1x64xi32>
    %228 = arith.cmpi sge, %226, %227 : vector<1x64xi32>
    %c8_i32_158 = arith.constant 8 : i32
    %229 = vector.broadcast %c8_i32_158 : i32 to vector<1x64xi32>
    %230 = arith.cmpi slt, %226, %229 : vector<1x64xi32>
    %231 = arith.andi %228, %230 : vector<1x64xi1>
    %232 = arith.extui %231 : vector<1x64xi1> to vector<1x64xi32>
    %233 = arith.sitofp %232 : vector<1x64xi32> to vector<1x64xf32>
    %c0_159 = arith.constant 0 : index
    %c0_160 = arith.constant 0 : index
    %c0_161 = arith.constant 0 : index
    %234 = vector.load %arg2[%c0_159, %c0_160, %c0_161] : memref<1x18x64xf32, #tpu.memory_space<vmem>>, vector<1x1x64xf32>
    %235 = vector.shape_cast %234 : vector<1x1x64xf32> to vector<1x64xf32>
    %c0_162 = arith.constant 0 : index
    %c1_163 = arith.constant 1 : index
    %c0_164 = arith.constant 0 : index
    %236 = vector.load %arg2[%c0_162, %c1_163, %c0_164] : memref<1x18x64xf32, #tpu.memory_space<vmem>>, vector<1x1x64xf32>
    %237 = vector.shape_cast %236 : vector<1x1x64xf32> to vector<1x64xf32>
    %238 = math.floor %235 : vector<1x64xf32>
    %239 = arith.subf %235, %238 : vector<1x64xf32>
    %240 = arith.fptosi %238 : vector<1x64xf32> to vector<1x64xi32>
    %241 = math.floor %237 : vector<1x64xf32>
    %242 = arith.subf %237, %241 : vector<1x64xf32>
    %243 = arith.fptosi %241 : vector<1x64xf32> to vector<1x64xi32>
    %cst_165 = arith.constant 0.000000e+00 : f32
    %244 = vector.broadcast %cst_165 : f32 to vector<1x64xf32>
    %c-1_i32_166 = arith.constant -1 : i32
    %245 = vector.broadcast %c-1_i32_166 : i32 to vector<1x64xi32>
    %246 = arith.cmpi eq, %240, %245 : vector<1x64xi32>
    %cst_167 = arith.constant 1.000000e+00 : f32
    %247 = vector.broadcast %cst_167 : f32 to vector<1x64xf32>
    %248 = arith.subf %247, %239 : vector<1x64xf32>
    %249 = arith.select %246, %248, %244 : vector<1x64xi1>, vector<1x64xf32>
    %c-2_i32_168 = arith.constant -2 : i32
    %250 = vector.broadcast %c-2_i32_168 : i32 to vector<1x64xi32>
    %251 = arith.cmpi eq, %240, %250 : vector<1x64xi32>
    %252 = arith.select %251, %239, %244 : vector<1x64xi1>, vector<1x64xf32>
    %253 = arith.addf %249, %252 : vector<1x64xf32>
    %254 = arith.mulf %253, %206 : vector<1x64xf32>
    %c-1_i32_169 = arith.constant -1 : i32
    %255 = vector.broadcast %c-1_i32_169 : i32 to vector<1x64xi32>
    %256 = arith.cmpi eq, %243, %255 : vector<1x64xi32>
    %cst_170 = arith.constant 1.000000e+00 : f32
    %257 = vector.broadcast %cst_170 : f32 to vector<1x64xf32>
    %258 = arith.subf %257, %242 : vector<1x64xf32>
    %259 = arith.select %256, %258, %244 : vector<1x64xi1>, vector<1x64xf32>
    %c-2_i32_171 = arith.constant -2 : i32
    %260 = vector.broadcast %c-2_i32_171 : i32 to vector<1x64xi32>
    %261 = arith.cmpi eq, %243, %260 : vector<1x64xi32>
    %262 = arith.select %261, %242, %244 : vector<1x64xi1>, vector<1x64xf32>
    %263 = arith.addf %259, %262 : vector<1x64xf32>
    %c0_i32_172 = arith.constant 0 : i32
    %264 = vector.broadcast %c0_i32_172 : i32 to vector<1x64xi32>
    %265 = arith.cmpi eq, %240, %264 : vector<1x64xi32>
    %cst_173 = arith.constant 1.000000e+00 : f32
    %266 = vector.broadcast %cst_173 : f32 to vector<1x64xf32>
    %267 = arith.subf %266, %239 : vector<1x64xf32>
    %268 = arith.select %265, %267, %244 : vector<1x64xi1>, vector<1x64xf32>
    %c-1_i32_174 = arith.constant -1 : i32
    %269 = vector.broadcast %c-1_i32_174 : i32 to vector<1x64xi32>
    %270 = arith.cmpi eq, %240, %269 : vector<1x64xi32>
    %271 = arith.select %270, %239, %244 : vector<1x64xi1>, vector<1x64xf32>
    %272 = arith.addf %268, %271 : vector<1x64xf32>
    %273 = arith.mulf %272, %215 : vector<1x64xf32>
    %c0_i32_175 = arith.constant 0 : i32
    %274 = vector.broadcast %c0_i32_175 : i32 to vector<1x64xi32>
    %275 = arith.cmpi eq, %243, %274 : vector<1x64xi32>
    %cst_176 = arith.constant 1.000000e+00 : f32
    %276 = vector.broadcast %cst_176 : f32 to vector<1x64xf32>
    %277 = arith.subf %276, %242 : vector<1x64xf32>
    %278 = arith.select %275, %277, %244 : vector<1x64xi1>, vector<1x64xf32>
    %c-1_i32_177 = arith.constant -1 : i32
    %279 = vector.broadcast %c-1_i32_177 : i32 to vector<1x64xi32>
    %280 = arith.cmpi eq, %243, %279 : vector<1x64xi32>
    %281 = arith.select %280, %242, %244 : vector<1x64xi1>, vector<1x64xf32>
    %282 = arith.addf %278, %281 : vector<1x64xf32>
    %c1_i32_178 = arith.constant 1 : i32
    %283 = vector.broadcast %c1_i32_178 : i32 to vector<1x64xi32>
    %284 = arith.cmpi eq, %240, %283 : vector<1x64xi32>
    %cst_179 = arith.constant 1.000000e+00 : f32
    %285 = vector.broadcast %cst_179 : f32 to vector<1x64xf32>
    %286 = arith.subf %285, %239 : vector<1x64xf32>
    %287 = arith.select %284, %286, %244 : vector<1x64xi1>, vector<1x64xf32>
    %c0_i32_180 = arith.constant 0 : i32
    %288 = vector.broadcast %c0_i32_180 : i32 to vector<1x64xi32>
    %289 = arith.cmpi eq, %240, %288 : vector<1x64xi32>
    %290 = arith.select %289, %239, %244 : vector<1x64xi1>, vector<1x64xf32>
    %291 = arith.addf %287, %290 : vector<1x64xf32>
    %c1_i32_181 = arith.constant 1 : i32
    %292 = vector.broadcast %c1_i32_181 : i32 to vector<1x64xi32>
    %293 = arith.cmpi eq, %243, %292 : vector<1x64xi32>
    %cst_182 = arith.constant 1.000000e+00 : f32
    %294 = vector.broadcast %cst_182 : f32 to vector<1x64xf32>
    %295 = arith.subf %294, %242 : vector<1x64xf32>
    %296 = arith.select %293, %295, %244 : vector<1x64xi1>, vector<1x64xf32>
    %c0_i32_183 = arith.constant 0 : i32
    %297 = vector.broadcast %c0_i32_183 : i32 to vector<1x64xi32>
    %298 = arith.cmpi eq, %243, %297 : vector<1x64xi32>
    %299 = arith.select %298, %242, %244 : vector<1x64xi1>, vector<1x64xf32>
    %300 = arith.addf %296, %299 : vector<1x64xf32>
    %cst_184 = arith.constant 0.000000e+00 : f32
    %301 = vector.broadcast %cst_184 : f32 to vector<8x64xf32>
    %302 = arith.mulf %263, %254 : vector<1x64xf32>
    %c0_185 = arith.constant 0 : index
    %c0_186 = arith.constant 0 : index
    %c0_187 = arith.constant 0 : index
    %303 = vector.load %arg8[%c0_185, %c0_186, %c0_187] : memref<25x8x64xf32, #tpu.memory_space<vmem>>, vector<1x8x64xf32>
    %304 = vector.shape_cast %303 : vector<1x8x64xf32> to vector<8x64xf32>
    %305 = vector.broadcast %302 : vector<1x64xf32> to vector<8x64xf32>
    %306 = arith.mulf %305, %304 : vector<8x64xf32>
    %307 = arith.addf %301, %306 : vector<8x64xf32>
    %308 = arith.mulf %263, %273 : vector<1x64xf32>
    %c1_188 = arith.constant 1 : index
    %c0_189 = arith.constant 0 : index
    %c0_190 = arith.constant 0 : index
    %309 = vector.load %arg8[%c1_188, %c0_189, %c0_190] : memref<25x8x64xf32, #tpu.memory_space<vmem>>, vector<1x8x64xf32>
    %310 = vector.shape_cast %309 : vector<1x8x64xf32> to vector<8x64xf32>
    %311 = vector.broadcast %308 : vector<1x64xf32> to vector<8x64xf32>
    %312 = arith.mulf %311, %310 : vector<8x64xf32>
    %313 = arith.addf %307, %312 : vector<8x64xf32>
    %314 = arith.mulf %263, %291 : vector<1x64xf32>
    %c2_191 = arith.constant 2 : index
    %c0_192 = arith.constant 0 : index
    %c0_193 = arith.constant 0 : index
    %315 = vector.load %arg8[%c2_191, %c0_192, %c0_193] : memref<25x8x64xf32, #tpu.memory_space<vmem>>, vector<1x8x64xf32>
    %316 = vector.shape_cast %315 : vector<1x8x64xf32> to vector<8x64xf32>
    %317 = vector.broadcast %314 : vector<1x64xf32> to vector<8x64xf32>
    %318 = arith.mulf %317, %316 : vector<8x64xf32>
    %319 = arith.addf %313, %318 : vector<8x64xf32>
    %320 = arith.mulf %282, %254 : vector<1x64xf32>
    %c5_194 = arith.constant 5 : index
    %c0_195 = arith.constant 0 : index
    %c0_196 = arith.constant 0 : index
    %321 = vector.load %arg8[%c5_194, %c0_195, %c0_196] : memref<25x8x64xf32, #tpu.memory_space<vmem>>, vector<1x8x64xf32>
    %322 = vector.shape_cast %321 : vector<1x8x64xf32> to vector<8x64xf32>
    %323 = vector.broadcast %320 : vector<1x64xf32> to vector<8x64xf32>
    %324 = arith.mulf %323, %322 : vector<8x64xf32>
    %325 = arith.addf %319, %324 : vector<8x64xf32>
    %326 = arith.mulf %282, %273 : vector<1x64xf32>
    %c6_197 = arith.constant 6 : index
    %c0_198 = arith.constant 0 : index
    %c0_199 = arith.constant 0 : index
    %327 = vector.load %arg8[%c6_197, %c0_198, %c0_199] : memref<25x8x64xf32, #tpu.memory_space<vmem>>, vector<1x8x64xf32>
    %328 = vector.shape_cast %327 : vector<1x8x64xf32> to vector<8x64xf32>
    %329 = vector.broadcast %326 : vector<1x64xf32> to vector<8x64xf32>
    %330 = arith.mulf %329, %328 : vector<8x64xf32>
    %331 = arith.addf %325, %330 : vector<8x64xf32>
    %332 = arith.mulf %282, %291 : vector<1x64xf32>
    %c7_200 = arith.constant 7 : index
    %c0_201 = arith.constant 0 : index
    %c0_202 = arith.constant 0 : index
    %333 = vector.load %arg8[%c7_200, %c0_201, %c0_202] : memref<25x8x64xf32, #tpu.memory_space<vmem>>, vector<1x8x64xf32>
    %334 = vector.shape_cast %333 : vector<1x8x64xf32> to vector<8x64xf32>
    %335 = vector.broadcast %332 : vector<1x64xf32> to vector<8x64xf32>
    %336 = arith.mulf %335, %334 : vector<8x64xf32>
    %337 = arith.addf %331, %336 : vector<8x64xf32>
    %338 = arith.mulf %300, %254 : vector<1x64xf32>
    %c10_203 = arith.constant 10 : index
    %c0_204 = arith.constant 0 : index
    %c0_205 = arith.constant 0 : index
    %339 = vector.load %arg8[%c10_203, %c0_204, %c0_205] : memref<25x8x64xf32, #tpu.memory_space<vmem>>, vector<1x8x64xf32>
    %340 = vector.shape_cast %339 : vector<1x8x64xf32> to vector<8x64xf32>
    %341 = vector.broadcast %338 : vector<1x64xf32> to vector<8x64xf32>
    %342 = arith.mulf %341, %340 : vector<8x64xf32>
    %343 = arith.addf %337, %342 : vector<8x64xf32>
    %344 = arith.mulf %300, %273 : vector<1x64xf32>
    %c11_206 = arith.constant 11 : index
    %c0_207 = arith.constant 0 : index
    %c0_208 = arith.constant 0 : index
    %345 = vector.load %arg8[%c11_206, %c0_207, %c0_208] : memref<25x8x64xf32, #tpu.memory_space<vmem>>, vector<1x8x64xf32>
    %346 = vector.shape_cast %345 : vector<1x8x64xf32> to vector<8x64xf32>
    %347 = vector.broadcast %344 : vector<1x64xf32> to vector<8x64xf32>
    %348 = arith.mulf %347, %346 : vector<8x64xf32>
    %349 = arith.addf %343, %348 : vector<8x64xf32>
    %350 = arith.mulf %300, %291 : vector<1x64xf32>
    %c12_209 = arith.constant 12 : index
    %c0_210 = arith.constant 0 : index
    %c0_211 = arith.constant 0 : index
    %351 = vector.load %arg8[%c12_209, %c0_210, %c0_211] : memref<25x8x64xf32, #tpu.memory_space<vmem>>, vector<1x8x64xf32>
    %352 = vector.shape_cast %351 : vector<1x8x64xf32> to vector<8x64xf32>
    %353 = vector.broadcast %350 : vector<1x64xf32> to vector<8x64xf32>
    %354 = arith.mulf %353, %352 : vector<8x64xf32>
    %355 = arith.addf %349, %354 : vector<8x64xf32>
    %cst_212 = arith.constant 5.000000e-01 : f32
    %356 = vector.broadcast %cst_212 : f32 to vector<8x64xf32>
    %357 = arith.mulf %356, %355 : vector<8x64xf32>
    %c0_213 = arith.constant 0 : index
    %c0_214 = arith.constant 0 : index
    %c0_215 = arith.constant 0 : index
    %c0_216 = arith.constant 0 : index
    %358 = vector.load %arg6[%c0_213, %c0_214, %c0_215, %c0_216] : memref<1x8x9x64xf32, #tpu.memory_space<vmem>>, vector<1x8x1x64xf32>
    %359 = vector.shape_cast %358 : vector<1x8x1x64xf32> to vector<8x64xf32>
    %360 = vector.shape_cast %357 : vector<8x64xf32> to vector<1x8x1x64xf32>
    tpu.vector_store %arg6[%c0_213, %c0_214, %c0_215, %c0_216], %360 {strides = array<i32>} : memref<1x8x9x64xf32, #tpu.memory_space<vmem>>, vector<1x8x1x64xf32>,
    %c0_217 = arith.constant 0 : index
    %c2_218 = arith.constant 2 : index
    %c0_219 = arith.constant 0 : index
    %361 = vector.load %arg2[%c0_217, %c2_218, %c0_219] : memref<1x18x64xf32, #tpu.memory_space<vmem>>, vector<1x1x64xf32>
    %362 = vector.shape_cast %361 : vector<1x1x64xf32> to vector<1x64xf32>
    %c0_220 = arith.constant 0 : index
    %c3_221 = arith.constant 3 : index
    %c0_222 = arith.constant 0 : index
    %363 = vector.load %arg2[%c0_220, %c3_221, %c0_222] : memref<1x18x64xf32, #tpu.memory_space<vmem>>, vector<1x1x64xf32>
    %364 = vector.shape_cast %363 : vector<1x1x64xf32> to vector<1x64xf32>
    %365 = math.floor %362 : vector<1x64xf32>
    %366 = arith.subf %362, %365 : vector<1x64xf32>
    %367 = arith.fptosi %365 : vector<1x64xf32> to vector<1x64xi32>
    %368 = math.floor %364 : vector<1x64xf32>
    %369 = arith.subf %364, %368 : vector<1x64xf32>
    %370 = arith.fptosi %368 : vector<1x64xf32> to vector<1x64xi32>
    %cst_223 = arith.constant 0.000000e+00 : f32
    %371 = vector.broadcast %cst_223 : f32 to vector<1x64xf32>
    %c-1_i32_224 = arith.constant -1 : i32
    %372 = vector.broadcast %c-1_i32_224 : i32 to vector<1x64xi32>
    %373 = arith.cmpi eq, %367, %372 : vector<1x64xi32>
    %cst_225 = arith.constant 1.000000e+00 : f32
    %374 = vector.broadcast %cst_225 : f32 to vector<1x64xf32>
    %375 = arith.subf %374, %366 : vector<1x64xf32>
    %376 = arith.select %373, %375, %371 : vector<1x64xi1>, vector<1x64xf32>
    %c-2_i32_226 = arith.constant -2 : i32
    %377 = vector.broadcast %c-2_i32_226 : i32 to vector<1x64xi32>
    %378 = arith.cmpi eq, %367, %377 : vector<1x64xi32>
    %379 = arith.select %378, %366, %371 : vector<1x64xi1>, vector<1x64xf32>
    %380 = arith.addf %376, %379 : vector<1x64xf32>
    %381 = arith.mulf %380, %206 : vector<1x64xf32>
    %c-1_i32_227 = arith.constant -1 : i32
    %382 = vector.broadcast %c-1_i32_227 : i32 to vector<1x64xi32>
    %383 = arith.cmpi eq, %370, %382 : vector<1x64xi32>
    %cst_228 = arith.constant 1.000000e+00 : f32
    %384 = vector.broadcast %cst_228 : f32 to vector<1x64xf32>
    %385 = arith.subf %384, %369 : vector<1x64xf32>
    %386 = arith.select %383, %385, %371 : vector<1x64xi1>, vector<1x64xf32>
    %c-2_i32_229 = arith.constant -2 : i32
    %387 = vector.broadcast %c-2_i32_229 : i32 to vector<1x64xi32>
    %388 = arith.cmpi eq, %370, %387 : vector<1x64xi32>
    %389 = arith.select %388, %369, %371 : vector<1x64xi1>, vector<1x64xf32>
    %390 = arith.addf %386, %389 : vector<1x64xf32>
    %c0_i32_230 = arith.constant 0 : i32
    %391 = vector.broadcast %c0_i32_230 : i32 to vector<1x64xi32>
    %392 = arith.cmpi eq, %367, %391 : vector<1x64xi32>
    %cst_231 = arith.constant 1.000000e+00 : f32
    %393 = vector.broadcast %cst_231 : f32 to vector<1x64xf32>
    %394 = arith.subf %393, %366 : vector<1x64xf32>
    %395 = arith.select %392, %394, %371 : vector<1x64xi1>, vector<1x64xf32>
    %c-1_i32_232 = arith.constant -1 : i32
    %396 = vector.broadcast %c-1_i32_232 : i32 to vector<1x64xi32>
    %397 = arith.cmpi eq, %367, %396 : vector<1x64xi32>
    %398 = arith.select %397, %366, %371 : vector<1x64xi1>, vector<1x64xf32>
    %399 = arith.addf %395, %398 : vector<1x64xf32>
    %400 = arith.mulf %399, %215 : vector<1x64xf32>
    %c0_i32_233 = arith.constant 0 : i32
    %401 = vector.broadcast %c0_i32_233 : i32 to vector<1x64xi32>
    %402 = arith.cmpi eq, %370, %401 : vector<1x64xi32>
    %cst_234 = arith.constant 1.000000e+00 : f32
    %403 = vector.broadcast %cst_234 : f32 to vector<1x64xf32>
    %404 = arith.subf %403, %369 : vector<1x64xf32>
    %405 = arith.select %402, %404, %371 : vector<1x64xi1>, vector<1x64xf32>
    %c-1_i32_235 = arith.constant -1 : i32
    %406 = vector.broadcast %c-1_i32_235 : i32 to vector<1x64xi32>
    %407 = arith.cmpi eq, %370, %406 : vector<1x64xi32>
    %408 = arith.select %407, %369, %371 : vector<1x64xi1>, vector<1x64xf32>
    %409 = arith.addf %405, %408 : vector<1x64xf32>
    %c1_i32_236 = arith.constant 1 : i32
    %410 = vector.broadcast %c1_i32_236 : i32 to vector<1x64xi32>
    %411 = arith.cmpi eq, %367, %410 : vector<1x64xi32>
    %cst_237 = arith.constant 1.000000e+00 : f32
    %412 = vector.broadcast %cst_237 : f32 to vector<1x64xf32>
    %413 = arith.subf %412, %366 : vector<1x64xf32>
    %414 = arith.select %411, %413, %371 : vector<1x64xi1>, vector<1x64xf32>
    %c0_i32_238 = arith.constant 0 : i32
    %415 = vector.broadcast %c0_i32_238 : i32 to vector<1x64xi32>
    %416 = arith.cmpi eq, %367, %415 : vector<1x64xi32>
    %417 = arith.select %416, %366, %371 : vector<1x64xi1>, vector<1x64xf32>
    %418 = arith.addf %414, %417 : vector<1x64xf32>
    %c1_i32_239 = arith.constant 1 : i32
    %419 = vector.broadcast %c1_i32_239 : i32 to vector<1x64xi32>
    %420 = arith.cmpi eq, %370, %419 : vector<1x64xi32>
    %cst_240 = arith.constant 1.000000e+00 : f32
    %421 = vector.broadcast %cst_240 : f32 to vector<1x64xf32>
    %422 = arith.subf %421, %369 : vector<1x64xf32>
    %423 = arith.select %420, %422, %371 : vector<1x64xi1>, vector<1x64xf32>
    %c0_i32_241 = arith.constant 0 : i32
    %424 = vector.broadcast %c0_i32_241 : i32 to vector<1x64xi32>
    %425 = arith.cmpi eq, %370, %424 : vector<1x64xi32>
    %426 = arith.select %425, %369, %371 : vector<1x64xi1>, vector<1x64xf32>
    %427 = arith.addf %423, %426 : vector<1x64xf32>
    %cst_242 = arith.constant 0.000000e+00 : f32
    %428 = vector.broadcast %cst_242 : f32 to vector<8x64xf32>
    %429 = arith.mulf %390, %381 : vector<1x64xf32>
    %c5_243 = arith.constant 5 : index
    %c0_244 = arith.constant 0 : index
    %c0_245 = arith.constant 0 : index
    %430 = vector.load %arg8[%c5_243, %c0_244, %c0_245] : memref<25x8x64xf32, #tpu.memory_space<vmem>>, vector<1x8x64xf32>
    %431 = vector.shape_cast %430 : vector<1x8x64xf32> to vector<8x64xf32>
    %432 = vector.broadcast %429 : vector<1x64xf32> to vector<8x64xf32>
    %433 = arith.mulf %432, %431 : vector<8x64xf32>
    %434 = arith.addf %428, %433 : vector<8x64xf32>
    %435 = arith.mulf %390, %400 : vector<1x64xf32>
    %c6_246 = arith.constant 6 : index
    %c0_247 = arith.constant 0 : index
    %c0_248 = arith.constant 0 : index
    %436 = vector.load %arg8[%c6_246, %c0_247, %c0_248] : memref<25x8x64xf32, #tpu.memory_space<vmem>>, vector<1x8x64xf32>
    %437 = vector.shape_cast %436 : vector<1x8x64xf32> to vector<8x64xf32>
    %438 = vector.broadcast %435 : vector<1x64xf32> to vector<8x64xf32>
    %439 = arith.mulf %438, %437 : vector<8x64xf32>
    %440 = arith.addf %434, %439 : vector<8x64xf32>
    %441 = arith.mulf %390, %418 : vector<1x64xf32>
    %c7_249 = arith.constant 7 : index
    %c0_250 = arith.constant 0 : index
    %c0_251 = arith.constant 0 : index
    %442 = vector.load %arg8[%c7_249, %c0_250, %c0_251] : memref<25x8x64xf32, #tpu.memory_space<vmem>>, vector<1x8x64xf32>
    %443 = vector.shape_cast %442 : vector<1x8x64xf32> to vector<8x64xf32>
    %444 = vector.broadcast %441 : vector<1x64xf32> to vector<8x64xf32>
    %445 = arith.mulf %444, %443 : vector<8x64xf32>
    %446 = arith.addf %440, %445 : vector<8x64xf32>
    %447 = arith.mulf %409, %381 : vector<1x64xf32>
    %c10_252 = arith.constant 10 : index
    %c0_253 = arith.constant 0 : index
    %c0_254 = arith.constant 0 : index
    %448 = vector.load %arg8[%c10_252, %c0_253, %c0_254] : memref<25x8x64xf32, #tpu.memory_space<vmem>>, vector<1x8x64xf32>
    %449 = vector.shape_cast %448 : vector<1x8x64xf32> to vector<8x64xf32>
    %450 = vector.broadcast %447 : vector<1x64xf32> to vector<8x64xf32>
    %451 = arith.mulf %450, %449 : vector<8x64xf32>
    %452 = arith.addf %446, %451 : vector<8x64xf32>
    %453 = arith.mulf %409, %400 : vector<1x64xf32>
    %c11_255 = arith.constant 11 : index
    %c0_256 = arith.constant 0 : index
    %c0_257 = arith.constant 0 : index
    %454 = vector.load %arg8[%c11_255, %c0_256, %c0_257] : memref<25x8x64xf32, #tpu.memory_space<vmem>>, vector<1x8x64xf32>
    %455 = vector.shape_cast %454 : vector<1x8x64xf32> to vector<8x64xf32>
    %456 = vector.broadcast %453 : vector<1x64xf32> to vector<8x64xf32>
    %457 = arith.mulf %456, %455 : vector<8x64xf32>
    %458 = arith.addf %452, %457 : vector<8x64xf32>
    %459 = arith.mulf %409, %418 : vector<1x64xf32>
    %c12_258 = arith.constant 12 : index
    %c0_259 = arith.constant 0 : index
    %c0_260 = arith.constant 0 : index
    %460 = vector.load %arg8[%c12_258, %c0_259, %c0_260] : memref<25x8x64xf32, #tpu.memory_space<vmem>>, vector<1x8x64xf32>
    %461 = vector.shape_cast %460 : vector<1x8x64xf32> to vector<8x64xf32>
    %462 = vector.broadcast %459 : vector<1x64xf32> to vector<8x64xf32>
    %463 = arith.mulf %462, %461 : vector<8x64xf32>
    %464 = arith.addf %458, %463 : vector<8x64xf32>
    %465 = arith.mulf %427, %381 : vector<1x64xf32>
    %c15_261 = arith.constant 15 : index
    %c0_262 = arith.constant 0 : index
    %c0_263 = arith.constant 0 : index
    %466 = vector.load %arg8[%c15_261, %c0_262, %c0_263] : memref<25x8x64xf32, #tpu.memory_space<vmem>>, vector<1x8x64xf32>
    %467 = vector.shape_cast %466 : vector<1x8x64xf32> to vector<8x64xf32>
    %468 = vector.broadcast %465 : vector<1x64xf32> to vector<8x64xf32>
    %469 = arith.mulf %468, %467 : vector<8x64xf32>
    %470 = arith.addf %464, %469 : vector<8x64xf32>
    %471 = arith.mulf %427, %400 : vector<1x64xf32>
    %c16_264 = arith.constant 16 : index
    %c0_265 = arith.constant 0 : index
    %c0_266 = arith.constant 0 : index
    %472 = vector.load %arg8[%c16_264, %c0_265, %c0_266] : memref<25x8x64xf32, #tpu.memory_space<vmem>>, vector<1x8x64xf32>
    %473 = vector.shape_cast %472 : vector<1x8x64xf32> to vector<8x64xf32>
    %474 = vector.broadcast %471 : vector<1x64xf32> to vector<8x64xf32>
    %475 = arith.mulf %474, %473 : vector<8x64xf32>
    %476 = arith.addf %470, %475 : vector<8x64xf32>
    %477 = arith.mulf %427, %418 : vector<1x64xf32>
    %c17_267 = arith.constant 17 : index
    %c0_268 = arith.constant 0 : index
    %c0_269 = arith.constant 0 : index
    %478 = vector.load %arg8[%c17_267, %c0_268, %c0_269] : memref<25x8x64xf32, #tpu.memory_space<vmem>>, vector<1x8x64xf32>
    %479 = vector.shape_cast %478 : vector<1x8x64xf32> to vector<8x64xf32>
    %480 = vector.broadcast %477 : vector<1x64xf32> to vector<8x64xf32>
    %481 = arith.mulf %480, %479 : vector<8x64xf32>
    %482 = arith.addf %476, %481 : vector<8x64xf32>
    %cst_270 = arith.constant 5.000000e-01 : f32
    %483 = vector.broadcast %cst_270 : f32 to vector<8x64xf32>
    %484 = arith.mulf %483, %482 : vector<8x64xf32>
    %c0_271 = arith.constant 0 : index
    %c0_272 = arith.constant 0 : index
    %c1_273 = arith.constant 1 : index
    %c0_274 = arith.constant 0 : index
    %485 = vector.load %arg6[%c0_271, %c0_272, %c1_273, %c0_274] : memref<1x8x9x64xf32, #tpu.memory_space<vmem>>, vector<1x8x1x64xf32>
    %486 = vector.shape_cast %485 : vector<1x8x1x64xf32> to vector<8x64xf32>
    %487 = vector.shape_cast %484 : vector<8x64xf32> to vector<1x8x1x64xf32>
    tpu.vector_store %arg6[%c0_271, %c0_272, %c1_273, %c0_274], %487 {strides = array<i32>} : memref<1x8x9x64xf32, #tpu.memory_space<vmem>>, vector<1x8x1x64xf32>,
    %c0_275 = arith.constant 0 : index
    %c4_276 = arith.constant 4 : index
    %c0_277 = arith.constant 0 : index
    %488 = vector.load %arg2[%c0_275, %c4_276, %c0_277] : memref<1x18x64xf32, #tpu.memory_space<vmem>>, vector<1x1x64xf32>
    %489 = vector.shape_cast %488 : vector<1x1x64xf32> to vector<1x64xf32>
    %c0_278 = arith.constant 0 : index
    %c5_279 = arith.constant 5 : index
    %c0_280 = arith.constant 0 : index
    %490 = vector.load %arg2[%c0_278, %c5_279, %c0_280] : memref<1x18x64xf32, #tpu.memory_space<vmem>>, vector<1x1x64xf32>
    %491 = vector.shape_cast %490 : vector<1x1x64xf32> to vector<1x64xf32>
    %492 = math.floor %489 : vector<1x64xf32>
    %493 = arith.subf %489, %492 : vector<1x64xf32>
    %494 = arith.fptosi %492 : vector<1x64xf32> to vector<1x64xi32>
    %495 = math.floor %491 : vector<1x64xf32>
    %496 = arith.subf %491, %495 : vector<1x64xf32>
    %497 = arith.fptosi %495 : vector<1x64xf32> to vector<1x64xi32>
    %cst_281 = arith.constant 0.000000e+00 : f32
    %498 = vector.broadcast %cst_281 : f32 to vector<1x64xf32>
    %c-1_i32_282 = arith.constant -1 : i32
    %499 = vector.broadcast %c-1_i32_282 : i32 to vector<1x64xi32>
    %500 = arith.cmpi eq, %494, %499 : vector<1x64xi32>
    %cst_283 = arith.constant 1.000000e+00 : f32
    %501 = vector.broadcast %cst_283 : f32 to vector<1x64xf32>
    %502 = arith.subf %501, %493 : vector<1x64xf32>
    %503 = arith.select %500, %502, %498 : vector<1x64xi1>, vector<1x64xf32>
    %c-2_i32_284 = arith.constant -2 : i32
    %504 = vector.broadcast %c-2_i32_284 : i32 to vector<1x64xi32>
    %505 = arith.cmpi eq, %494, %504 : vector<1x64xi32>
    %506 = arith.select %505, %493, %498 : vector<1x64xi1>, vector<1x64xf32>
    %507 = arith.addf %503, %506 : vector<1x64xf32>
    %508 = arith.mulf %507, %206 : vector<1x64xf32>
    %c-1_i32_285 = arith.constant -1 : i32
    %509 = vector.broadcast %c-1_i32_285 : i32 to vector<1x64xi32>
    %510 = arith.cmpi eq, %497, %509 : vector<1x64xi32>
    %cst_286 = arith.constant 1.000000e+00 : f32
    %511 = vector.broadcast %cst_286 : f32 to vector<1x64xf32>
    %512 = arith.subf %511, %496 : vector<1x64xf32>
    %513 = arith.select %510, %512, %498 : vector<1x64xi1>, vector<1x64xf32>
    %c-2_i32_287 = arith.constant -2 : i32
    %514 = vector.broadcast %c-2_i32_287 : i32 to vector<1x64xi32>
    %515 = arith.cmpi eq, %497, %514 : vector<1x64xi32>
    %516 = arith.select %515, %496, %498 : vector<1x64xi1>, vector<1x64xf32>
    %517 = arith.addf %513, %516 : vector<1x64xf32>
    %c0_i32_288 = arith.constant 0 : i32
    %518 = vector.broadcast %c0_i32_288 : i32 to vector<1x64xi32>
    %519 = arith.cmpi eq, %494, %518 : vector<1x64xi32>
    %cst_289 = arith.constant 1.000000e+00 : f32
    %520 = vector.broadcast %cst_289 : f32 to vector<1x64xf32>
    %521 = arith.subf %520, %493 : vector<1x64xf32>
    %522 = arith.select %519, %521, %498 : vector<1x64xi1>, vector<1x64xf32>
    %c-1_i32_290 = arith.constant -1 : i32
    %523 = vector.broadcast %c-1_i32_290 : i32 to vector<1x64xi32>
    %524 = arith.cmpi eq, %494, %523 : vector<1x64xi32>
    %525 = arith.select %524, %493, %498 : vector<1x64xi1>, vector<1x64xf32>
    %526 = arith.addf %522, %525 : vector<1x64xf32>
    %527 = arith.mulf %526, %215 : vector<1x64xf32>
    %c0_i32_291 = arith.constant 0 : i32
    %528 = vector.broadcast %c0_i32_291 : i32 to vector<1x64xi32>
    %529 = arith.cmpi eq, %497, %528 : vector<1x64xi32>
    %cst_292 = arith.constant 1.000000e+00 : f32
    %530 = vector.broadcast %cst_292 : f32 to vector<1x64xf32>
    %531 = arith.subf %530, %496 : vector<1x64xf32>
    %532 = arith.select %529, %531, %498 : vector<1x64xi1>, vector<1x64xf32>
    %c-1_i32_293 = arith.constant -1 : i32
    %533 = vector.broadcast %c-1_i32_293 : i32 to vector<1x64xi32>
    %534 = arith.cmpi eq, %497, %533 : vector<1x64xi32>
    %535 = arith.select %534, %496, %498 : vector<1x64xi1>, vector<1x64xf32>
    %536 = arith.addf %532, %535 : vector<1x64xf32>
    %c1_i32_294 = arith.constant 1 : i32
    %537 = vector.broadcast %c1_i32_294 : i32 to vector<1x64xi32>
    %538 = arith.cmpi eq, %494, %537 : vector<1x64xi32>
    %cst_295 = arith.constant 1.000000e+00 : f32
    %539 = vector.broadcast %cst_295 : f32 to vector<1x64xf32>
    %540 = arith.subf %539, %493 : vector<1x64xf32>
    %541 = arith.select %538, %540, %498 : vector<1x64xi1>, vector<1x64xf32>
    %c0_i32_296 = arith.constant 0 : i32
    %542 = vector.broadcast %c0_i32_296 : i32 to vector<1x64xi32>
    %543 = arith.cmpi eq, %494, %542 : vector<1x64xi32>
    %544 = arith.select %543, %493, %498 : vector<1x64xi1>, vector<1x64xf32>
    %545 = arith.addf %541, %544 : vector<1x64xf32>
    %c1_i32_297 = arith.constant 1 : i32
    %546 = vector.broadcast %c1_i32_297 : i32 to vector<1x64xi32>
    %547 = arith.cmpi eq, %497, %546 : vector<1x64xi32>
    %cst_298 = arith.constant 1.000000e+00 : f32
    %548 = vector.broadcast %cst_298 : f32 to vector<1x64xf32>
    %549 = arith.subf %548, %496 : vector<1x64xf32>
    %550 = arith.select %547, %549, %498 : vector<1x64xi1>, vector<1x64xf32>
    %c0_i32_299 = arith.constant 0 : i32
    %551 = vector.broadcast %c0_i32_299 : i32 to vector<1x64xi32>
    %552 = arith.cmpi eq, %497, %551 : vector<1x64xi32>
    %553 = arith.select %552, %496, %498 : vector<1x64xi1>, vector<1x64xf32>
    %554 = arith.addf %550, %553 : vector<1x64xf32>
    %cst_300 = arith.constant 0.000000e+00 : f32
    %555 = vector.broadcast %cst_300 : f32 to vector<8x64xf32>
    %556 = arith.mulf %517, %508 : vector<1x64xf32>
    %c10_301 = arith.constant 10 : index
    %c0_302 = arith.constant 0 : index
    %c0_303 = arith.constant 0 : index
    %557 = vector.load %arg8[%c10_301, %c0_302, %c0_303] : memref<25x8x64xf32, #tpu.memory_space<vmem>>, vector<1x8x64xf32>
    %558 = vector.shape_cast %557 : vector<1x8x64xf32> to vector<8x64xf32>
    %559 = vector.broadcast %556 : vector<1x64xf32> to vector<8x64xf32>
    %560 = arith.mulf %559, %558 : vector<8x64xf32>
    %561 = arith.addf %555, %560 : vector<8x64xf32>
    %562 = arith.mulf %517, %527 : vector<1x64xf32>
    %c11_304 = arith.constant 11 : index
    %c0_305 = arith.constant 0 : index
    %c0_306 = arith.constant 0 : index
    %563 = vector.load %arg8[%c11_304, %c0_305, %c0_306] : memref<25x8x64xf32, #tpu.memory_space<vmem>>, vector<1x8x64xf32>
    %564 = vector.shape_cast %563 : vector<1x8x64xf32> to vector<8x64xf32>
    %565 = vector.broadcast %562 : vector<1x64xf32> to vector<8x64xf32>
    %566 = arith.mulf %565, %564 : vector<8x64xf32>
    %567 = arith.addf %561, %566 : vector<8x64xf32>
    %568 = arith.mulf %517, %545 : vector<1x64xf32>
    %c12_307 = arith.constant 12 : index
    %c0_308 = arith.constant 0 : index
    %c0_309 = arith.constant 0 : index
    %569 = vector.load %arg8[%c12_307, %c0_308, %c0_309] : memref<25x8x64xf32, #tpu.memory_space<vmem>>, vector<1x8x64xf32>
    %570 = vector.shape_cast %569 : vector<1x8x64xf32> to vector<8x64xf32>
    %571 = vector.broadcast %568 : vector<1x64xf32> to vector<8x64xf32>
    %572 = arith.mulf %571, %570 : vector<8x64xf32>
    %573 = arith.addf %567, %572 : vector<8x64xf32>
    %574 = arith.mulf %536, %508 : vector<1x64xf32>
    %c15_310 = arith.constant 15 : index
    %c0_311 = arith.constant 0 : index
    %c0_312 = arith.constant 0 : index
    %575 = vector.load %arg8[%c15_310, %c0_311, %c0_312] : memref<25x8x64xf32, #tpu.memory_space<vmem>>, vector<1x8x64xf32>
    %576 = vector.shape_cast %575 : vector<1x8x64xf32> to vector<8x64xf32>
    %577 = vector.broadcast %574 : vector<1x64xf32> to vector<8x64xf32>
    %578 = arith.mulf %577, %576 : vector<8x64xf32>
    %579 = arith.addf %573, %578 : vector<8x64xf32>
    %580 = arith.mulf %536, %527 : vector<1x64xf32>
    %c16_313 = arith.constant 16 : index
    %c0_314 = arith.constant 0 : index
    %c0_315 = arith.constant 0 : index
    %581 = vector.load %arg8[%c16_313, %c0_314, %c0_315] : memref<25x8x64xf32, #tpu.memory_space<vmem>>, vector<1x8x64xf32>
    %582 = vector.shape_cast %581 : vector<1x8x64xf32> to vector<8x64xf32>
    %583 = vector.broadcast %580 : vector<1x64xf32> to vector<8x64xf32>
    %584 = arith.mulf %583, %582 : vector<8x64xf32>
    %585 = arith.addf %579, %584 : vector<8x64xf32>
    %586 = arith.mulf %536, %545 : vector<1x64xf32>
    %c17_316 = arith.constant 17 : index
    %c0_317 = arith.constant 0 : index
    %c0_318 = arith.constant 0 : index
    %587 = vector.load %arg8[%c17_316, %c0_317, %c0_318] : memref<25x8x64xf32, #tpu.memory_space<vmem>>, vector<1x8x64xf32>
    %588 = vector.shape_cast %587 : vector<1x8x64xf32> to vector<8x64xf32>
    %589 = vector.broadcast %586 : vector<1x64xf32> to vector<8x64xf32>
    %590 = arith.mulf %589, %588 : vector<8x64xf32>
    %591 = arith.addf %585, %590 : vector<8x64xf32>
    %592 = arith.mulf %554, %508 : vector<1x64xf32>
    %c20_319 = arith.constant 20 : index
    %c0_320 = arith.constant 0 : index
    %c0_321 = arith.constant 0 : index
    %593 = vector.load %arg8[%c20_319, %c0_320, %c0_321] : memref<25x8x64xf32, #tpu.memory_space<vmem>>, vector<1x8x64xf32>
    %594 = vector.shape_cast %593 : vector<1x8x64xf32> to vector<8x64xf32>
    %595 = vector.broadcast %592 : vector<1x64xf32> to vector<8x64xf32>
    %596 = arith.mulf %595, %594 : vector<8x64xf32>
    %597 = arith.addf %591, %596 : vector<8x64xf32>
    %598 = arith.mulf %554, %527 : vector<1x64xf32>
    %c21_322 = arith.constant 21 : index
    %c0_323 = arith.constant 0 : index
    %c0_324 = arith.constant 0 : index
    %599 = vector.load %arg8[%c21_322, %c0_323, %c0_324] : memref<25x8x64xf32, #tpu.memory_space<vmem>>, vector<1x8x64xf32>
    %600 = vector.shape_cast %599 : vector<1x8x64xf32> to vector<8x64xf32>
    %601 = vector.broadcast %598 : vector<1x64xf32> to vector<8x64xf32>
    %602 = arith.mulf %601, %600 : vector<8x64xf32>
    %603 = arith.addf %597, %602 : vector<8x64xf32>
    %604 = arith.mulf %554, %545 : vector<1x64xf32>
    %c22_325 = arith.constant 22 : index
    %c0_326 = arith.constant 0 : index
    %c0_327 = arith.constant 0 : index
    %605 = vector.load %arg8[%c22_325, %c0_326, %c0_327] : memref<25x8x64xf32, #tpu.memory_space<vmem>>, vector<1x8x64xf32>
    %606 = vector.shape_cast %605 : vector<1x8x64xf32> to vector<8x64xf32>
    %607 = vector.broadcast %604 : vector<1x64xf32> to vector<8x64xf32>
    %608 = arith.mulf %607, %606 : vector<8x64xf32>
    %609 = arith.addf %603, %608 : vector<8x64xf32>
    %cst_328 = arith.constant 5.000000e-01 : f32
    %610 = vector.broadcast %cst_328 : f32 to vector<8x64xf32>
    %611 = arith.mulf %610, %609 : vector<8x64xf32>
    %c0_329 = arith.constant 0 : index
    %c0_330 = arith.constant 0 : index
    %c2_331 = arith.constant 2 : index
    %c0_332 = arith.constant 0 : index
    %612 = vector.load %arg6[%c0_329, %c0_330, %c2_331, %c0_332] : memref<1x8x9x64xf32, #tpu.memory_space<vmem>>, vector<1x8x1x64xf32>
    %613 = vector.shape_cast %612 : vector<1x8x1x64xf32> to vector<8x64xf32>
    %614 = vector.shape_cast %611 : vector<8x64xf32> to vector<1x8x1x64xf32>
    tpu.vector_store %arg6[%c0_329, %c0_330, %c2_331, %c0_332], %614 {strides = array<i32>} : memref<1x8x9x64xf32, #tpu.memory_space<vmem>>, vector<1x8x1x64xf32>,
    %c0_333 = arith.constant 0 : index
    %c6_334 = arith.constant 6 : index
    %c0_335 = arith.constant 0 : index
    %615 = vector.load %arg2[%c0_333, %c6_334, %c0_335] : memref<1x18x64xf32, #tpu.memory_space<vmem>>, vector<1x1x64xf32>
    %616 = vector.shape_cast %615 : vector<1x1x64xf32> to vector<1x64xf32>
    %c0_336 = arith.constant 0 : index
    %c7_337 = arith.constant 7 : index
    %c0_338 = arith.constant 0 : index
    %617 = vector.load %arg2[%c0_336, %c7_337, %c0_338] : memref<1x18x64xf32, #tpu.memory_space<vmem>>, vector<1x1x64xf32>
    %618 = vector.shape_cast %617 : vector<1x1x64xf32> to vector<1x64xf32>
    %619 = math.floor %616 : vector<1x64xf32>
    %620 = arith.subf %616, %619 : vector<1x64xf32>
    %621 = arith.fptosi %619 : vector<1x64xf32> to vector<1x64xi32>
    %622 = math.floor %618 : vector<1x64xf32>
    %623 = arith.subf %618, %622 : vector<1x64xf32>
    %624 = arith.fptosi %622 : vector<1x64xf32> to vector<1x64xi32>
    %cst_339 = arith.constant 0.000000e+00 : f32
    %625 = vector.broadcast %cst_339 : f32 to vector<1x64xf32>
    %c-1_i32_340 = arith.constant -1 : i32
    %626 = vector.broadcast %c-1_i32_340 : i32 to vector<1x64xi32>
    %627 = arith.cmpi eq, %621, %626 : vector<1x64xi32>
    %cst_341 = arith.constant 1.000000e+00 : f32
    %628 = vector.broadcast %cst_341 : f32 to vector<1x64xf32>
    %629 = arith.subf %628, %620 : vector<1x64xf32>
    %630 = arith.select %627, %629, %625 : vector<1x64xi1>, vector<1x64xf32>
    %c-2_i32_342 = arith.constant -2 : i32
    %631 = vector.broadcast %c-2_i32_342 : i32 to vector<1x64xi32>
    %632 = arith.cmpi eq, %621, %631 : vector<1x64xi32>
    %633 = arith.select %632, %620, %625 : vector<1x64xi1>, vector<1x64xf32>
    %634 = arith.addf %630, %633 : vector<1x64xf32>
    %635 = arith.mulf %634, %215 : vector<1x64xf32>
    %c-1_i32_343 = arith.constant -1 : i32
    %636 = vector.broadcast %c-1_i32_343 : i32 to vector<1x64xi32>
    %637 = arith.cmpi eq, %624, %636 : vector<1x64xi32>
    %cst_344 = arith.constant 1.000000e+00 : f32
    %638 = vector.broadcast %cst_344 : f32 to vector<1x64xf32>
    %639 = arith.subf %638, %623 : vector<1x64xf32>
    %640 = arith.select %637, %639, %625 : vector<1x64xi1>, vector<1x64xf32>
    %c-2_i32_345 = arith.constant -2 : i32
    %641 = vector.broadcast %c-2_i32_345 : i32 to vector<1x64xi32>
    %642 = arith.cmpi eq, %624, %641 : vector<1x64xi32>
    %643 = arith.select %642, %623, %625 : vector<1x64xi1>, vector<1x64xf32>
    %644 = arith.addf %640, %643 : vector<1x64xf32>
    %c0_i32_346 = arith.constant 0 : i32
    %645 = vector.broadcast %c0_i32_346 : i32 to vector<1x64xi32>
    %646 = arith.cmpi eq, %621, %645 : vector<1x64xi32>
    %cst_347 = arith.constant 1.000000e+00 : f32
    %647 = vector.broadcast %cst_347 : f32 to vector<1x64xf32>
    %648 = arith.subf %647, %620 : vector<1x64xf32>
    %649 = arith.select %646, %648, %625 : vector<1x64xi1>, vector<1x64xf32>
    %c-1_i32_348 = arith.constant -1 : i32
    %650 = vector.broadcast %c-1_i32_348 : i32 to vector<1x64xi32>
    %651 = arith.cmpi eq, %621, %650 : vector<1x64xi32>
    %652 = arith.select %651, %620, %625 : vector<1x64xi1>, vector<1x64xf32>
    %653 = arith.addf %649, %652 : vector<1x64xf32>
    %c0_i32_349 = arith.constant 0 : i32
    %654 = vector.broadcast %c0_i32_349 : i32 to vector<1x64xi32>
    %655 = arith.cmpi eq, %624, %654 : vector<1x64xi32>
    %cst_350 = arith.constant 1.000000e+00 : f32
    %656 = vector.broadcast %cst_350 : f32 to vector<1x64xf32>
    %657 = arith.subf %656, %623 : vector<1x64xf32>
    %658 = arith.select %655, %657, %625 : vector<1x64xi1>, vector<1x64xf32>
    %c-1_i32_351 = arith.constant -1 : i32
    %659 = vector.broadcast %c-1_i32_351 : i32 to vector<1x64xi32>
    %660 = arith.cmpi eq, %624, %659 : vector<1x64xi32>
    %661 = arith.select %660, %623, %625 : vector<1x64xi1>, vector<1x64xf32>
    %662 = arith.addf %658, %661 : vector<1x64xf32>
    %c1_i32_352 = arith.constant 1 : i32
    %663 = vector.broadcast %c1_i32_352 : i32 to vector<1x64xi32>
    %664 = arith.cmpi eq, %621, %663 : vector<1x64xi32>
    %cst_353 = arith.constant 1.000000e+00 : f32
    %665 = vector.broadcast %cst_353 : f32 to vector<1x64xf32>
    %666 = arith.subf %665, %620 : vector<1x64xf32>
    %667 = arith.select %664, %666, %625 : vector<1x64xi1>, vector<1x64xf32>
    %c0_i32_354 = arith.constant 0 : i32
    %668 = vector.broadcast %c0_i32_354 : i32 to vector<1x64xi32>
    %669 = arith.cmpi eq, %621, %668 : vector<1x64xi32>
    %670 = arith.select %669, %620, %625 : vector<1x64xi1>, vector<1x64xf32>
    %671 = arith.addf %667, %670 : vector<1x64xf32>
    %672 = arith.mulf %671, %224 : vector<1x64xf32>
    %c1_i32_355 = arith.constant 1 : i32
    %673 = vector.broadcast %c1_i32_355 : i32 to vector<1x64xi32>
    %674 = arith.cmpi eq, %624, %673 : vector<1x64xi32>
    %cst_356 = arith.constant 1.000000e+00 : f32
    %675 = vector.broadcast %cst_356 : f32 to vector<1x64xf32>
    %676 = arith.subf %675, %623 : vector<1x64xf32>
    %677 = arith.select %674, %676, %625 : vector<1x64xi1>, vector<1x64xf32>
    %c0_i32_357 = arith.constant 0 : i32
    %678 = vector.broadcast %c0_i32_357 : i32 to vector<1x64xi32>
    %679 = arith.cmpi eq, %624, %678 : vector<1x64xi32>
    %680 = arith.select %679, %623, %625 : vector<1x64xi1>, vector<1x64xf32>
    %681 = arith.addf %677, %680 : vector<1x64xf32>
    %cst_358 = arith.constant 0.000000e+00 : f32
    %682 = vector.broadcast %cst_358 : f32 to vector<8x64xf32>
    %683 = arith.mulf %644, %635 : vector<1x64xf32>
    %c1_359 = arith.constant 1 : index
    %c0_360 = arith.constant 0 : index
    %c0_361 = arith.constant 0 : index
    %684 = vector.load %arg8[%c1_359, %c0_360, %c0_361] : memref<25x8x64xf32, #tpu.memory_space<vmem>>, vector<1x8x64xf32>
    %685 = vector.shape_cast %684 : vector<1x8x64xf32> to vector<8x64xf32>
    %686 = vector.broadcast %683 : vector<1x64xf32> to vector<8x64xf32>
    %687 = arith.mulf %686, %685 : vector<8x64xf32>
    %688 = arith.addf %682, %687 : vector<8x64xf32>
    %689 = arith.mulf %644, %653 : vector<1x64xf32>
    %c2_362 = arith.constant 2 : index
    %c0_363 = arith.constant 0 : index
    %c0_364 = arith.constant 0 : index
    %690 = vector.load %arg8[%c2_362, %c0_363, %c0_364] : memref<25x8x64xf32, #tpu.memory_space<vmem>>, vector<1x8x64xf32>
    %691 = vector.shape_cast %690 : vector<1x8x64xf32> to vector<8x64xf32>
    %692 = vector.broadcast %689 : vector<1x64xf32> to vector<8x64xf32>
    %693 = arith.mulf %692, %691 : vector<8x64xf32>
    %694 = arith.addf %688, %693 : vector<8x64xf32>
    %695 = arith.mulf %644, %672 : vector<1x64xf32>
    %c3_365 = arith.constant 3 : index
    %c0_366 = arith.constant 0 : index
    %c0_367 = arith.constant 0 : index
    %696 = vector.load %arg8[%c3_365, %c0_366, %c0_367] : memref<25x8x64xf32, #tpu.memory_space<vmem>>, vector<1x8x64xf32>
    %697 = vector.shape_cast %696 : vector<1x8x64xf32> to vector<8x64xf32>
    %698 = vector.broadcast %695 : vector<1x64xf32> to vector<8x64xf32>
    %699 = arith.mulf %698, %697 : vector<8x64xf32>
    %700 = arith.addf %694, %699 : vector<8x64xf32>
    %701 = arith.mulf %662, %635 : vector<1x64xf32>
    %c6_368 = arith.constant 6 : index
    %c0_369 = arith.constant 0 : index
    %c0_370 = arith.constant 0 : index
    %702 = vector.load %arg8[%c6_368, %c0_369, %c0_370] : memref<25x8x64xf32, #tpu.memory_space<vmem>>, vector<1x8x64xf32>
    %703 = vector.shape_cast %702 : vector<1x8x64xf32> to vector<8x64xf32>
    %704 = vector.broadcast %701 : vector<1x64xf32> to vector<8x64xf32>
    %705 = arith.mulf %704, %703 : vector<8x64xf32>
    %706 = arith.addf %700, %705 : vector<8x64xf32>
    %707 = arith.mulf %662, %653 : vector<1x64xf32>
    %c7_371 = arith.constant 7 : index
    %c0_372 = arith.constant 0 : index
    %c0_373 = arith.constant 0 : index
    %708 = vector.load %arg8[%c7_371, %c0_372, %c0_373] : memref<25x8x64xf32, #tpu.memory_space<vmem>>, vector<1x8x64xf32>
    %709 = vector.shape_cast %708 : vector<1x8x64xf32> to vector<8x64xf32>
    %710 = vector.broadcast %707 : vector<1x64xf32> to vector<8x64xf32>
    %711 = arith.mulf %710, %709 : vector<8x64xf32>
    %712 = arith.addf %706, %711 : vector<8x64xf32>
    %713 = arith.mulf %662, %672 : vector<1x64xf32>
    %c8_374 = arith.constant 8 : index
    %c0_375 = arith.constant 0 : index
    %c0_376 = arith.constant 0 : index
    %714 = vector.load %arg8[%c8_374, %c0_375, %c0_376] : memref<25x8x64xf32, #tpu.memory_space<vmem>>, vector<1x8x64xf32>
    %715 = vector.shape_cast %714 : vector<1x8x64xf32> to vector<8x64xf32>
    %716 = vector.broadcast %713 : vector<1x64xf32> to vector<8x64xf32>
    %717 = arith.mulf %716, %715 : vector<8x64xf32>
    %718 = arith.addf %712, %717 : vector<8x64xf32>
    %719 = arith.mulf %681, %635 : vector<1x64xf32>
    %c11_377 = arith.constant 11 : index
    %c0_378 = arith.constant 0 : index
    %c0_379 = arith.constant 0 : index
    %720 = vector.load %arg8[%c11_377, %c0_378, %c0_379] : memref<25x8x64xf32, #tpu.memory_space<vmem>>, vector<1x8x64xf32>
    %721 = vector.shape_cast %720 : vector<1x8x64xf32> to vector<8x64xf32>
    %722 = vector.broadcast %719 : vector<1x64xf32> to vector<8x64xf32>
    %723 = arith.mulf %722, %721 : vector<8x64xf32>
    %724 = arith.addf %718, %723 : vector<8x64xf32>
    %725 = arith.mulf %681, %653 : vector<1x64xf32>
    %c12_380 = arith.constant 12 : index
    %c0_381 = arith.constant 0 : index
    %c0_382 = arith.constant 0 : index
    %726 = vector.load %arg8[%c12_380, %c0_381, %c0_382] : memref<25x8x64xf32, #tpu.memory_space<vmem>>, vector<1x8x64xf32>
    %727 = vector.shape_cast %726 : vector<1x8x64xf32> to vector<8x64xf32>
    %728 = vector.broadcast %725 : vector<1x64xf32> to vector<8x64xf32>
    %729 = arith.mulf %728, %727 : vector<8x64xf32>
    %730 = arith.addf %724, %729 : vector<8x64xf32>
    %731 = arith.mulf %681, %672 : vector<1x64xf32>
    %c13_383 = arith.constant 13 : index
    %c0_384 = arith.constant 0 : index
    %c0_385 = arith.constant 0 : index
    %732 = vector.load %arg8[%c13_383, %c0_384, %c0_385] : memref<25x8x64xf32, #tpu.memory_space<vmem>>, vector<1x8x64xf32>
    %733 = vector.shape_cast %732 : vector<1x8x64xf32> to vector<8x64xf32>
    %734 = vector.broadcast %731 : vector<1x64xf32> to vector<8x64xf32>
    %735 = arith.mulf %734, %733 : vector<8x64xf32>
    %736 = arith.addf %730, %735 : vector<8x64xf32>
    %cst_386 = arith.constant 5.000000e-01 : f32
    %737 = vector.broadcast %cst_386 : f32 to vector<8x64xf32>
    %738 = arith.mulf %737, %736 : vector<8x64xf32>
    %c0_387 = arith.constant 0 : index
    %c0_388 = arith.constant 0 : index
    %c3_389 = arith.constant 3 : index
    %c0_390 = arith.constant 0 : index
    %739 = vector.load %arg6[%c0_387, %c0_388, %c3_389, %c0_390] : memref<1x8x9x64xf32, #tpu.memory_space<vmem>>, vector<1x8x1x64xf32>
    %740 = vector.shape_cast %739 : vector<1x8x1x64xf32> to vector<8x64xf32>
    %741 = vector.shape_cast %738 : vector<8x64xf32> to vector<1x8x1x64xf32>
    tpu.vector_store %arg6[%c0_387, %c0_388, %c3_389, %c0_390], %741 {strides = array<i32>} : memref<1x8x9x64xf32, #tpu.memory_space<vmem>>, vector<1x8x1x64xf32>,
    %c0_391 = arith.constant 0 : index
    %c8_392 = arith.constant 8 : index
    %c0_393 = arith.constant 0 : index
    %742 = vector.load %arg2[%c0_391, %c8_392, %c0_393] : memref<1x18x64xf32, #tpu.memory_space<vmem>>, vector<1x1x64xf32>
    %743 = vector.shape_cast %742 : vector<1x1x64xf32> to vector<1x64xf32>
    %c0_394 = arith.constant 0 : index
    %c9_395 = arith.constant 9 : index
    %c0_396 = arith.constant 0 : index
    %744 = vector.load %arg2[%c0_394, %c9_395, %c0_396] : memref<1x18x64xf32, #tpu.memory_space<vmem>>, vector<1x1x64xf32>
    %745 = vector.shape_cast %744 : vector<1x1x64xf32> to vector<1x64xf32>
    %746 = math.floor %743 : vector<1x64xf32>
    %747 = arith.subf %743, %746 : vector<1x64xf32>
    %748 = arith.fptosi %746 : vector<1x64xf32> to vector<1x64xi32>
    %749 = math.floor %745 : vector<1x64xf32>
    %750 = arith.subf %745, %749 : vector<1x64xf32>
    %751 = arith.fptosi %749 : vector<1x64xf32> to vector<1x64xi32>
    %cst_397 = arith.constant 0.000000e+00 : f32
    %752 = vector.broadcast %cst_397 : f32 to vector<1x64xf32>
    %c-1_i32_398 = arith.constant -1 : i32
    %753 = vector.broadcast %c-1_i32_398 : i32 to vector<1x64xi32>
    %754 = arith.cmpi eq, %748, %753 : vector<1x64xi32>
    %cst_399 = arith.constant 1.000000e+00 : f32
    %755 = vector.broadcast %cst_399 : f32 to vector<1x64xf32>
    %756 = arith.subf %755, %747 : vector<1x64xf32>
    %757 = arith.select %754, %756, %752 : vector<1x64xi1>, vector<1x64xf32>
    %c-2_i32_400 = arith.constant -2 : i32
    %758 = vector.broadcast %c-2_i32_400 : i32 to vector<1x64xi32>
    %759 = arith.cmpi eq, %748, %758 : vector<1x64xi32>
    %760 = arith.select %759, %747, %752 : vector<1x64xi1>, vector<1x64xf32>
    %761 = arith.addf %757, %760 : vector<1x64xf32>
    %762 = arith.mulf %761, %215 : vector<1x64xf32>
    %c-1_i32_401 = arith.constant -1 : i32
    %763 = vector.broadcast %c-1_i32_401 : i32 to vector<1x64xi32>
    %764 = arith.cmpi eq, %751, %763 : vector<1x64xi32>
    %cst_402 = arith.constant 1.000000e+00 : f32
    %765 = vector.broadcast %cst_402 : f32 to vector<1x64xf32>
    %766 = arith.subf %765, %750 : vector<1x64xf32>
    %767 = arith.select %764, %766, %752 : vector<1x64xi1>, vector<1x64xf32>
    %c-2_i32_403 = arith.constant -2 : i32
    %768 = vector.broadcast %c-2_i32_403 : i32 to vector<1x64xi32>
    %769 = arith.cmpi eq, %751, %768 : vector<1x64xi32>
    %770 = arith.select %769, %750, %752 : vector<1x64xi1>, vector<1x64xf32>
    %771 = arith.addf %767, %770 : vector<1x64xf32>
    %c0_i32_404 = arith.constant 0 : i32
    %772 = vector.broadcast %c0_i32_404 : i32 to vector<1x64xi32>
    %773 = arith.cmpi eq, %748, %772 : vector<1x64xi32>
    %cst_405 = arith.constant 1.000000e+00 : f32
    %774 = vector.broadcast %cst_405 : f32 to vector<1x64xf32>
    %775 = arith.subf %774, %747 : vector<1x64xf32>
    %776 = arith.select %773, %775, %752 : vector<1x64xi1>, vector<1x64xf32>
    %c-1_i32_406 = arith.constant -1 : i32
    %777 = vector.broadcast %c-1_i32_406 : i32 to vector<1x64xi32>
    %778 = arith.cmpi eq, %748, %777 : vector<1x64xi32>
    %779 = arith.select %778, %747, %752 : vector<1x64xi1>, vector<1x64xf32>
    %780 = arith.addf %776, %779 : vector<1x64xf32>
    %c0_i32_407 = arith.constant 0 : i32
    %781 = vector.broadcast %c0_i32_407 : i32 to vector<1x64xi32>
    %782 = arith.cmpi eq, %751, %781 : vector<1x64xi32>
    %cst_408 = arith.constant 1.000000e+00 : f32
    %783 = vector.broadcast %cst_408 : f32 to vector<1x64xf32>
    %784 = arith.subf %783, %750 : vector<1x64xf32>
    %785 = arith.select %782, %784, %752 : vector<1x64xi1>, vector<1x64xf32>
    %c-1_i32_409 = arith.constant -1 : i32
    %786 = vector.broadcast %c-1_i32_409 : i32 to vector<1x64xi32>
    %787 = arith.cmpi eq, %751, %786 : vector<1x64xi32>
    %788 = arith.select %787, %750, %752 : vector<1x64xi1>, vector<1x64xf32>
    %789 = arith.addf %785, %788 : vector<1x64xf32>
    %c1_i32_410 = arith.constant 1 : i32
    %790 = vector.broadcast %c1_i32_410 : i32 to vector<1x64xi32>
    %791 = arith.cmpi eq, %748, %790 : vector<1x64xi32>
    %cst_411 = arith.constant 1.000000e+00 : f32
    %792 = vector.broadcast %cst_411 : f32 to vector<1x64xf32>
    %793 = arith.subf %792, %747 : vector<1x64xf32>
    %794 = arith.select %791, %793, %752 : vector<1x64xi1>, vector<1x64xf32>
    %c0_i32_412 = arith.constant 0 : i32
    %795 = vector.broadcast %c0_i32_412 : i32 to vector<1x64xi32>
    %796 = arith.cmpi eq, %748, %795 : vector<1x64xi32>
    %797 = arith.select %796, %747, %752 : vector<1x64xi1>, vector<1x64xf32>
    %798 = arith.addf %794, %797 : vector<1x64xf32>
    %799 = arith.mulf %798, %224 : vector<1x64xf32>
    %c1_i32_413 = arith.constant 1 : i32
    %800 = vector.broadcast %c1_i32_413 : i32 to vector<1x64xi32>
    %801 = arith.cmpi eq, %751, %800 : vector<1x64xi32>
    %cst_414 = arith.constant 1.000000e+00 : f32
    %802 = vector.broadcast %cst_414 : f32 to vector<1x64xf32>
    %803 = arith.subf %802, %750 : vector<1x64xf32>
    %804 = arith.select %801, %803, %752 : vector<1x64xi1>, vector<1x64xf32>
    %c0_i32_415 = arith.constant 0 : i32
    %805 = vector.broadcast %c0_i32_415 : i32 to vector<1x64xi32>
    %806 = arith.cmpi eq, %751, %805 : vector<1x64xi32>
    %807 = arith.select %806, %750, %752 : vector<1x64xi1>, vector<1x64xf32>
    %808 = arith.addf %804, %807 : vector<1x64xf32>
    %cst_416 = arith.constant 0.000000e+00 : f32
    %809 = vector.broadcast %cst_416 : f32 to vector<8x64xf32>
    %810 = arith.mulf %771, %762 : vector<1x64xf32>
    %c6_417 = arith.constant 6 : index
    %c0_418 = arith.constant 0 : index
    %c0_419 = arith.constant 0 : index
    %811 = vector.load %arg8[%c6_417, %c0_418, %c0_419] : memref<25x8x64xf32, #tpu.memory_space<vmem>>, vector<1x8x64xf32>
    %812 = vector.shape_cast %811 : vector<1x8x64xf32> to vector<8x64xf32>
    %813 = vector.broadcast %810 : vector<1x64xf32> to vector<8x64xf32>
    %814 = arith.mulf %813, %812 : vector<8x64xf32>
    %815 = arith.addf %809, %814 : vector<8x64xf32>
    %816 = arith.mulf %771, %780 : vector<1x64xf32>
    %c7_420 = arith.constant 7 : index
    %c0_421 = arith.constant 0 : index
    %c0_422 = arith.constant 0 : index
    %817 = vector.load %arg8[%c7_420, %c0_421, %c0_422] : memref<25x8x64xf32, #tpu.memory_space<vmem>>, vector<1x8x64xf32>
    %818 = vector.shape_cast %817 : vector<1x8x64xf32> to vector<8x64xf32>
    %819 = vector.broadcast %816 : vector<1x64xf32> to vector<8x64xf32>
    %820 = arith.mulf %819, %818 : vector<8x64xf32>
    %821 = arith.addf %815, %820 : vector<8x64xf32>
    %822 = arith.mulf %771, %799 : vector<1x64xf32>
    %c8_423 = arith.constant 8 : index
    %c0_424 = arith.constant 0 : index
    %c0_425 = arith.constant 0 : index
    %823 = vector.load %arg8[%c8_423, %c0_424, %c0_425] : memref<25x8x64xf32, #tpu.memory_space<vmem>>, vector<1x8x64xf32>
    %824 = vector.shape_cast %823 : vector<1x8x64xf32> to vector<8x64xf32>
    %825 = vector.broadcast %822 : vector<1x64xf32> to vector<8x64xf32>
    %826 = arith.mulf %825, %824 : vector<8x64xf32>
    %827 = arith.addf %821, %826 : vector<8x64xf32>
    %828 = arith.mulf %789, %762 : vector<1x64xf32>
    %c11_426 = arith.constant 11 : index
    %c0_427 = arith.constant 0 : index
    %c0_428 = arith.constant 0 : index
    %829 = vector.load %arg8[%c11_426, %c0_427, %c0_428] : memref<25x8x64xf32, #tpu.memory_space<vmem>>, vector<1x8x64xf32>
    %830 = vector.shape_cast %829 : vector<1x8x64xf32> to vector<8x64xf32>
    %831 = vector.broadcast %828 : vector<1x64xf32> to vector<8x64xf32>
    %832 = arith.mulf %831, %830 : vector<8x64xf32>
    %833 = arith.addf %827, %832 : vector<8x64xf32>
    %834 = arith.mulf %789, %780 : vector<1x64xf32>
    %c12_429 = arith.constant 12 : index
    %c0_430 = arith.constant 0 : index
    %c0_431 = arith.constant 0 : index
    %835 = vector.load %arg8[%c12_429, %c0_430, %c0_431] : memref<25x8x64xf32, #tpu.memory_space<vmem>>, vector<1x8x64xf32>
    %836 = vector.shape_cast %835 : vector<1x8x64xf32> to vector<8x64xf32>
    %837 = vector.broadcast %834 : vector<1x64xf32> to vector<8x64xf32>
    %838 = arith.mulf %837, %836 : vector<8x64xf32>
    %839 = arith.addf %833, %838 : vector<8x64xf32>
    %840 = arith.mulf %789, %799 : vector<1x64xf32>
    %c13_432 = arith.constant 13 : index
    %c0_433 = arith.constant 0 : index
    %c0_434 = arith.constant 0 : index
    %841 = vector.load %arg8[%c13_432, %c0_433, %c0_434] : memref<25x8x64xf32, #tpu.memory_space<vmem>>, vector<1x8x64xf32>
    %842 = vector.shape_cast %841 : vector<1x8x64xf32> to vector<8x64xf32>
    %843 = vector.broadcast %840 : vector<1x64xf32> to vector<8x64xf32>
    %844 = arith.mulf %843, %842 : vector<8x64xf32>
    %845 = arith.addf %839, %844 : vector<8x64xf32>
    %846 = arith.mulf %808, %762 : vector<1x64xf32>
    %c16_435 = arith.constant 16 : index
    %c0_436 = arith.constant 0 : index
    %c0_437 = arith.constant 0 : index
    %847 = vector.load %arg8[%c16_435, %c0_436, %c0_437] : memref<25x8x64xf32, #tpu.memory_space<vmem>>, vector<1x8x64xf32>
    %848 = vector.shape_cast %847 : vector<1x8x64xf32> to vector<8x64xf32>
    %849 = vector.broadcast %846 : vector<1x64xf32> to vector<8x64xf32>
    %850 = arith.mulf %849, %848 : vector<8x64xf32>
    %851 = arith.addf %845, %850 : vector<8x64xf32>
    %852 = arith.mulf %808, %780 : vector<1x64xf32>
    %c17_438 = arith.constant 17 : index
    %c0_439 = arith.constant 0 : index
    %c0_440 = arith.constant 0 : index
    %853 = vector.load %arg8[%c17_438, %c0_439, %c0_440] : memref<25x8x64xf32, #tpu.memory_space<vmem>>, vector<1x8x64xf32>
    %854 = vector.shape_cast %853 : vector<1x8x64xf32> to vector<8x64xf32>
    %855 = vector.broadcast %852 : vector<1x64xf32> to vector<8x64xf32>
    %856 = arith.mulf %855, %854 : vector<8x64xf32>
    %857 = arith.addf %851, %856 : vector<8x64xf32>
    %858 = arith.mulf %808, %799 : vector<1x64xf32>
    %c18_441 = arith.constant 18 : index
    %c0_442 = arith.constant 0 : index
    %c0_443 = arith.constant 0 : index
    %859 = vector.load %arg8[%c18_441, %c0_442, %c0_443] : memref<25x8x64xf32, #tpu.memory_space<vmem>>, vector<1x8x64xf32>
    %860 = vector.shape_cast %859 : vector<1x8x64xf32> to vector<8x64xf32>
    %861 = vector.broadcast %858 : vector<1x64xf32> to vector<8x64xf32>
    %862 = arith.mulf %861, %860 : vector<8x64xf32>
    %863 = arith.addf %857, %862 : vector<8x64xf32>
    %cst_444 = arith.constant 5.000000e-01 : f32
    %864 = vector.broadcast %cst_444 : f32 to vector<8x64xf32>
    %865 = arith.mulf %864, %863 : vector<8x64xf32>
    %c0_445 = arith.constant 0 : index
    %c0_446 = arith.constant 0 : index
    %c4_447 = arith.constant 4 : index
    %c0_448 = arith.constant 0 : index
    %866 = vector.load %arg6[%c0_445, %c0_446, %c4_447, %c0_448] : memref<1x8x9x64xf32, #tpu.memory_space<vmem>>, vector<1x8x1x64xf32>
    %867 = vector.shape_cast %866 : vector<1x8x1x64xf32> to vector<8x64xf32>
    %868 = vector.shape_cast %865 : vector<8x64xf32> to vector<1x8x1x64xf32>
    tpu.vector_store %arg6[%c0_445, %c0_446, %c4_447, %c0_448], %868 {strides = array<i32>} : memref<1x8x9x64xf32, #tpu.memory_space<vmem>>, vector<1x8x1x64xf32>,
    %c0_449 = arith.constant 0 : index
    %c10_450 = arith.constant 10 : index
    %c0_451 = arith.constant 0 : index
    %869 = vector.load %arg2[%c0_449, %c10_450, %c0_451] : memref<1x18x64xf32, #tpu.memory_space<vmem>>, vector<1x1x64xf32>
    %870 = vector.shape_cast %869 : vector<1x1x64xf32> to vector<1x64xf32>
    %c0_452 = arith.constant 0 : index
    %c11_453 = arith.constant 11 : index
    %c0_454 = arith.constant 0 : index
    %871 = vector.load %arg2[%c0_452, %c11_453, %c0_454] : memref<1x18x64xf32, #tpu.memory_space<vmem>>, vector<1x1x64xf32>
    %872 = vector.shape_cast %871 : vector<1x1x64xf32> to vector<1x64xf32>
    %873 = math.floor %870 : vector<1x64xf32>
    %874 = arith.subf %870, %873 : vector<1x64xf32>
    %875 = arith.fptosi %873 : vector<1x64xf32> to vector<1x64xi32>
    %876 = math.floor %872 : vector<1x64xf32>
    %877 = arith.subf %872, %876 : vector<1x64xf32>
    %878 = arith.fptosi %876 : vector<1x64xf32> to vector<1x64xi32>
    %cst_455 = arith.constant 0.000000e+00 : f32
    %879 = vector.broadcast %cst_455 : f32 to vector<1x64xf32>
    %c-1_i32_456 = arith.constant -1 : i32
    %880 = vector.broadcast %c-1_i32_456 : i32 to vector<1x64xi32>
    %881 = arith.cmpi eq, %875, %880 : vector<1x64xi32>
    %cst_457 = arith.constant 1.000000e+00 : f32
    %882 = vector.broadcast %cst_457 : f32 to vector<1x64xf32>
    %883 = arith.subf %882, %874 : vector<1x64xf32>
    %884 = arith.select %881, %883, %879 : vector<1x64xi1>, vector<1x64xf32>
    %c-2_i32_458 = arith.constant -2 : i32
    %885 = vector.broadcast %c-2_i32_458 : i32 to vector<1x64xi32>
    %886 = arith.cmpi eq, %875, %885 : vector<1x64xi32>
    %887 = arith.select %886, %874, %879 : vector<1x64xi1>, vector<1x64xf32>
    %888 = arith.addf %884, %887 : vector<1x64xf32>
    %889 = arith.mulf %888, %215 : vector<1x64xf32>
    %c-1_i32_459 = arith.constant -1 : i32
    %890 = vector.broadcast %c-1_i32_459 : i32 to vector<1x64xi32>
    %891 = arith.cmpi eq, %878, %890 : vector<1x64xi32>
    %cst_460 = arith.constant 1.000000e+00 : f32
    %892 = vector.broadcast %cst_460 : f32 to vector<1x64xf32>
    %893 = arith.subf %892, %877 : vector<1x64xf32>
    %894 = arith.select %891, %893, %879 : vector<1x64xi1>, vector<1x64xf32>
    %c-2_i32_461 = arith.constant -2 : i32
    %895 = vector.broadcast %c-2_i32_461 : i32 to vector<1x64xi32>
    %896 = arith.cmpi eq, %878, %895 : vector<1x64xi32>
    %897 = arith.select %896, %877, %879 : vector<1x64xi1>, vector<1x64xf32>
    %898 = arith.addf %894, %897 : vector<1x64xf32>
    %c0_i32_462 = arith.constant 0 : i32
    %899 = vector.broadcast %c0_i32_462 : i32 to vector<1x64xi32>
    %900 = arith.cmpi eq, %875, %899 : vector<1x64xi32>
    %cst_463 = arith.constant 1.000000e+00 : f32
    %901 = vector.broadcast %cst_463 : f32 to vector<1x64xf32>
    %902 = arith.subf %901, %874 : vector<1x64xf32>
    %903 = arith.select %900, %902, %879 : vector<1x64xi1>, vector<1x64xf32>
    %c-1_i32_464 = arith.constant -1 : i32
    %904 = vector.broadcast %c-1_i32_464 : i32 to vector<1x64xi32>
    %905 = arith.cmpi eq, %875, %904 : vector<1x64xi32>
    %906 = arith.select %905, %874, %879 : vector<1x64xi1>, vector<1x64xf32>
    %907 = arith.addf %903, %906 : vector<1x64xf32>
    %c0_i32_465 = arith.constant 0 : i32
    %908 = vector.broadcast %c0_i32_465 : i32 to vector<1x64xi32>
    %909 = arith.cmpi eq, %878, %908 : vector<1x64xi32>
    %cst_466 = arith.constant 1.000000e+00 : f32
    %910 = vector.broadcast %cst_466 : f32 to vector<1x64xf32>
    %911 = arith.subf %910, %877 : vector<1x64xf32>
    %912 = arith.select %909, %911, %879 : vector<1x64xi1>, vector<1x64xf32>
    %c-1_i32_467 = arith.constant -1 : i32
    %913 = vector.broadcast %c-1_i32_467 : i32 to vector<1x64xi32>
    %914 = arith.cmpi eq, %878, %913 : vector<1x64xi32>
    %915 = arith.select %914, %877, %879 : vector<1x64xi1>, vector<1x64xf32>
    %916 = arith.addf %912, %915 : vector<1x64xf32>
    %c1_i32_468 = arith.constant 1 : i32
    %917 = vector.broadcast %c1_i32_468 : i32 to vector<1x64xi32>
    %918 = arith.cmpi eq, %875, %917 : vector<1x64xi32>
    %cst_469 = arith.constant 1.000000e+00 : f32
    %919 = vector.broadcast %cst_469 : f32 to vector<1x64xf32>
    %920 = arith.subf %919, %874 : vector<1x64xf32>
    %921 = arith.select %918, %920, %879 : vector<1x64xi1>, vector<1x64xf32>
    %c0_i32_470 = arith.constant 0 : i32
    %922 = vector.broadcast %c0_i32_470 : i32 to vector<1x64xi32>
    %923 = arith.cmpi eq, %875, %922 : vector<1x64xi32>
    %924 = arith.select %923, %874, %879 : vector<1x64xi1>, vector<1x64xf32>
    %925 = arith.addf %921, %924 : vector<1x64xf32>
    %926 = arith.mulf %925, %224 : vector<1x64xf32>
    %c1_i32_471 = arith.constant 1 : i32
    %927 = vector.broadcast %c1_i32_471 : i32 to vector<1x64xi32>
    %928 = arith.cmpi eq, %878, %927 : vector<1x64xi32>
    %cst_472 = arith.constant 1.000000e+00 : f32
    %929 = vector.broadcast %cst_472 : f32 to vector<1x64xf32>
    %930 = arith.subf %929, %877 : vector<1x64xf32>
    %931 = arith.select %928, %930, %879 : vector<1x64xi1>, vector<1x64xf32>
    %c0_i32_473 = arith.constant 0 : i32
    %932 = vector.broadcast %c0_i32_473 : i32 to vector<1x64xi32>
    %933 = arith.cmpi eq, %878, %932 : vector<1x64xi32>
    %934 = arith.select %933, %877, %879 : vector<1x64xi1>, vector<1x64xf32>
    %935 = arith.addf %931, %934 : vector<1x64xf32>
    %cst_474 = arith.constant 0.000000e+00 : f32
    %936 = vector.broadcast %cst_474 : f32 to vector<8x64xf32>
    %937 = arith.mulf %898, %889 : vector<1x64xf32>
    %c11_475 = arith.constant 11 : index
    %c0_476 = arith.constant 0 : index
    %c0_477 = arith.constant 0 : index
    %938 = vector.load %arg8[%c11_475, %c0_476, %c0_477] : memref<25x8x64xf32, #tpu.memory_space<vmem>>, vector<1x8x64xf32>
    %939 = vector.shape_cast %938 : vector<1x8x64xf32> to vector<8x64xf32>
    %940 = vector.broadcast %937 : vector<1x64xf32> to vector<8x64xf32>
    %941 = arith.mulf %940, %939 : vector<8x64xf32>
    %942 = arith.addf %936, %941 : vector<8x64xf32>
    %943 = arith.mulf %898, %907 : vector<1x64xf32>
    %c12_478 = arith.constant 12 : index
    %c0_479 = arith.constant 0 : index
    %c0_480 = arith.constant 0 : index
    %944 = vector.load %arg8[%c12_478, %c0_479, %c0_480] : memref<25x8x64xf32, #tpu.memory_space<vmem>>, vector<1x8x64xf32>
    %945 = vector.shape_cast %944 : vector<1x8x64xf32> to vector<8x64xf32>
    %946 = vector.broadcast %943 : vector<1x64xf32> to vector<8x64xf32>
    %947 = arith.mulf %946, %945 : vector<8x64xf32>
    %948 = arith.addf %942, %947 : vector<8x64xf32>
    %949 = arith.mulf %898, %926 : vector<1x64xf32>
    %c13_481 = arith.constant 13 : index
    %c0_482 = arith.constant 0 : index
    %c0_483 = arith.constant 0 : index
    %950 = vector.load %arg8[%c13_481, %c0_482, %c0_483] : memref<25x8x64xf32, #tpu.memory_space<vmem>>, vector<1x8x64xf32>
    %951 = vector.shape_cast %950 : vector<1x8x64xf32> to vector<8x64xf32>
    %952 = vector.broadcast %949 : vector<1x64xf32> to vector<8x64xf32>
    %953 = arith.mulf %952, %951 : vector<8x64xf32>
    %954 = arith.addf %948, %953 : vector<8x64xf32>
    %955 = arith.mulf %916, %889 : vector<1x64xf32>
    %c16_484 = arith.constant 16 : index
    %c0_485 = arith.constant 0 : index
    %c0_486 = arith.constant 0 : index
    %956 = vector.load %arg8[%c16_484, %c0_485, %c0_486] : memref<25x8x64xf32, #tpu.memory_space<vmem>>, vector<1x8x64xf32>
    %957 = vector.shape_cast %956 : vector<1x8x64xf32> to vector<8x64xf32>
    %958 = vector.broadcast %955 : vector<1x64xf32> to vector<8x64xf32>
    %959 = arith.mulf %958, %957 : vector<8x64xf32>
    %960 = arith.addf %954, %959 : vector<8x64xf32>
    %961 = arith.mulf %916, %907 : vector<1x64xf32>
    %c17_487 = arith.constant 17 : index
    %c0_488 = arith.constant 0 : index
    %c0_489 = arith.constant 0 : index
    %962 = vector.load %arg8[%c17_487, %c0_488, %c0_489] : memref<25x8x64xf32, #tpu.memory_space<vmem>>, vector<1x8x64xf32>
    %963 = vector.shape_cast %962 : vector<1x8x64xf32> to vector<8x64xf32>
    %964 = vector.broadcast %961 : vector<1x64xf32> to vector<8x64xf32>
    %965 = arith.mulf %964, %963 : vector<8x64xf32>
    %966 = arith.addf %960, %965 : vector<8x64xf32>
    %967 = arith.mulf %916, %926 : vector<1x64xf32>
    %c18_490 = arith.constant 18 : index
    %c0_491 = arith.constant 0 : index
    %c0_492 = arith.constant 0 : index
    %968 = vector.load %arg8[%c18_490, %c0_491, %c0_492] : memref<25x8x64xf32, #tpu.memory_space<vmem>>, vector<1x8x64xf32>
    %969 = vector.shape_cast %968 : vector<1x8x64xf32> to vector<8x64xf32>
    %970 = vector.broadcast %967 : vector<1x64xf32> to vector<8x64xf32>
    %971 = arith.mulf %970, %969 : vector<8x64xf32>
    %972 = arith.addf %966, %971 : vector<8x64xf32>
    %973 = arith.mulf %935, %889 : vector<1x64xf32>
    %c21_493 = arith.constant 21 : index
    %c0_494 = arith.constant 0 : index
    %c0_495 = arith.constant 0 : index
    %974 = vector.load %arg8[%c21_493, %c0_494, %c0_495] : memref<25x8x64xf32, #tpu.memory_space<vmem>>, vector<1x8x64xf32>
    %975 = vector.shape_cast %974 : vector<1x8x64xf32> to vector<8x64xf32>
    %976 = vector.broadcast %973 : vector<1x64xf32> to vector<8x64xf32>
    %977 = arith.mulf %976, %975 : vector<8x64xf32>
    %978 = arith.addf %972, %977 : vector<8x64xf32>
    %979 = arith.mulf %935, %907 : vector<1x64xf32>
    %c22_496 = arith.constant 22 : index
    %c0_497 = arith.constant 0 : index
    %c0_498 = arith.constant 0 : index
    %980 = vector.load %arg8[%c22_496, %c0_497, %c0_498] : memref<25x8x64xf32, #tpu.memory_space<vmem>>, vector<1x8x64xf32>
    %981 = vector.shape_cast %980 : vector<1x8x64xf32> to vector<8x64xf32>
    %982 = vector.broadcast %979 : vector<1x64xf32> to vector<8x64xf32>
    %983 = arith.mulf %982, %981 : vector<8x64xf32>
    %984 = arith.addf %978, %983 : vector<8x64xf32>
    %985 = arith.mulf %935, %926 : vector<1x64xf32>
    %c23_499 = arith.constant 23 : index
    %c0_500 = arith.constant 0 : index
    %c0_501 = arith.constant 0 : index
    %986 = vector.load %arg8[%c23_499, %c0_500, %c0_501] : memref<25x8x64xf32, #tpu.memory_space<vmem>>, vector<1x8x64xf32>
    %987 = vector.shape_cast %986 : vector<1x8x64xf32> to vector<8x64xf32>
    %988 = vector.broadcast %985 : vector<1x64xf32> to vector<8x64xf32>
    %989 = arith.mulf %988, %987 : vector<8x64xf32>
    %990 = arith.addf %984, %989 : vector<8x64xf32>
    %cst_502 = arith.constant 5.000000e-01 : f32
    %991 = vector.broadcast %cst_502 : f32 to vector<8x64xf32>
    %992 = arith.mulf %991, %990 : vector<8x64xf32>
    %c0_503 = arith.constant 0 : index
    %c0_504 = arith.constant 0 : index
    %c5_505 = arith.constant 5 : index
    %c0_506 = arith.constant 0 : index
    %993 = vector.load %arg6[%c0_503, %c0_504, %c5_505, %c0_506] : memref<1x8x9x64xf32, #tpu.memory_space<vmem>>, vector<1x8x1x64xf32>
    %994 = vector.shape_cast %993 : vector<1x8x1x64xf32> to vector<8x64xf32>
    %995 = vector.shape_cast %992 : vector<8x64xf32> to vector<1x8x1x64xf32>
    tpu.vector_store %arg6[%c0_503, %c0_504, %c5_505, %c0_506], %995 {strides = array<i32>} : memref<1x8x9x64xf32, #tpu.memory_space<vmem>>, vector<1x8x1x64xf32>,
    %c0_507 = arith.constant 0 : index
    %c12_508 = arith.constant 12 : index
    %c0_509 = arith.constant 0 : index
    %996 = vector.load %arg2[%c0_507, %c12_508, %c0_509] : memref<1x18x64xf32, #tpu.memory_space<vmem>>, vector<1x1x64xf32>
    %997 = vector.shape_cast %996 : vector<1x1x64xf32> to vector<1x64xf32>
    %c0_510 = arith.constant 0 : index
    %c13_511 = arith.constant 13 : index
    %c0_512 = arith.constant 0 : index
    %998 = vector.load %arg2[%c0_510, %c13_511, %c0_512] : memref<1x18x64xf32, #tpu.memory_space<vmem>>, vector<1x1x64xf32>
    %999 = vector.shape_cast %998 : vector<1x1x64xf32> to vector<1x64xf32>
    %1000 = math.floor %997 : vector<1x64xf32>
    %1001 = arith.subf %997, %1000 : vector<1x64xf32>
    %1002 = arith.fptosi %1000 : vector<1x64xf32> to vector<1x64xi32>
    %1003 = math.floor %999 : vector<1x64xf32>
    %1004 = arith.subf %999, %1003 : vector<1x64xf32>
    %1005 = arith.fptosi %1003 : vector<1x64xf32> to vector<1x64xi32>
    %cst_513 = arith.constant 0.000000e+00 : f32
    %1006 = vector.broadcast %cst_513 : f32 to vector<1x64xf32>
    %c-1_i32_514 = arith.constant -1 : i32
    %1007 = vector.broadcast %c-1_i32_514 : i32 to vector<1x64xi32>
    %1008 = arith.cmpi eq, %1002, %1007 : vector<1x64xi32>
    %cst_515 = arith.constant 1.000000e+00 : f32
    %1009 = vector.broadcast %cst_515 : f32 to vector<1x64xf32>
    %1010 = arith.subf %1009, %1001 : vector<1x64xf32>
    %1011 = arith.select %1008, %1010, %1006 : vector<1x64xi1>, vector<1x64xf32>
    %c-2_i32_516 = arith.constant -2 : i32
    %1012 = vector.broadcast %c-2_i32_516 : i32 to vector<1x64xi32>
    %1013 = arith.cmpi eq, %1002, %1012 : vector<1x64xi32>
    %1014 = arith.select %1013, %1001, %1006 : vector<1x64xi1>, vector<1x64xf32>
    %1015 = arith.addf %1011, %1014 : vector<1x64xf32>
    %c-1_i32_517 = arith.constant -1 : i32
    %1016 = vector.broadcast %c-1_i32_517 : i32 to vector<1x64xi32>
    %1017 = arith.cmpi eq, %1005, %1016 : vector<1x64xi32>
    %cst_518 = arith.constant 1.000000e+00 : f32
    %1018 = vector.broadcast %cst_518 : f32 to vector<1x64xf32>
    %1019 = arith.subf %1018, %1004 : vector<1x64xf32>
    %1020 = arith.select %1017, %1019, %1006 : vector<1x64xi1>, vector<1x64xf32>
    %c-2_i32_519 = arith.constant -2 : i32
    %1021 = vector.broadcast %c-2_i32_519 : i32 to vector<1x64xi32>
    %1022 = arith.cmpi eq, %1005, %1021 : vector<1x64xi32>
    %1023 = arith.select %1022, %1004, %1006 : vector<1x64xi1>, vector<1x64xf32>
    %1024 = arith.addf %1020, %1023 : vector<1x64xf32>
    %c0_i32_520 = arith.constant 0 : i32
    %1025 = vector.broadcast %c0_i32_520 : i32 to vector<1x64xi32>
    %1026 = arith.cmpi eq, %1002, %1025 : vector<1x64xi32>
    %cst_521 = arith.constant 1.000000e+00 : f32
    %1027 = vector.broadcast %cst_521 : f32 to vector<1x64xf32>
    %1028 = arith.subf %1027, %1001 : vector<1x64xf32>
    %1029 = arith.select %1026, %1028, %1006 : vector<1x64xi1>, vector<1x64xf32>
    %c-1_i32_522 = arith.constant -1 : i32
    %1030 = vector.broadcast %c-1_i32_522 : i32 to vector<1x64xi32>
    %1031 = arith.cmpi eq, %1002, %1030 : vector<1x64xi32>
    %1032 = arith.select %1031, %1001, %1006 : vector<1x64xi1>, vector<1x64xf32>
    %1033 = arith.addf %1029, %1032 : vector<1x64xf32>
    %1034 = arith.mulf %1033, %224 : vector<1x64xf32>
    %c0_i32_523 = arith.constant 0 : i32
    %1035 = vector.broadcast %c0_i32_523 : i32 to vector<1x64xi32>
    %1036 = arith.cmpi eq, %1005, %1035 : vector<1x64xi32>
    %cst_524 = arith.constant 1.000000e+00 : f32
    %1037 = vector.broadcast %cst_524 : f32 to vector<1x64xf32>
    %1038 = arith.subf %1037, %1004 : vector<1x64xf32>
    %1039 = arith.select %1036, %1038, %1006 : vector<1x64xi1>, vector<1x64xf32>
    %c-1_i32_525 = arith.constant -1 : i32
    %1040 = vector.broadcast %c-1_i32_525 : i32 to vector<1x64xi32>
    %1041 = arith.cmpi eq, %1005, %1040 : vector<1x64xi32>
    %1042 = arith.select %1041, %1004, %1006 : vector<1x64xi1>, vector<1x64xf32>
    %1043 = arith.addf %1039, %1042 : vector<1x64xf32>
    %c1_i32_526 = arith.constant 1 : i32
    %1044 = vector.broadcast %c1_i32_526 : i32 to vector<1x64xi32>
    %1045 = arith.cmpi eq, %1002, %1044 : vector<1x64xi32>
    %cst_527 = arith.constant 1.000000e+00 : f32
    %1046 = vector.broadcast %cst_527 : f32 to vector<1x64xf32>
    %1047 = arith.subf %1046, %1001 : vector<1x64xf32>
    %1048 = arith.select %1045, %1047, %1006 : vector<1x64xi1>, vector<1x64xf32>
    %c0_i32_528 = arith.constant 0 : i32
    %1049 = vector.broadcast %c0_i32_528 : i32 to vector<1x64xi32>
    %1050 = arith.cmpi eq, %1002, %1049 : vector<1x64xi32>
    %1051 = arith.select %1050, %1001, %1006 : vector<1x64xi1>, vector<1x64xf32>
    %1052 = arith.addf %1048, %1051 : vector<1x64xf32>
    %1053 = arith.mulf %1052, %233 : vector<1x64xf32>
    %c1_i32_529 = arith.constant 1 : i32
    %1054 = vector.broadcast %c1_i32_529 : i32 to vector<1x64xi32>
    %1055 = arith.cmpi eq, %1005, %1054 : vector<1x64xi32>
    %cst_530 = arith.constant 1.000000e+00 : f32
    %1056 = vector.broadcast %cst_530 : f32 to vector<1x64xf32>
    %1057 = arith.subf %1056, %1004 : vector<1x64xf32>
    %1058 = arith.select %1055, %1057, %1006 : vector<1x64xi1>, vector<1x64xf32>
    %c0_i32_531 = arith.constant 0 : i32
    %1059 = vector.broadcast %c0_i32_531 : i32 to vector<1x64xi32>
    %1060 = arith.cmpi eq, %1005, %1059 : vector<1x64xi32>
    %1061 = arith.select %1060, %1004, %1006 : vector<1x64xi1>, vector<1x64xf32>
    %1062 = arith.addf %1058, %1061 : vector<1x64xf32>
    %cst_532 = arith.constant 0.000000e+00 : f32
    %1063 = vector.broadcast %cst_532 : f32 to vector<8x64xf32>
    %1064 = arith.mulf %1024, %1015 : vector<1x64xf32>
    %c2_533 = arith.constant 2 : index
    %c0_534 = arith.constant 0 : index
    %c0_535 = arith.constant 0 : index
    %1065 = vector.load %arg8[%c2_533, %c0_534, %c0_535] : memref<25x8x64xf32, #tpu.memory_space<vmem>>, vector<1x8x64xf32>
    %1066 = vector.shape_cast %1065 : vector<1x8x64xf32> to vector<8x64xf32>
    %1067 = vector.broadcast %1064 : vector<1x64xf32> to vector<8x64xf32>
    %1068 = arith.mulf %1067, %1066 : vector<8x64xf32>
    %1069 = arith.addf %1063, %1068 : vector<8x64xf32>
    %1070 = arith.mulf %1024, %1034 : vector<1x64xf32>
    %c3_536 = arith.constant 3 : index
    %c0_537 = arith.constant 0 : index
    %c0_538 = arith.constant 0 : index
    %1071 = vector.load %arg8[%c3_536, %c0_537, %c0_538] : memref<25x8x64xf32, #tpu.memory_space<vmem>>, vector<1x8x64xf32>
    %1072 = vector.shape_cast %1071 : vector<1x8x64xf32> to vector<8x64xf32>
    %1073 = vector.broadcast %1070 : vector<1x64xf32> to vector<8x64xf32>
    %1074 = arith.mulf %1073, %1072 : vector<8x64xf32>
    %1075 = arith.addf %1069, %1074 : vector<8x64xf32>
    %1076 = arith.mulf %1024, %1053 : vector<1x64xf32>
    %c4_539 = arith.constant 4 : index
    %c0_540 = arith.constant 0 : index
    %c0_541 = arith.constant 0 : index
    %1077 = vector.load %arg8[%c4_539, %c0_540, %c0_541] : memref<25x8x64xf32, #tpu.memory_space<vmem>>, vector<1x8x64xf32>
    %1078 = vector.shape_cast %1077 : vector<1x8x64xf32> to vector<8x64xf32>
    %1079 = vector.broadcast %1076 : vector<1x64xf32> to vector<8x64xf32>
    %1080 = arith.mulf %1079, %1078 : vector<8x64xf32>
    %1081 = arith.addf %1075, %1080 : vector<8x64xf32>
    %1082 = arith.mulf %1043, %1015 : vector<1x64xf32>
    %c7_542 = arith.constant 7 : index
    %c0_543 = arith.constant 0 : index
    %c0_544 = arith.constant 0 : index
    %1083 = vector.load %arg8[%c7_542, %c0_543, %c0_544] : memref<25x8x64xf32, #tpu.memory_space<vmem>>, vector<1x8x64xf32>
    %1084 = vector.shape_cast %1083 : vector<1x8x64xf32> to vector<8x64xf32>
    %1085 = vector.broadcast %1082 : vector<1x64xf32> to vector<8x64xf32>
    %1086 = arith.mulf %1085, %1084 : vector<8x64xf32>
    %1087 = arith.addf %1081, %1086 : vector<8x64xf32>
    %1088 = arith.mulf %1043, %1034 : vector<1x64xf32>
    %c8_545 = arith.constant 8 : index
    %c0_546 = arith.constant 0 : index
    %c0_547 = arith.constant 0 : index
    %1089 = vector.load %arg8[%c8_545, %c0_546, %c0_547] : memref<25x8x64xf32, #tpu.memory_space<vmem>>, vector<1x8x64xf32>
    %1090 = vector.shape_cast %1089 : vector<1x8x64xf32> to vector<8x64xf32>
    %1091 = vector.broadcast %1088 : vector<1x64xf32> to vector<8x64xf32>
    %1092 = arith.mulf %1091, %1090 : vector<8x64xf32>
    %1093 = arith.addf %1087, %1092 : vector<8x64xf32>
    %1094 = arith.mulf %1043, %1053 : vector<1x64xf32>
    %c9_548 = arith.constant 9 : index
    %c0_549 = arith.constant 0 : index
    %c0_550 = arith.constant 0 : index
    %1095 = vector.load %arg8[%c9_548, %c0_549, %c0_550] : memref<25x8x64xf32, #tpu.memory_space<vmem>>, vector<1x8x64xf32>
    %1096 = vector.shape_cast %1095 : vector<1x8x64xf32> to vector<8x64xf32>
    %1097 = vector.broadcast %1094 : vector<1x64xf32> to vector<8x64xf32>
    %1098 = arith.mulf %1097, %1096 : vector<8x64xf32>
    %1099 = arith.addf %1093, %1098 : vector<8x64xf32>
    %1100 = arith.mulf %1062, %1015 : vector<1x64xf32>
    %c12_551 = arith.constant 12 : index
    %c0_552 = arith.constant 0 : index
    %c0_553 = arith.constant 0 : index
    %1101 = vector.load %arg8[%c12_551, %c0_552, %c0_553] : memref<25x8x64xf32, #tpu.memory_space<vmem>>, vector<1x8x64xf32>
    %1102 = vector.shape_cast %1101 : vector<1x8x64xf32> to vector<8x64xf32>
    %1103 = vector.broadcast %1100 : vector<1x64xf32> to vector<8x64xf32>
    %1104 = arith.mulf %1103, %1102 : vector<8x64xf32>
    %1105 = arith.addf %1099, %1104 : vector<8x64xf32>
    %1106 = arith.mulf %1062, %1034 : vector<1x64xf32>
    %c13_554 = arith.constant 13 : index
    %c0_555 = arith.constant 0 : index
    %c0_556 = arith.constant 0 : index
    %1107 = vector.load %arg8[%c13_554, %c0_555, %c0_556] : memref<25x8x64xf32, #tpu.memory_space<vmem>>, vector<1x8x64xf32>
    %1108 = vector.shape_cast %1107 : vector<1x8x64xf32> to vector<8x64xf32>
    %1109 = vector.broadcast %1106 : vector<1x64xf32> to vector<8x64xf32>
    %1110 = arith.mulf %1109, %1108 : vector<8x64xf32>
    %1111 = arith.addf %1105, %1110 : vector<8x64xf32>
    %1112 = arith.mulf %1062, %1053 : vector<1x64xf32>
    %c14_557 = arith.constant 14 : index
    %c0_558 = arith.constant 0 : index
    %c0_559 = arith.constant 0 : index
    %1113 = vector.load %arg8[%c14_557, %c0_558, %c0_559] : memref<25x8x64xf32, #tpu.memory_space<vmem>>, vector<1x8x64xf32>
    %1114 = vector.shape_cast %1113 : vector<1x8x64xf32> to vector<8x64xf32>
    %1115 = vector.broadcast %1112 : vector<1x64xf32> to vector<8x64xf32>
    %1116 = arith.mulf %1115, %1114 : vector<8x64xf32>
    %1117 = arith.addf %1111, %1116 : vector<8x64xf32>
    %cst_560 = arith.constant 5.000000e-01 : f32
    %1118 = vector.broadcast %cst_560 : f32 to vector<8x64xf32>
    %1119 = arith.mulf %1118, %1117 : vector<8x64xf32>
    %c0_561 = arith.constant 0 : index
    %c0_562 = arith.constant 0 : index
    %c6_563 = arith.constant 6 : index
    %c0_564 = arith.constant 0 : index
    %1120 = vector.load %arg6[%c0_561, %c0_562, %c6_563, %c0_564] : memref<1x8x9x64xf32, #tpu.memory_space<vmem>>, vector<1x8x1x64xf32>
    %1121 = vector.shape_cast %1120 : vector<1x8x1x64xf32> to vector<8x64xf32>
    %1122 = vector.shape_cast %1119 : vector<8x64xf32> to vector<1x8x1x64xf32>
    tpu.vector_store %arg6[%c0_561, %c0_562, %c6_563, %c0_564], %1122 {strides = array<i32>} : memref<1x8x9x64xf32, #tpu.memory_space<vmem>>, vector<1x8x1x64xf32>,
    %c0_565 = arith.constant 0 : index
    %c14_566 = arith.constant 14 : index
    %c0_567 = arith.constant 0 : index
    %1123 = vector.load %arg2[%c0_565, %c14_566, %c0_567] : memref<1x18x64xf32, #tpu.memory_space<vmem>>, vector<1x1x64xf32>
    %1124 = vector.shape_cast %1123 : vector<1x1x64xf32> to vector<1x64xf32>
    %c0_568 = arith.constant 0 : index
    %c15_569 = arith.constant 15 : index
    %c0_570 = arith.constant 0 : index
    %1125 = vector.load %arg2[%c0_568, %c15_569, %c0_570] : memref<1x18x64xf32, #tpu.memory_space<vmem>>, vector<1x1x64xf32>
    %1126 = vector.shape_cast %1125 : vector<1x1x64xf32> to vector<1x64xf32>
    %1127 = math.floor %1124 : vector<1x64xf32>
    %1128 = arith.subf %1124, %1127 : vector<1x64xf32>
    %1129 = arith.fptosi %1127 : vector<1x64xf32> to vector<1x64xi32>
    %1130 = math.floor %1126 : vector<1x64xf32>
    %1131 = arith.subf %1126, %1130 : vector<1x64xf32>
    %1132 = arith.fptosi %1130 : vector<1x64xf32> to vector<1x64xi32>
    %cst_571 = arith.constant 0.000000e+00 : f32
    %1133 = vector.broadcast %cst_571 : f32 to vector<1x64xf32>
    %c-1_i32_572 = arith.constant -1 : i32
    %1134 = vector.broadcast %c-1_i32_572 : i32 to vector<1x64xi32>
    %1135 = arith.cmpi eq, %1129, %1134 : vector<1x64xi32>
    %cst_573 = arith.constant 1.000000e+00 : f32
    %1136 = vector.broadcast %cst_573 : f32 to vector<1x64xf32>
    %1137 = arith.subf %1136, %1128 : vector<1x64xf32>
    %1138 = arith.select %1135, %1137, %1133 : vector<1x64xi1>, vector<1x64xf32>
    %c-2_i32_574 = arith.constant -2 : i32
    %1139 = vector.broadcast %c-2_i32_574 : i32 to vector<1x64xi32>
    %1140 = arith.cmpi eq, %1129, %1139 : vector<1x64xi32>
    %1141 = arith.select %1140, %1128, %1133 : vector<1x64xi1>, vector<1x64xf32>
    %1142 = arith.addf %1138, %1141 : vector<1x64xf32>
    %c-1_i32_575 = arith.constant -1 : i32
    %1143 = vector.broadcast %c-1_i32_575 : i32 to vector<1x64xi32>
    %1144 = arith.cmpi eq, %1132, %1143 : vector<1x64xi32>
    %cst_576 = arith.constant 1.000000e+00 : f32
    %1145 = vector.broadcast %cst_576 : f32 to vector<1x64xf32>
    %1146 = arith.subf %1145, %1131 : vector<1x64xf32>
    %1147 = arith.select %1144, %1146, %1133 : vector<1x64xi1>, vector<1x64xf32>
    %c-2_i32_577 = arith.constant -2 : i32
    %1148 = vector.broadcast %c-2_i32_577 : i32 to vector<1x64xi32>
    %1149 = arith.cmpi eq, %1132, %1148 : vector<1x64xi32>
    %1150 = arith.select %1149, %1131, %1133 : vector<1x64xi1>, vector<1x64xf32>
    %1151 = arith.addf %1147, %1150 : vector<1x64xf32>
    %c0_i32_578 = arith.constant 0 : i32
    %1152 = vector.broadcast %c0_i32_578 : i32 to vector<1x64xi32>
    %1153 = arith.cmpi eq, %1129, %1152 : vector<1x64xi32>
    %cst_579 = arith.constant 1.000000e+00 : f32
    %1154 = vector.broadcast %cst_579 : f32 to vector<1x64xf32>
    %1155 = arith.subf %1154, %1128 : vector<1x64xf32>
    %1156 = arith.select %1153, %1155, %1133 : vector<1x64xi1>, vector<1x64xf32>
    %c-1_i32_580 = arith.constant -1 : i32
    %1157 = vector.broadcast %c-1_i32_580 : i32 to vector<1x64xi32>
    %1158 = arith.cmpi eq, %1129, %1157 : vector<1x64xi32>
    %1159 = arith.select %1158, %1128, %1133 : vector<1x64xi1>, vector<1x64xf32>
    %1160 = arith.addf %1156, %1159 : vector<1x64xf32>
    %1161 = arith.mulf %1160, %224 : vector<1x64xf32>
    %c0_i32_581 = arith.constant 0 : i32
    %1162 = vector.broadcast %c0_i32_581 : i32 to vector<1x64xi32>
    %1163 = arith.cmpi eq, %1132, %1162 : vector<1x64xi32>
    %cst_582 = arith.constant 1.000000e+00 : f32
    %1164 = vector.broadcast %cst_582 : f32 to vector<1x64xf32>
    %1165 = arith.subf %1164, %1131 : vector<1x64xf32>
    %1166 = arith.select %1163, %1165, %1133 : vector<1x64xi1>, vector<1x64xf32>
    %c-1_i32_583 = arith.constant -1 : i32
    %1167 = vector.broadcast %c-1_i32_583 : i32 to vector<1x64xi32>
    %1168 = arith.cmpi eq, %1132, %1167 : vector<1x64xi32>
    %1169 = arith.select %1168, %1131, %1133 : vector<1x64xi1>, vector<1x64xf32>
    %1170 = arith.addf %1166, %1169 : vector<1x64xf32>
    %c1_i32_584 = arith.constant 1 : i32
    %1171 = vector.broadcast %c1_i32_584 : i32 to vector<1x64xi32>
    %1172 = arith.cmpi eq, %1129, %1171 : vector<1x64xi32>
    %cst_585 = arith.constant 1.000000e+00 : f32
    %1173 = vector.broadcast %cst_585 : f32 to vector<1x64xf32>
    %1174 = arith.subf %1173, %1128 : vector<1x64xf32>
    %1175 = arith.select %1172, %1174, %1133 : vector<1x64xi1>, vector<1x64xf32>
    %c0_i32_586 = arith.constant 0 : i32
    %1176 = vector.broadcast %c0_i32_586 : i32 to vector<1x64xi32>
    %1177 = arith.cmpi eq, %1129, %1176 : vector<1x64xi32>
    %1178 = arith.select %1177, %1128, %1133 : vector<1x64xi1>, vector<1x64xf32>
    %1179 = arith.addf %1175, %1178 : vector<1x64xf32>
    %1180 = arith.mulf %1179, %233 : vector<1x64xf32>
    %c1_i32_587 = arith.constant 1 : i32
    %1181 = vector.broadcast %c1_i32_587 : i32 to vector<1x64xi32>
    %1182 = arith.cmpi eq, %1132, %1181 : vector<1x64xi32>
    %cst_588 = arith.constant 1.000000e+00 : f32
    %1183 = vector.broadcast %cst_588 : f32 to vector<1x64xf32>
    %1184 = arith.subf %1183, %1131 : vector<1x64xf32>
    %1185 = arith.select %1182, %1184, %1133 : vector<1x64xi1>, vector<1x64xf32>
    %c0_i32_589 = arith.constant 0 : i32
    %1186 = vector.broadcast %c0_i32_589 : i32 to vector<1x64xi32>
    %1187 = arith.cmpi eq, %1132, %1186 : vector<1x64xi32>
    %1188 = arith.select %1187, %1131, %1133 : vector<1x64xi1>, vector<1x64xf32>
    %1189 = arith.addf %1185, %1188 : vector<1x64xf32>
    %cst_590 = arith.constant 0.000000e+00 : f32
    %1190 = vector.broadcast %cst_590 : f32 to vector<8x64xf32>
    %1191 = arith.mulf %1151, %1142 : vector<1x64xf32>
    %c7_591 = arith.constant 7 : index
    %c0_592 = arith.constant 0 : index
    %c0_593 = arith.constant 0 : index
    %1192 = vector.load %arg8[%c7_591, %c0_592, %c0_593] : memref<25x8x64xf32, #tpu.memory_space<vmem>>, vector<1x8x64xf32>
    %1193 = vector.shape_cast %1192 : vector<1x8x64xf32> to vector<8x64xf32>
    %1194 = vector.broadcast %1191 : vector<1x64xf32> to vector<8x64xf32>
    %1195 = arith.mulf %1194, %1193 : vector<8x64xf32>
    %1196 = arith.addf %1190, %1195 : vector<8x64xf32>
    %1197 = arith.mulf %1151, %1161 : vector<1x64xf32>
    %c8_594 = arith.constant 8 : index
    %c0_595 = arith.constant 0 : index
    %c0_596 = arith.constant 0 : index
    %1198 = vector.load %arg8[%c8_594, %c0_595, %c0_596] : memref<25x8x64xf32, #tpu.memory_space<vmem>>, vector<1x8x64xf32>
    %1199 = vector.shape_cast %1198 : vector<1x8x64xf32> to vector<8x64xf32>
    %1200 = vector.broadcast %1197 : vector<1x64xf32> to vector<8x64xf32>
    %1201 = arith.mulf %1200, %1199 : vector<8x64xf32>
    %1202 = arith.addf %1196, %1201 : vector<8x64xf32>
    %1203 = arith.mulf %1151, %1180 : vector<1x64xf32>
    %c9_597 = arith.constant 9 : index
    %c0_598 = arith.constant 0 : index
    %c0_599 = arith.constant 0 : index
    %1204 = vector.load %arg8[%c9_597, %c0_598, %c0_599] : memref<25x8x64xf32, #tpu.memory_space<vmem>>, vector<1x8x64xf32>
    %1205 = vector.shape_cast %1204 : vector<1x8x64xf32> to vector<8x64xf32>
    %1206 = vector.broadcast %1203 : vector<1x64xf32> to vector<8x64xf32>
    %1207 = arith.mulf %1206, %1205 : vector<8x64xf32>
    %1208 = arith.addf %1202, %1207 : vector<8x64xf32>
    %1209 = arith.mulf %1170, %1142 : vector<1x64xf32>
    %c12_600 = arith.constant 12 : index
    %c0_601 = arith.constant 0 : index
    %c0_602 = arith.constant 0 : index
    %1210 = vector.load %arg8[%c12_600, %c0_601, %c0_602] : memref<25x8x64xf32, #tpu.memory_space<vmem>>, vector<1x8x64xf32>
    %1211 = vector.shape_cast %1210 : vector<1x8x64xf32> to vector<8x64xf32>
    %1212 = vector.broadcast %1209 : vector<1x64xf32> to vector<8x64xf32>
    %1213 = arith.mulf %1212, %1211 : vector<8x64xf32>
    %1214 = arith.addf %1208, %1213 : vector<8x64xf32>
    %1215 = arith.mulf %1170, %1161 : vector<1x64xf32>
    %c13_603 = arith.constant 13 : index
    %c0_604 = arith.constant 0 : index
    %c0_605 = arith.constant 0 : index
    %1216 = vector.load %arg8[%c13_603, %c0_604, %c0_605] : memref<25x8x64xf32, #tpu.memory_space<vmem>>, vector<1x8x64xf32>
    %1217 = vector.shape_cast %1216 : vector<1x8x64xf32> to vector<8x64xf32>
    %1218 = vector.broadcast %1215 : vector<1x64xf32> to vector<8x64xf32>
    %1219 = arith.mulf %1218, %1217 : vector<8x64xf32>
    %1220 = arith.addf %1214, %1219 : vector<8x64xf32>
    %1221 = arith.mulf %1170, %1180 : vector<1x64xf32>
    %c14_606 = arith.constant 14 : index
    %c0_607 = arith.constant 0 : index
    %c0_608 = arith.constant 0 : index
    %1222 = vector.load %arg8[%c14_606, %c0_607, %c0_608] : memref<25x8x64xf32, #tpu.memory_space<vmem>>, vector<1x8x64xf32>
    %1223 = vector.shape_cast %1222 : vector<1x8x64xf32> to vector<8x64xf32>
    %1224 = vector.broadcast %1221 : vector<1x64xf32> to vector<8x64xf32>
    %1225 = arith.mulf %1224, %1223 : vector<8x64xf32>
    %1226 = arith.addf %1220, %1225 : vector<8x64xf32>
    %1227 = arith.mulf %1189, %1142 : vector<1x64xf32>
    %c17_609 = arith.constant 17 : index
    %c0_610 = arith.constant 0 : index
    %c0_611 = arith.constant 0 : index
    %1228 = vector.load %arg8[%c17_609, %c0_610, %c0_611] : memref<25x8x64xf32, #tpu.memory_space<vmem>>, vector<1x8x64xf32>
    %1229 = vector.shape_cast %1228 : vector<1x8x64xf32> to vector<8x64xf32>
    %1230 = vector.broadcast %1227 : vector<1x64xf32> to vector<8x64xf32>
    %1231 = arith.mulf %1230, %1229 : vector<8x64xf32>
    %1232 = arith.addf %1226, %1231 : vector<8x64xf32>
    %1233 = arith.mulf %1189, %1161 : vector<1x64xf32>
    %c18_612 = arith.constant 18 : index
    %c0_613 = arith.constant 0 : index
    %c0_614 = arith.constant 0 : index
    %1234 = vector.load %arg8[%c18_612, %c0_613, %c0_614] : memref<25x8x64xf32, #tpu.memory_space<vmem>>, vector<1x8x64xf32>
    %1235 = vector.shape_cast %1234 : vector<1x8x64xf32> to vector<8x64xf32>
    %1236 = vector.broadcast %1233 : vector<1x64xf32> to vector<8x64xf32>
    %1237 = arith.mulf %1236, %1235 : vector<8x64xf32>
    %1238 = arith.addf %1232, %1237 : vector<8x64xf32>
    %1239 = arith.mulf %1189, %1180 : vector<1x64xf32>
    %c19_615 = arith.constant 19 : index
    %c0_616 = arith.constant 0 : index
    %c0_617 = arith.constant 0 : index
    %1240 = vector.load %arg8[%c19_615, %c0_616, %c0_617] : memref<25x8x64xf32, #tpu.memory_space<vmem>>, vector<1x8x64xf32>
    %1241 = vector.shape_cast %1240 : vector<1x8x64xf32> to vector<8x64xf32>
    %1242 = vector.broadcast %1239 : vector<1x64xf32> to vector<8x64xf32>
    %1243 = arith.mulf %1242, %1241 : vector<8x64xf32>
    %1244 = arith.addf %1238, %1243 : vector<8x64xf32>
    %cst_618 = arith.constant 5.000000e-01 : f32
    %1245 = vector.broadcast %cst_618 : f32 to vector<8x64xf32>
    %1246 = arith.mulf %1245, %1244 : vector<8x64xf32>
    %c0_619 = arith.constant 0 : index
    %c0_620 = arith.constant 0 : index
    %c7_621 = arith.constant 7 : index
    %c0_622 = arith.constant 0 : index
    %1247 = vector.load %arg6[%c0_619, %c0_620, %c7_621, %c0_622] : memref<1x8x9x64xf32, #tpu.memory_space<vmem>>, vector<1x8x1x64xf32>
    %1248 = vector.shape_cast %1247 : vector<1x8x1x64xf32> to vector<8x64xf32>
    %1249 = vector.shape_cast %1246 : vector<8x64xf32> to vector<1x8x1x64xf32>
    tpu.vector_store %arg6[%c0_619, %c0_620, %c7_621, %c0_622], %1249 {strides = array<i32>} : memref<1x8x9x64xf32, #tpu.memory_space<vmem>>, vector<1x8x1x64xf32>,
    %c0_623 = arith.constant 0 : index
    %c16_624 = arith.constant 16 : index
    %c0_625 = arith.constant 0 : index
    %1250 = vector.load %arg2[%c0_623, %c16_624, %c0_625] : memref<1x18x64xf32, #tpu.memory_space<vmem>>, vector<1x1x64xf32>
    %1251 = vector.shape_cast %1250 : vector<1x1x64xf32> to vector<1x64xf32>
    %c0_626 = arith.constant 0 : index
    %c17_627 = arith.constant 17 : index
    %c0_628 = arith.constant 0 : index
    %1252 = vector.load %arg2[%c0_626, %c17_627, %c0_628] : memref<1x18x64xf32, #tpu.memory_space<vmem>>, vector<1x1x64xf32>
    %1253 = vector.shape_cast %1252 : vector<1x1x64xf32> to vector<1x64xf32>
    %1254 = math.floor %1251 : vector<1x64xf32>
    %1255 = arith.subf %1251, %1254 : vector<1x64xf32>
    %1256 = arith.fptosi %1254 : vector<1x64xf32> to vector<1x64xi32>
    %1257 = math.floor %1253 : vector<1x64xf32>
    %1258 = arith.subf %1253, %1257 : vector<1x64xf32>
    %1259 = arith.fptosi %1257 : vector<1x64xf32> to vector<1x64xi32>
    %cst_629 = arith.constant 0.000000e+00 : f32
    %1260 = vector.broadcast %cst_629 : f32 to vector<1x64xf32>
    %c-1_i32_630 = arith.constant -1 : i32
    %1261 = vector.broadcast %c-1_i32_630 : i32 to vector<1x64xi32>
    %1262 = arith.cmpi eq, %1256, %1261 : vector<1x64xi32>
    %cst_631 = arith.constant 1.000000e+00 : f32
    %1263 = vector.broadcast %cst_631 : f32 to vector<1x64xf32>
    %1264 = arith.subf %1263, %1255 : vector<1x64xf32>
    %1265 = arith.select %1262, %1264, %1260 : vector<1x64xi1>, vector<1x64xf32>
    %c-2_i32_632 = arith.constant -2 : i32
    %1266 = vector.broadcast %c-2_i32_632 : i32 to vector<1x64xi32>
    %1267 = arith.cmpi eq, %1256, %1266 : vector<1x64xi32>
    %1268 = arith.select %1267, %1255, %1260 : vector<1x64xi1>, vector<1x64xf32>
    %1269 = arith.addf %1265, %1268 : vector<1x64xf32>
    %c-1_i32_633 = arith.constant -1 : i32
    %1270 = vector.broadcast %c-1_i32_633 : i32 to vector<1x64xi32>
    %1271 = arith.cmpi eq, %1259, %1270 : vector<1x64xi32>
    %cst_634 = arith.constant 1.000000e+00 : f32
    %1272 = vector.broadcast %cst_634 : f32 to vector<1x64xf32>
    %1273 = arith.subf %1272, %1258 : vector<1x64xf32>
    %1274 = arith.select %1271, %1273, %1260 : vector<1x64xi1>, vector<1x64xf32>
    %c-2_i32_635 = arith.constant -2 : i32
    %1275 = vector.broadcast %c-2_i32_635 : i32 to vector<1x64xi32>
    %1276 = arith.cmpi eq, %1259, %1275 : vector<1x64xi32>
    %1277 = arith.select %1276, %1258, %1260 : vector<1x64xi1>, vector<1x64xf32>
    %1278 = arith.addf %1274, %1277 : vector<1x64xf32>
    %c0_i32_636 = arith.constant 0 : i32
    %1279 = vector.broadcast %c0_i32_636 : i32 to vector<1x64xi32>
    %1280 = arith.cmpi eq, %1256, %1279 : vector<1x64xi32>
    %cst_637 = arith.constant 1.000000e+00 : f32
    %1281 = vector.broadcast %cst_637 : f32 to vector<1x64xf32>
    %1282 = arith.subf %1281, %1255 : vector<1x64xf32>
    %1283 = arith.select %1280, %1282, %1260 : vector<1x64xi1>, vector<1x64xf32>
    %c-1_i32_638 = arith.constant -1 : i32
    %1284 = vector.broadcast %c-1_i32_638 : i32 to vector<1x64xi32>
    %1285 = arith.cmpi eq, %1256, %1284 : vector<1x64xi32>
    %1286 = arith.select %1285, %1255, %1260 : vector<1x64xi1>, vector<1x64xf32>
    %1287 = arith.addf %1283, %1286 : vector<1x64xf32>
    %1288 = arith.mulf %1287, %224 : vector<1x64xf32>
    %c0_i32_639 = arith.constant 0 : i32
    %1289 = vector.broadcast %c0_i32_639 : i32 to vector<1x64xi32>
    %1290 = arith.cmpi eq, %1259, %1289 : vector<1x64xi32>
    %cst_640 = arith.constant 1.000000e+00 : f32
    %1291 = vector.broadcast %cst_640 : f32 to vector<1x64xf32>
    %1292 = arith.subf %1291, %1258 : vector<1x64xf32>
    %1293 = arith.select %1290, %1292, %1260 : vector<1x64xi1>, vector<1x64xf32>
    %c-1_i32_641 = arith.constant -1 : i32
    %1294 = vector.broadcast %c-1_i32_641 : i32 to vector<1x64xi32>
    %1295 = arith.cmpi eq, %1259, %1294 : vector<1x64xi32>
    %1296 = arith.select %1295, %1258, %1260 : vector<1x64xi1>, vector<1x64xf32>
    %1297 = arith.addf %1293, %1296 : vector<1x64xf32>
    %c1_i32_642 = arith.constant 1 : i32
    %1298 = vector.broadcast %c1_i32_642 : i32 to vector<1x64xi32>
    %1299 = arith.cmpi eq, %1256, %1298 : vector<1x64xi32>
    %cst_643 = arith.constant 1.000000e+00 : f32
    %1300 = vector.broadcast %cst_643 : f32 to vector<1x64xf32>
    %1301 = arith.subf %1300, %1255 : vector<1x64xf32>
    %1302 = arith.select %1299, %1301, %1260 : vector<1x64xi1>, vector<1x64xf32>
    %c0_i32_644 = arith.constant 0 : i32
    %1303 = vector.broadcast %c0_i32_644 : i32 to vector<1x64xi32>
    %1304 = arith.cmpi eq, %1256, %1303 : vector<1x64xi32>
    %1305 = arith.select %1304, %1255, %1260 : vector<1x64xi1>, vector<1x64xf32>
    %1306 = arith.addf %1302, %1305 : vector<1x64xf32>
    %1307 = arith.mulf %1306, %233 : vector<1x64xf32>
    %c1_i32_645 = arith.constant 1 : i32
    %1308 = vector.broadcast %c1_i32_645 : i32 to vector<1x64xi32>
    %1309 = arith.cmpi eq, %1259, %1308 : vector<1x64xi32>
    %cst_646 = arith.constant 1.000000e+00 : f32
    %1310 = vector.broadcast %cst_646 : f32 to vector<1x64xf32>
    %1311 = arith.subf %1310, %1258 : vector<1x64xf32>
    %1312 = arith.select %1309, %1311, %1260 : vector<1x64xi1>, vector<1x64xf32>
    %c0_i32_647 = arith.constant 0 : i32
    %1313 = vector.broadcast %c0_i32_647 : i32 to vector<1x64xi32>
    %1314 = arith.cmpi eq, %1259, %1313 : vector<1x64xi32>
    %1315 = arith.select %1314, %1258, %1260 : vector<1x64xi1>, vector<1x64xf32>
    %1316 = arith.addf %1312, %1315 : vector<1x64xf32>
    %cst_648 = arith.constant 0.000000e+00 : f32
    %1317 = vector.broadcast %cst_648 : f32 to vector<8x64xf32>
    %1318 = arith.mulf %1278, %1269 : vector<1x64xf32>
    %c12_649 = arith.constant 12 : index
    %c0_650 = arith.constant 0 : index
    %c0_651 = arith.constant 0 : index
    %1319 = vector.load %arg8[%c12_649, %c0_650, %c0_651] : memref<25x8x64xf32, #tpu.memory_space<vmem>>, vector<1x8x64xf32>
    %1320 = vector.shape_cast %1319 : vector<1x8x64xf32> to vector<8x64xf32>
    %1321 = vector.broadcast %1318 : vector<1x64xf32> to vector<8x64xf32>
    %1322 = arith.mulf %1321, %1320 : vector<8x64xf32>
    %1323 = arith.addf %1317, %1322 : vector<8x64xf32>
    %1324 = arith.mulf %1278, %1288 : vector<1x64xf32>
    %c13_652 = arith.constant 13 : index
    %c0_653 = arith.constant 0 : index
    %c0_654 = arith.constant 0 : index
    %1325 = vector.load %arg8[%c13_652, %c0_653, %c0_654] : memref<25x8x64xf32, #tpu.memory_space<vmem>>, vector<1x8x64xf32>
    %1326 = vector.shape_cast %1325 : vector<1x8x64xf32> to vector<8x64xf32>
    %1327 = vector.broadcast %1324 : vector<1x64xf32> to vector<8x64xf32>
    %1328 = arith.mulf %1327, %1326 : vector<8x64xf32>
    %1329 = arith.addf %1323, %1328 : vector<8x64xf32>
    %1330 = arith.mulf %1278, %1307 : vector<1x64xf32>
    %c14_655 = arith.constant 14 : index
    %c0_656 = arith.constant 0 : index
    %c0_657 = arith.constant 0 : index
    %1331 = vector.load %arg8[%c14_655, %c0_656, %c0_657] : memref<25x8x64xf32, #tpu.memory_space<vmem>>, vector<1x8x64xf32>
    %1332 = vector.shape_cast %1331 : vector<1x8x64xf32> to vector<8x64xf32>
    %1333 = vector.broadcast %1330 : vector<1x64xf32> to vector<8x64xf32>
    %1334 = arith.mulf %1333, %1332 : vector<8x64xf32>
    %1335 = arith.addf %1329, %1334 : vector<8x64xf32>
    %1336 = arith.mulf %1297, %1269 : vector<1x64xf32>
    %c17_658 = arith.constant 17 : index
    %c0_659 = arith.constant 0 : index
    %c0_660 = arith.constant 0 : index
    %1337 = vector.load %arg8[%c17_658, %c0_659, %c0_660] : memref<25x8x64xf32, #tpu.memory_space<vmem>>, vector<1x8x64xf32>
    %1338 = vector.shape_cast %1337 : vector<1x8x64xf32> to vector<8x64xf32>
    %1339 = vector.broadcast %1336 : vector<1x64xf32> to vector<8x64xf32>
    %1340 = arith.mulf %1339, %1338 : vector<8x64xf32>
    %1341 = arith.addf %1335, %1340 : vector<8x64xf32>
    %1342 = arith.mulf %1297, %1288 : vector<1x64xf32>
    %c18_661 = arith.constant 18 : index
    %c0_662 = arith.constant 0 : index
    %c0_663 = arith.constant 0 : index
    %1343 = vector.load %arg8[%c18_661, %c0_662, %c0_663] : memref<25x8x64xf32, #tpu.memory_space<vmem>>, vector<1x8x64xf32>
    %1344 = vector.shape_cast %1343 : vector<1x8x64xf32> to vector<8x64xf32>
    %1345 = vector.broadcast %1342 : vector<1x64xf32> to vector<8x64xf32>
    %1346 = arith.mulf %1345, %1344 : vector<8x64xf32>
    %1347 = arith.addf %1341, %1346 : vector<8x64xf32>
    %1348 = arith.mulf %1297, %1307 : vector<1x64xf32>
    %c19_664 = arith.constant 19 : index
    %c0_665 = arith.constant 0 : index
    %c0_666 = arith.constant 0 : index
    %1349 = vector.load %arg8[%c19_664, %c0_665, %c0_666] : memref<25x8x64xf32, #tpu.memory_space<vmem>>, vector<1x8x64xf32>
    %1350 = vector.shape_cast %1349 : vector<1x8x64xf32> to vector<8x64xf32>
    %1351 = vector.broadcast %1348 : vector<1x64xf32> to vector<8x64xf32>
    %1352 = arith.mulf %1351, %1350 : vector<8x64xf32>
    %1353 = arith.addf %1347, %1352 : vector<8x64xf32>
    %1354 = arith.mulf %1316, %1269 : vector<1x64xf32>
    %c22_667 = arith.constant 22 : index
    %c0_668 = arith.constant 0 : index
    %c0_669 = arith.constant 0 : index
    %1355 = vector.load %arg8[%c22_667, %c0_668, %c0_669] : memref<25x8x64xf32, #tpu.memory_space<vmem>>, vector<1x8x64xf32>
    %1356 = vector.shape_cast %1355 : vector<1x8x64xf32> to vector<8x64xf32>
    %1357 = vector.broadcast %1354 : vector<1x64xf32> to vector<8x64xf32>
    %1358 = arith.mulf %1357, %1356 : vector<8x64xf32>
    %1359 = arith.addf %1353, %1358 : vector<8x64xf32>
    %1360 = arith.mulf %1316, %1288 : vector<1x64xf32>
    %c23_670 = arith.constant 23 : index
    %c0_671 = arith.constant 0 : index
    %c0_672 = arith.constant 0 : index
    %1361 = vector.load %arg8[%c23_670, %c0_671, %c0_672] : memref<25x8x64xf32, #tpu.memory_space<vmem>>, vector<1x8x64xf32>
    %1362 = vector.shape_cast %1361 : vector<1x8x64xf32> to vector<8x64xf32>
    %1363 = vector.broadcast %1360 : vector<1x64xf32> to vector<8x64xf32>
    %1364 = arith.mulf %1363, %1362 : vector<8x64xf32>
    %1365 = arith.addf %1359, %1364 : vector<8x64xf32>
    %1366 = arith.mulf %1316, %1307 : vector<1x64xf32>
    %c24_673 = arith.constant 24 : index
    %c0_674 = arith.constant 0 : index
    %c0_675 = arith.constant 0 : index
    %1367 = vector.load %arg8[%c24_673, %c0_674, %c0_675] : memref<25x8x64xf32, #tpu.memory_space<vmem>>, vector<1x8x64xf32>
    %1368 = vector.shape_cast %1367 : vector<1x8x64xf32> to vector<8x64xf32>
    %1369 = vector.broadcast %1366 : vector<1x64xf32> to vector<8x64xf32>
    %1370 = arith.mulf %1369, %1368 : vector<8x64xf32>
    %1371 = arith.addf %1365, %1370 : vector<8x64xf32>
    %cst_676 = arith.constant 5.000000e-01 : f32
    %1372 = vector.broadcast %cst_676 : f32 to vector<8x64xf32>
    %1373 = arith.mulf %1372, %1371 : vector<8x64xf32>
    %c0_677 = arith.constant 0 : index
    %c0_678 = arith.constant 0 : index
    %c8_679 = arith.constant 8 : index
    %c0_680 = arith.constant 0 : index
    %1374 = vector.load %arg6[%c0_677, %c0_678, %c8_679, %c0_680] : memref<1x8x9x64xf32, #tpu.memory_space<vmem>>, vector<1x8x1x64xf32>
    %1375 = vector.shape_cast %1374 : vector<1x8x1x64xf32> to vector<8x64xf32>
    %1376 = vector.shape_cast %1373 : vector<8x64xf32> to vector<1x8x1x64xf32>
    tpu.vector_store %arg6[%c0_677, %c0_678, %c8_679, %c0_680], %1376 {strides = array<i32>} : memref<1x8x9x64xf32, #tpu.memory_space<vmem>>, vector<1x8x1x64xf32>,
    return
  }
  func.func @transform_0(%arg0: i32, %arg1: i32) -> (i32, i32, i32) {
    %c0_i32 = arith.constant 0 : i32
    %c0_i32_0 = arith.constant 0 : i32
    return %arg0, %c0_i32, %arg1 : i32, i32, i32
  }
  func.func @transform_1(%arg0: i32, %arg1: i32) -> (i32, i32, i32) {
    %c0_i32 = arith.constant 0 : i32
    %c0_i32_0 = arith.constant 0 : i32
    return %arg0, %c0_i32, %arg1 : i32, i32, i32
  }
  func.func @transform_2(%arg0: i32, %arg1: i32) -> (i32, i32, i32) {
    %c0_i32 = arith.constant 0 : i32
    %c0_i32_0 = arith.constant 0 : i32
    %c0_i32_1 = arith.constant 0 : i32
    return %arg0, %c0_i32, %c0_i32_0 : i32, i32, i32
  }
  func.func @transform_3(%arg0: i32, %arg1: i32) -> (i32, i32) {
    %c0_i32 = arith.constant 0 : i32
    %c0_i32_0 = arith.constant 0 : i32
    %c0_i32_1 = arith.constant 0 : i32
    return %c0_i32, %c0_i32_0 : i32, i32
  }
  func.func @transform_4(%arg0: i32, %arg1: i32) -> (i32, i32, i32, i32) {
    %c0_i32 = arith.constant 0 : i32
    %c0_i32_0 = arith.constant 0 : i32
    %c0_i32_1 = arith.constant 0 : i32
    return %arg0, %c0_i32, %c0_i32_0, %arg1 : i32, i32, i32, i32
  }
}

</mosaic_0001>

<bundles_post_ra>
// kernel: tpu_custom_call.1
= control target key start
LH: loop header
LB: loop body
LE: loop exit
PB: predicated region body
PF: predicated region fallthrough
CT: control target
= control target key end

     0   :  { %s2604_s15 = smov 0   ;;  %s2606_s16 = smov 0   ;;  %s4021_s0 = inlined_call_operand.vmem [shape: f32[2,18,64], index: 0, kind: input, shape index: {}]   ;;  %s4022_s1 = inlined_call_operand.vmem [shape: bf16[2,16,64], index: 1, kind: input, shape index: {}]   ;;  %s4023_s2 = inlined_call_operand.vmem [shape: bf16[2,16,64], index: 2, kind: input, shape index: {}]   ;;  %s4024_s3 = inlined_call_operand.vmem [shape: bf16[8,16], index: 3, kind: input, shape index: {}]   ;;  %s4025_s4 = inlined_call_operand.vmem [shape: f32[2,8,9,64], index: 4, kind: output, shape index: {}]  }
   0x1   :  { %s2608_s17 = smov 0  }
   0x2 LB: > { %s26_s18 = sadd.s32 1, %s2546_s16  ;;  %p2174_p0 = scmp.ge.s32.totalorder %s2550_s17, 1  ;;  %s2550_s17 = sphi %s2608_s17, %s14_s17   ;;  %s2546_s16 = sphi %s2606_s16, %s4172_s16   ;;  %s2542_s15 = sphi %s2604_s15, %s4171_s15  }
   0x3   : > { %p28_p1 = scmp.ge.s32.totalorder %s26_s18, 2  ;;  %p206_p2 = scmp.lt.s32.totalorder %s2550_s17, 3 }
   0x5   : > { %s4174_s18 = smov (%p28_p1, %s26_s18), 0  ;;  %p207_p3 = pnand %p2174_p0, %p206_p2 }
   0x7   : > { %210 = sbr.rel (%p207_p3) target bundleno = 566 (0x236), region = 36 }
   0xc   : > { %p251_p4 = scmp.lt.s32.totalorder %s2542_s15, 1  ;;  %s2552_s23 = smov 18   ;;  %vm295_vm0 = vcmask 666768   ;;  %vm298_vm1 = vcmask 142336   ;;  %vm301_vm2 = vcmask 814736   ;;  %v2553_v3 = vmov 0  }
   0xd   : > { %s2554_s24 = smov 126   ;;  %s2555_s25 = smov 119   ;;  %v2644_v15 = vld [vmem:[%s4024_s3] sm:$0xf]  ;;  %vm316_vm3 = vcmask 130048   ;;  %vm333_vm4 = vcmask 523264  }
   0xe   : > { %s4176_s15 = smov (!%p251_p4, %s2542_s15), 1  ;;  %s2556_s26 = smov 127  }
   0xf   : > { %s2213_s19 = sshll.u32 %s4176_s15, 3  ;;  %s2557_s27 = smov 125  }
  0x10   : > { %s271_s22 = scalar_lea.vmem %s4023_s2, %s2213_s19  ;;  %s2558_s28 = smov 117  }
  0x11   : > { %v285_v0 = vld [vmem:[%s271_s22] sm:$0xf]  ;;  %v286_v1 = vld [vmem:[%s271_s22 + $0x4] sm:$0xf]  ;;  %s2559_s29 = smov 124   ;;  %s2560_s30 = smov 118  }
  0x12   : > { %289 = vrot.lane.b32.xlu0 %v285_v0, %s2552_s23  ;;  %s2561_s5 = smov 116   ;;  %s2562_s6 = smov 120  }
  0x13   : > { %s2563_s7 = smov 112   ;;  %s2564_s8 = smov 104  }
  0x14   : > { %s2565_s9 = smov 111   ;;  %s2566_s10 = smov 110  }
  0x15   : > { %s2567_s11 = smov 101   ;;  %s2568_s12 = smov 108  }
  0x16   : > { %s2569_s13 = smov 109   ;;  %s2570_s14 = smov 96  }
  0x17   : > { %s2571_s20 = smov 103   ;;  %s2572_s21 = smov 100  }
  0x18   : > { %s2573_s22 = smov 95  }
  0x1a   : > { %291 = vrot.lane.b32.xlu0 %v286_v1, %s2552_s23  ;;  %s2574_s23 = smov 102  }
  0x84   : > { %v290_v2 = vpop.permute.xlu0 %289 }
  0x85   : > { %296 = vst.msk [vmem:[#allocation2] sm:$0xf] %vm295_vm0, %v290_v2 }
  0x86   : > { %299 = vst.msk [vmem:[#allocation2] sm:$0xf] %vm298_vm1, %v2553_v3 }
  0x87   : > { %302 = vst.msk [vmem:[#allocation2] sm:$0xf] %vm301_vm2, %v2553_v3 }
  0x8c   : > { %v292_v4 = vpop.permute.xlu0 %291 }
  0x8d   : > { %297 = vst.msk [vmem:[#allocation2 + $0x4] sm:$0xf] %vm295_vm0, %v292_v4 }
  0x8e   : > { %300 = vst.msk [vmem:[#allocation2 + $0x4] sm:$0xf] %vm298_vm1, %v2553_v3 }
  0x8f   : > { %303 = vst.msk [vmem:[#allocation2 + $0x4] sm:$0xf] %vm301_vm2, %v2553_v3 }
  0x96   : > { %v2229_v5 = vld [vmem:[#allocation2] sm:$0xff]  }
  0x97   : > { %v2230_v6 = vunpack.c.l.bf16 %v2229_v5  ;;  %v2231_v7 = vunpack.c.h.bf16 %v2229_v5 }
  0x99   : > { %v2408_v8 = vpack.i.bf16 %v2231_v7, %v2230_v6 }
  0x9b   : > { %2409 = vrot.lane.b32.xlu1 %v2408_v8, %s2554_s24  ;;  %2429 = vrot.lane.b32.xlu0 %v2408_v8, %s2555_s25 }
  0x9c   : > { %2419 = vrot.lane.b32.xlu2 %v2408_v8, %s2556_s26  ;;  %s266_s26 = scalar_lea.vmem %s4022_s1, %s2213_s19  ;;  %s2320_s19 = smul.u32 24, %s4176_s15 }
  0x9d   : > { %v2217_v9 = vld [vmem:[%s266_s26] sm:$0xff]  }
  0x9e   : > { %v2635_v10 = vunpack.c.l.bf16 %v2217_v9  ;;  %v2637_v11 = vunpack.c.h.bf16 %v2217_v9 }
  0xa0   : > { %v313_v12 = vmul.f32 %v2230_v6, %v2635_v10  ;;  %v314_v13 = vmul.f32 %v2231_v7, %v2637_v11 }
  0xa2   : > { %v315_v14 = vpack.c.bf16 %v314_v13, %v313_v12 }
  0xa3   : > { %2414 = vrot.lane.b32.xlu1 %v2408_v8, %s2557_s27  ;;  %2444 = vrot.lane.b32.xlu0 %v2408_v8, %s2558_s28  ;;  %s2575_s27 = smov 94   ;;  %s2576_s28 = smov 93  }
  0xa4   : > { %2424 = vrot.lane.b32.xlu2 %v2408_v8, %s2559_s29  ;;  %s2577_s29 = smov 92   ;;  %327 = vmatpush.bf16.msra.mxu0 %v315_v14 }
  0xa7   : > { %2182 = vmatmul.msk.bf16.vlgmr.msra.gmra.mxu0 %vm316_vm3, %v2644_v15 }
  0xab   : > { %2434 = vrot.lane.b32.xlu1 %v2408_v8, %s2560_s30  ;;  %2459 = vrot.lane.b32.xlu0 %v2408_v8, %s2561_s5 }
  0xac   : > { %2439 = vrot.lane.b32.xlu2 %v2408_v8, %s2562_s6 }
  0xb3   : > { %2449 = vrot.lane.b32.xlu1 %v2408_v8, %s2563_s7  ;;  %2474 = vrot.lane.b32.xlu0 %v2408_v8, %s2564_s8  ;;  %s2738_s8 = scalar_lea.vmem %s4021_s0, %s2320_s19 }
  0xb4   : > { %2454 = vrot.lane.b32.xlu2 %v2408_v8, %s2565_s9  ;;  %s2215_s9 = sshll.u32 %s4176_s15, 7 }
  0xbb   : > { %2464 = vrot.lane.b32.xlu1 %v2408_v8, %s2566_s10  ;;  %2489 = vrot.lane.b32.xlu0 %v2408_v8, %s2567_s11  ;;  %s3586_s11 = scalar_lea.vmem %s4025_s4, %s2215_s9 }
  0xbc   : > { %2469 = vrot.lane.b32.xlu2 %v2408_v8, %s2568_s12 }
  0xc3   : > { %2479 = vrot.lane.b32.xlu1 %v2408_v8, %s2569_s13  ;;  %2504 = vrot.lane.b32.xlu0 %v2408_v8, %s2570_s14 }
  0xc4   : > { %2484 = vrot.lane.b32.xlu2 %v2408_v8, %s2571_s20 }
  0xcb   : > { %2494 = vrot.lane.b32.xlu1 %v2408_v8, %s2572_s21  ;;  %2519 = vrot.lane.b32.xlu0 %v2408_v8, %s2573_s22 }
  0xcc   : > { %2499 = vrot.lane.b32.xlu2 %v2408_v8, %s2574_s23 }
  0xd3   : > { %2509 = vrot.lane.b32.xlu1 %v2408_v8, %s2575_s27 }
  0xd4   : > { %2514 = vrot.lane.b32.xlu2 %v2408_v8, %s2576_s28 }
  0xdb   : > { %2524 = vrot.lane.b32.xlu1 %v2408_v8, %s2577_s29 }
  0xf6   : > { %v2420_v16 = vpop.permute.xlu2 %2419 }
  0xf7   : > { %v2422_v17 = vunpack.i.h.bf16 %v2420_v16  ;;  %v2421_v18 = vunpack.i.l.bf16 %v2420_v16 }
  0xf9   : > { %v347_v19 = vmul.f32 %v2421_v18, %v2635_v10  ;;  %v348_v20 = vmul.f32 %v2422_v17, %v2637_v11 }
  0xfb   : > { %v349_v21 = vpack.c.bf16 %v348_v20, %v347_v19 }
  0xfd   : > { %357 = vmatpush.bf16.msra.mxu1 %v349_v21 }
  0xfe   : > { %v2425_v22 = vpop.permute.xlu2 %2424 }
  0xff   : > { %v2427_v23 = vunpack.i.h.bf16 %v2425_v22  ;;  %v2426_v24 = vunpack.i.l.bf16 %v2425_v22 }
 0x100   : > { %2183 = vmatmul.msk.bf16.vlgmr.msra.gmra.mxu1 %vm316_vm3, %v2644_v15 }
 0x101   : > { %v437_v25 = vmul.f32 %v2426_v24, %v2635_v10  ;;  %v438_v26 = vmul.f32 %v2427_v23, %v2637_v11 }
 0x103   : > { %v439_v27 = vpack.c.bf16 %v438_v26, %v437_v25 }
 0x105   : > { %447 = vmatpush.bf16.msrb.mxu0 %v439_v27 }
 0x106   : > { %v2440_v28 = vpop.permute.xlu2 %2439 }
 0x107   : > { %v2442_v29 = vunpack.i.h.bf16 %v2440_v28  ;;  %v2441_v30 = vunpack.i.l.bf16 %v2440_v28 }
 0x108   : > { %2186 = vmatmul.msk.bf16.vlgmr.msrb.gmra.mxu0 %vm316_vm3, %v2644_v15 }
 0x109   : > { %v467_v31 = vmul.f32 %v2441_v30, %v2635_v10  ;;  %v468_v32 = vmul.f32 %v2442_v29, %v2637_v11 }
 0x10b   : > { %v469_v33 = vpack.c.bf16 %v468_v32, %v467_v31 }
 0x10d   : > { %v2410_v34 = vpop.permute.xlu1 %2409  ;;  %v2430_v35 = vpop.permute.xlu0 %2429  ;;  %477 = vmatpush.bf16.msrb.mxu1 %v469_v33 }
 0x10e   : > { %v2412_v36 = vunpack.i.h.bf16 %v2410_v34  ;;  %v2411_v37 = vunpack.i.l.bf16 %v2410_v34  ;;  %v2432_v38 = vunpack.i.h.bf16 %v2430_v35  ;;  %v2431_v39 = vunpack.i.l.bf16 %v2430_v35  ;;  %v2455_v44 = vpop.permute.xlu2 %2454 }
 0x10f   : > { %v2457_v57 = vunpack.i.h.bf16 %v2455_v44  ;;  %v2456_v58 = vunpack.i.l.bf16 %v2455_v44 }
 0x110   : > { %v377_v40 = vmul.f32 %v2411_v37, %v2635_v10  ;;  %v378_v41 = vmul.f32 %v2412_v36, %v2637_v11  ;;  %2187 = vmatmul.msk.bf16.vlgmr.msrb.gmra.mxu1 %vm316_vm3, %v2644_v15  ;;  %v497_v42 = vmul.f32 %v2431_v39, %v2635_v10  ;;  %v498_v43 = vmul.f32 %v2432_v38, %v2637_v11 }
 0x111   : > { %v647_v0 = vmul.f32 %v2456_v58, %v2635_v10  ;;  %v648_v1 = vmul.f32 %v2457_v57, %v2637_v11 }
 0x112   : > { %v379_v45 = vpack.c.bf16 %v378_v41, %v377_v40  ;;  %v499_v46 = vpack.c.bf16 %v498_v43, %v497_v42 }
 0x113   : > { %v649_v12 = vpack.c.bf16 %v648_v1, %v647_v0 }
 0x114   : > { %387 = vmatpush.bf16.msra.mxu2 %v379_v45 }
 0x115   : > { %v2415_v47 = vpop.permute.xlu1 %2414  ;;  %v2445_v48 = vpop.permute.xlu0 %2444 }
 0x116   : > { %v2417_v49 = vunpack.i.h.bf16 %v2415_v47  ;;  %v2416_v50 = vunpack.i.l.bf16 %v2415_v47  ;;  %v2447_v51 = vunpack.i.h.bf16 %v2445_v48  ;;  %v2446_v52 = vunpack.i.l.bf16 %v2445_v48  ;;  %v2470_v61 = vpop.permute.xlu2 %2469 }
 0x117   : > { %2184 = vmatmul.msk.bf16.vlgmr.msra.gmra.mxu2 %vm316_vm3, %v2644_v15  ;;  %v2472_v13 = vunpack.i.h.bf16 %v2470_v61  ;;  %v2471_v14 = vunpack.i.l.bf16 %v2470_v61 }
 0x118   : > { %507 = vmatpush.bf16.msrb.mxu2 %v499_v46  ;;  %v407_v53 = vmul.f32 %v2416_v50, %v2635_v10  ;;  %v408_v54 = vmul.f32 %v2417_v49, %v2637_v11  ;;  %v557_v55 = vmul.f32 %v2446_v52, %v2635_v10  ;;  %v558_v56 = vmul.f32 %v2447_v51, %v2637_v11 }
 0x119   : > { %v737_v20 = vmul.f32 %v2471_v14, %v2635_v10  ;;  %v738_v21 = vmul.f32 %v2472_v13, %v2637_v11 }
 0x11a   : > { %v409_v59 = vpack.c.bf16 %v408_v54, %v407_v53  ;;  %v559_v60 = vpack.c.bf16 %v558_v56, %v557_v55 }
 0x11b   : > { %v739_v31 = vpack.c.bf16 %v738_v21, %v737_v20 }
 0x11c   : > { %417 = vmatpush.bf16.msra.mxu3 %v409_v59  ;;  %567 = vmatpush.bf16.msra.mxu0 %v559_v60 }
 0x11d   : > { %v2435_v62 = vpop.permute.xlu1 %2434  ;;  %v2460_v63 = vpop.permute.xlu0 %2459 }
 0x11e   : > { %v2437_v2 = vunpack.i.h.bf16 %v2435_v62  ;;  %v2436_v3 = vunpack.i.l.bf16 %v2435_v62  ;;  %v2462_v4 = vunpack.i.h.bf16 %v2460_v63  ;;  %v2461_v5 = vunpack.i.l.bf16 %v2460_v63  ;;  %v2485_v18 = vpop.permute.xlu2 %2484 }
 0x11f   : > { %2185 = vmatmul.msk.bf16.vlgmr.msra.gmra.mxu3 %vm316_vm3, %v2644_v15  ;;  %2190 = vmatmul.msk.bf16.vlgmr.msra.gmra.mxu0 %vm316_vm3, %v2644_v15  ;;  %v2487_v32 = vunpack.i.h.bf16 %v2485_v18  ;;  %v2486_v33 = vunpack.i.l.bf16 %v2485_v18 }
 0x120   : > { %v527_v6 = vmul.f32 %v2436_v3, %v2635_v10  ;;  %v528_v7 = vmul.f32 %v2437_v2, %v2637_v11  ;;  %v587_v8 = vmul.f32 %v2461_v5, %v2635_v10  ;;  %v588_v9 = vmul.f32 %v2462_v4, %v2637_v11 }
 0x121   : > { %v797_v37 = vmul.f32 %v2486_v33, %v2635_v10  ;;  %v798_v38 = vmul.f32 %v2487_v32, %v2637_v11 }
 0x122   : > { %v529_v16 = vpack.c.bf16 %v528_v7, %v527_v6  ;;  %v589_v17 = vpack.c.bf16 %v588_v9, %v587_v8 }
 0x123   : > { %v799_v49 = vpack.c.bf16 %v798_v38, %v797_v37 }
 0x124   : > { %537 = vmatpush.bf16.msrb.mxu3 %v529_v16  ;;  %597 = vmatpush.bf16.msra.mxu1 %v589_v17  ;;  %v329_v38 = vpop.f32.mrf.mxu0 }
 0x125   : > { %v2450_v19 = vpop.permute.xlu1 %2449  ;;  %v2475_v22 = vpop.permute.xlu0 %2474  ;;  %334 = vst.msk [vmem:[#allocation3] sm:$0xff] %vm333_vm4, %v329_v38 }
 0x126   : > { %v2452_v23 = vunpack.i.h.bf16 %v2450_v19  ;;  %v2451_v24 = vunpack.i.l.bf16 %v2450_v19  ;;  %v2477_v25 = vunpack.i.h.bf16 %v2475_v22  ;;  %v2476_v26 = vunpack.i.l.bf16 %v2475_v22  ;;  %v2500_v44 = vpop.permute.xlu2 %2499 }
 0x127   : > { %2188 = vmatmul.msk.bf16.vlgmr.msrb.gmra.mxu2 %vm316_vm3, %v2644_v15  ;;  %2191 = vmatmul.msk.bf16.vlgmr.msra.gmra.mxu1 %vm316_vm3, %v2644_v15  ;;  %v2502_v50 = vunpack.i.h.bf16 %v2500_v44  ;;  %v2501_v51 = vunpack.i.l.bf16 %v2500_v44 }
 0x128   : > { %657 = vmatpush.bf16.msra.mxu3 %v649_v12  ;;  %v617_v27 = vmul.f32 %v2451_v24, %v2635_v10  ;;  %v618_v28 = vmul.f32 %v2452_v23, %v2637_v11  ;;  %v767_v29 = vmul.f32 %v2476_v26, %v2635_v10  ;;  %v768_v30 = vmul.f32 %v2477_v25, %v2637_v11 }
 0x129   : > { %v827_v55 = vmul.f32 %v2501_v51, %v2635_v10  ;;  %v828_v56 = vmul.f32 %v2502_v50, %v2637_v11 }
 0x12a   : > { %v619_v34 = vpack.c.bf16 %v618_v28, %v617_v27  ;;  %v769_v35 = vpack.c.bf16 %v768_v30, %v767_v29 }
 0x12b   : > { %v829_v2 = vpack.c.bf16 %v828_v56, %v827_v55  ;;  %v1736_v55 = vld [vmem:[%s2738_s8 + $0xc] sm:$0x1] }
 0x12c   : > { %627 = vmatpush.bf16.msra.mxu2 %v619_v34 }
 0x12d   : > { %v2465_v36 = vpop.permute.xlu1 %2464  ;;  %v2490_v39 = vpop.permute.xlu0 %2489 }
 0x12e   : > { %v2467_v40 = vunpack.i.h.bf16 %v2465_v36  ;;  %v2466_v41 = vunpack.i.l.bf16 %v2465_v36  ;;  %v2492_v42 = vunpack.i.h.bf16 %v2490_v39  ;;  %v2491_v43 = vunpack.i.l.bf16 %v2490_v39  ;;  %v2515_v18 = vpop.permute.xlu2 %2514  ;;  %v1094_v39 = vld [vmem:[%s2738_s8 + $0x1] sm:$0x1] }
 0x12f   : > { %2189 = vmatmul.msk.bf16.vlgmr.msrb.gmra.mxu3 %vm316_vm3, %v2644_v15  ;;  %v2517_v21 = vunpack.i.h.bf16 %v2515_v18  ;;  %v2516_v22 = vunpack.i.l.bf16 %v2515_v18 }
 0x130   : > { %747 = vmatpush.bf16.msrb.mxu2 %v739_v31  ;;  %v677_v45 = vmul.f32 %v2466_v41, %v2635_v10  ;;  %v678_v46 = vmul.f32 %v2467_v40, %v2637_v11  ;;  %777 = vmatpush.bf16.msrb.mxu3 %v769_v35  ;;  %v857_v47 = vmul.f32 %v2491_v43, %v2635_v10  ;;  %v1098_v43 = vfloor.f32 %v1094_v39 }
 0x131   : > { %v858_v48 = vmul.f32 %v2492_v42, %v2637_v11  ;;  %v1007_v28 = vmul.f32 %v2516_v22, %v2635_v10  ;;  %v1008_v29 = vmul.f32 %v2517_v21, %v2637_v11  ;;  %v331_v42 = vpop.f32.mrf.mxu0 }
 0x132   : > { %v679_v52 = vpack.c.bf16 %v678_v46, %v677_v45 }
 0x133   : > { %v859_v53 = vpack.c.bf16 %v858_v48, %v857_v47  ;;  %v1009_v31 = vpack.c.bf16 %v1008_v29, %v1007_v28  ;;  %v2757_v47 = vsub.f32 %v1094_v39, %v1098_v43  ;;  %v1415_v48 = vld [vmem:[%s2738_s8 + $0x6] sm:$0x1] }
 0x134   : > { %687 = vmatpush.bf16.msrb.mxu0 %v679_v52  ;;  %v1416_v52 = vld [vmem:[%s2738_s8 + $0x7] sm:$0x1] }
 0x135   : > { %v2480_v54 = vpop.permute.xlu1 %2479  ;;  %v2505_v57 = vpop.permute.xlu0 %2504 }
 0x136   : > { %v2482_v58 = vunpack.i.h.bf16 %v2480_v54  ;;  %v2481_v59 = vunpack.i.l.bf16 %v2480_v54  ;;  %v2507_v60 = vunpack.i.h.bf16 %v2505_v57  ;;  %v2506_v61 = vunpack.i.l.bf16 %v2505_v57 }
 0x137   : > { %2192 = vmatmul.msk.bf16.vlgmr.msra.gmra.mxu2 %vm316_vm3, %v2644_v15  ;;  %2194 = vmatmul.msk.bf16.vlgmr.msrb.gmra.mxu0 %vm316_vm3, %v2644_v15  ;;  %v2770_v54 = vsub.f32 1.0, %v2757_v47 }
 0x138   : > { %807 = vmatpush.bf16.msra.mxu0 %v799_v49  ;;  %v707_v62 = vmul.f32 %v2481_v59, %v2635_v10  ;;  %v708_v63 = vmul.f32 %v2482_v58, %v2637_v11  ;;  %v917_v0 = vmul.f32 %v2506_v61, %v2635_v10  ;;  %v918_v1 = vmul.f32 %v2507_v60, %v2637_v11  ;;  %v1737_v60 = vld [vmem:[%s2738_s8 + $0xd] sm:$0x1] }
 0x139   : > { %867 = vmatpush.bf16.msra.mxu2 %v859_v53  ;;  %v2760_v49 = vcvt.f32.s32 %v1098_v43  ;;  %v1417_v53 = vfloor.f32 %v1415_v48  ;;  %v1420_v59 = vfloor.f32 %v1416_v52 }
 0x13a   : > { %v709_v3 = vpack.c.bf16 %v708_v63, %v707_v62  ;;  %v919_v4 = vpack.c.bf16 %v918_v1, %v917_v0  ;;  %v1738_v63 = vfloor.f32 %v1736_v55 }
 0x13b   : > { %vm1108_vm7 = vcmp.eq.s32.totalorder %v2760_v49, 4294967295  ;;  %vm1111_vm9 = vcmp.eq.s32.totalorder %v2760_v49, 4294967294  ;;  %v2784_v61 = vsub.f32 %v1415_v48, %v1417_v53  ;;  %v2786_v62 = vcvt.f32.s32 %v1417_v53 }
 0x13c   : > { %717 = vmatpush.bf16.msrb.mxu1 %v709_v3  ;;  %927 = vmatpush.bf16.msrb.mxu0 %v919_v4  ;;  %v1110_v1 = vsel %vm1108_vm7, %v2770_v54, 0.0  ;;  %v1112_v3 = vsel %vm1111_vm9, %v2757_v47, 0.0  ;;  %vm1119_vm9 = vcmp.eq.s32.totalorder %v2760_v49, 0 }
 0x13d   : > { %v2495_v5 = vpop.permute.xlu1 %2494  ;;  %v2520_v6 = vpop.permute.xlu0 %2519  ;;  %vm1426_vm12 = vcmp.eq.s32.totalorder %v2786_v62, 4294967294  ;;  %vm1423_vm13 = vcmp.eq.s32.totalorder %v2786_v62, 4294967295 }
 0x13e   : > { %v2497_v7 = vunpack.i.h.bf16 %v2495_v5  ;;  %v2496_v8 = vunpack.i.l.bf16 %v2495_v5  ;;  %v2522_v9 = vunpack.i.h.bf16 %v2520_v6  ;;  %v2521_v12 = vunpack.i.l.bf16 %v2520_v6 }
 0x13f   : > { %2193 = vmatmul.msk.bf16.vlgmr.msra.gmra.mxu3 %vm316_vm3, %v2644_v15  ;;  %2195 = vmatmul.msk.bf16.vlgmr.msrb.gmra.mxu1 %vm316_vm3, %v2644_v15  ;;  %v1741_v5 = vfloor.f32 %v1737_v60  ;;  %v1427_v21 = vsel %vm1426_vm12, %v2784_v61, 0.0 }
 0x140   : > { %837 = vmatpush.bf16.msra.mxu1 %v829_v2  ;;  %v887_v13 = vmul.f32 %v2496_v8, %v2635_v10  ;;  %v888_v14 = vmul.f32 %v2497_v7, %v2637_v11  ;;  %v947_v16 = vmul.f32 %v2521_v12, %v2635_v10  ;;  %v948_v17 = vmul.f32 %v2522_v9, %v2637_v11 }
 0x141   : > { %v2801_v7 = vsub.f32 %v1416_v52, %v1420_v59  ;;  %v2803_v8 = vcvt.f32.s32 %v1420_v59  ;;  %v2806_v9 = vsub.f32 1.0, %v2784_v61  ;;  %v2809_v12 = vsub.f32 %v1736_v55, %v1738_v63 }
 0x142   : > { %v889_v19 = vpack.c.bf16 %v888_v14, %v887_v13  ;;  %v949_v20 = vpack.c.bf16 %v948_v17, %v947_v16  ;;  %v2814_v14 = vadd.f32 %v1112_v3, %v1110_v1  ;;  %v2817_v16 = vcvt.f32.s32 %v1738_v63 }
 0x143   : > { %vm1430_vm14 = vcmp.eq.s32.totalorder %v2803_v8, 4294967295  ;;  %v2828_v22 = vsub.f32 1.0, %v2801_v7  ;;  %vm1433_vm0 = vcmp.eq.s32.totalorder %v2803_v8, 4294967294  ;;  %v1438_v63 = vsel %vm1423_vm13, %v2784_v61, 0.0 }
 0x144   : > { %897 = vmatpush.bf16.msra.mxu3 %v889_v19  ;;  %957 = vmatpush.bf16.msrb.mxu1 %v949_v20  ;;  %v2823_v20 = vsub.f32 %v1737_v60, %v1741_v5  ;;  %vm1765_vm15 = vcmp.eq.s32.totalorder %v2817_v16, 1  ;;  %vm1756_vm1 = vcmp.eq.s32.totalorder %v2817_v16, 0  ;;  %vm1747_vm12 = vcmp.eq.s32.totalorder %v2817_v16, 4294967294 }
 0x145   : > { %v2510_v23 = vpop.permute.xlu1 %2509  ;;  %4085 = vst [vmem:[#allocation7_spill] sm:$0xff] %v2828_v22  ;;  %v1767_v29 = vsel %vm1756_vm1, %v2809_v12, 0.0  ;;  %v1748_v1 = vsel %vm1747_vm12, %v2809_v12, 0.0 }
 0x146   : > { %v2512_v24 = vunpack.i.h.bf16 %v2510_v23  ;;  %v2511_v25 = vunpack.i.l.bf16 %v2510_v23  ;;  %4084 = vst [vmem:[#allocation6_spill] sm:$0xff] %v2823_v20  ;;  %v1425_v23 = vsel %vm1423_vm13, %v2806_v9, 0.0  ;;  %vm1440_vm13 = vcmp.eq.s32.totalorder %v2803_v8, 0 }
 0x147   : > { %2196 = vmatmul.msk.bf16.vlgmr.msrb.gmra.mxu2 %vm316_vm3, %v2644_v15  ;;  %2198 = vmatmul.msk.bf16.vlgmr.msra.gmra.mxu0 %vm316_vm3, %v2644_v15 }
 0x148   : > { %v977_v26 = vmul.f32 %v2511_v25, %v2635_v10  ;;  %v978_v27 = vmul.f32 %v2512_v24, %v2637_v11  ;;  %v2835_v24 = vcvt.f32.s32 %v1741_v5  ;;  %v1745_v25 = vsub.f32 1.0, %v2809_v12 }
 0x14a   : > { %v979_v30 = vpack.c.bf16 %v978_v27, %v977_v26  ;;  %4086 = vst [vmem:[#allocation8_spill] sm:$0xff] %v2835_v24  ;;  %v1766_v28 = vsel %vm1765_vm15, %v1745_v25, 0.0 }
 0x14c   : > { %987 = vmatpush.bf16.msrb.mxu2 %v979_v30  ;;  %v1428_v30 = vadd.f32 %v1427_v21, %v1425_v23  ;;  %v1757_v21 = vsel %vm1756_vm1, %v1745_v25, 0.0 }
 0x14d   : > { %v2525_v32 = vpop.permute.xlu1 %2524 }
 0x14e   : > { %v2527_v33 = vunpack.i.h.bf16 %v2525_v32  ;;  %v2526_v34 = vunpack.i.l.bf16 %v2525_v32  ;;  %v1434_v32 = vsel %vm1433_vm0, %v2801_v7, 0.0 }
 0x14f   : > { %2197 = vmatmul.msk.bf16.vlgmr.msrb.gmra.mxu3 %vm316_vm3, %v2644_v15  ;;  %2199 = vmatmul.msk.bf16.vlgmr.msra.gmra.mxu1 %vm316_vm3, %v2644_v15 }
 0x150   : > { %1017 = vmatpush.bf16.msrb.mxu3 %v1009_v31  ;;  %v1037_v35 = vmul.f32 %v2526_v34, %v2635_v10  ;;  %v1038_v36 = vmul.f32 %v2527_v33, %v2637_v11  ;;  %v1055_v10 = vlaneseq  ;;  %v1093_v11 = vld [vmem:[%s2738_s8] sm:$0x1]  ;;  %v1432_v31 = vsel %vm1430_vm14, %v2828_v22, 0.0 }
 0x151   : > { %v1095_v40 = vfloor.f32 %v1093_v11  ;;  %v2852_v33 = vsub.f32 1.0, %v2823_v20 }
 0x152   : > { %v1039_v37 = vpack.c.bf16 %v1038_v36, %v1037_v35  ;;  %v1056_v41 = vand.u32 127, %v1055_v10  ;;  %v1768_v36 = vadd.f32 %v1767_v29, %v1766_v28  ;;  %v2861_v10 = vadd.f32 %v1434_v32, %v1432_v31 }
 0x153   : > { %v2747_v44 = vsub.f32 %v1093_v11, %v1095_v40  ;;  %v2755_v46 = vcvt.f32.s32 %v1095_v40  ;;  %4088 = vst [vmem:[#allocation10_spill] sm:$0xff] %v2852_v33 }
 0x154   : > { %1047 = vmatpush.bf16.msra.mxu0 %v1039_v37  ;;  %v2753_v45 = vand.u32 7, %v1056_v41  ;;  %v1132_v37 = vld [vmem:[#allocation3] sm:$0xff] }
 0x155   : > { %v2763_v50 = vsub.f32 1.0, %v2747_v44  ;;  %vm1101_vm5 = vcmp.eq.s32.totalorder %v2755_v46, 4294967295  ;;  %vm1104_vm6 = vcmp.eq.s32.totalorder %v2755_v46, 4294967294  ;;  %vm1114_vm10 = vcmp.eq.s32.totalorder %v2755_v46, 0 }
 0x156   : > { %v1069_v51 = vadd.s32 4294967294, %v2753_v45  ;;  %v1105_v57 = vsel %vm1104_vm6, %v2747_v44, 0.0  ;;  %v1075_v58 = vadd.s32 4294967295, %v2753_v45  ;;  %v1116_v4 = vsel %vm1101_vm5, %v2747_v44, 0.0 }
 0x157   : > { %2200 = vmatmul.msk.bf16.vlgmr.msra.gmra.mxu2 %vm316_vm3, %v2644_v15  ;;  %2202 = vmatmul.msk.bf16.vlgmr.msrb.gmra.mxu0 %vm316_vm3, %v2644_v15  ;;  %v1103_v56 = vsel %vm1101_vm5, %v2763_v50, 0.0  ;;  %v1115_v6 = vsel %vm1114_vm10, %v2763_v50, 0.0  ;;  %v1087_v19 = vadd.s32 2, %v2753_v45  ;;  %vm1753_vm5 = vcmp.eq.s32.totalorder %v2835_v24, 4294967294 }
 0x158   : > { %vm1070_vm8 = vcmp.ge.s32.totalorder %v1069_v51, 0  ;;  %v1106_v0 = vadd.f32 %v1105_v57, %v1103_v56  ;;  %vm1076_vm11 = vcmp.ge.s32.totalorder %v1075_v58, 0  ;;  %v1117_v18 = vadd.f32 %v1116_v4, %v1115_v6  ;;  %v1201_v6 = vld [vmem:[%s2738_s8 + $0x2] sm:$0x1] }
 0x159   : > { %vm1089_vm2 = vcmp.lt.s32.totalorder %v1087_v19, 8  ;;  %v1754_v41 = vsel %vm1753_vm5, %v2823_v20, 0.0  ;;  %vm1123_vm6 = vcmp.eq.s32.totalorder %v2755_v46, 1  ;;  %v1125_v53 = vsel %vm1114_vm10, %v2747_v44, 0.0 }
 0x15a   : > { %v1124_v52 = vsel %vm1123_vm6, %v2763_v50, 0.0  ;;  %v1081_v56 = vadd.s32 1, %v2753_v45  ;;  %v1120_v57 = vsel %vm1119_vm9, %v2770_v54, 0.0  ;;  %v1121_v50 = vsel %vm1108_vm7, %v2757_v47, 0.0 }
 0x15b   : > { %vm1444_vm10 = vcmp.eq.s32.totalorder %v2786_v62, 1  ;;  %v2910_v59 = vadd.f32 %v1125_v53, %v1124_v52  ;;  %v2924_v5 = vadd.f32 %v1121_v50, %v1120_v57  ;;  %v1523_v50 = vld [vmem:[%s2738_s8 + $0x9] sm:$0x1]  ;;  %vm1761_vm6 = vcmp.eq.s32.totalorder %v2835_v24, 0 }
 0x15c   : > { %vm1083_vm7 = vcmp.lt.s32.totalorder %v1081_v56, 8  ;;  %v1445_v3 = vsel %vm1444_vm10, %v2806_v9, 0.0 }
 0x15d   : > { %v2939_v28 = vmul.f32 %v2910_v59, %v2814_v14 }
 0x15f   : > { %2201 = vmatmul.msk.bf16.vlgmr.msra.gmra.mxu3 %vm316_vm3, %v2644_v15  ;;  %2203 = vmatmul.msk.bf16.vlgmr.msrb.gmra.mxu1 %vm316_vm3, %v2644_v15 }
 0x167   : > { %2204 = vmatmul.msk.bf16.vlgmr.msrb.gmra.mxu2 %vm316_vm3, %v2644_v15  ;;  %2206 = vmatmul.msk.bf16.vlgmr.msra.gmra.mxu0 %vm316_vm3, %v2644_v15 }
 0x16f   : > { %2205 = vmatmul.msk.bf16.vlgmr.msrb.gmra.mxu3 %vm316_vm3, %v2644_v15  ;;  %v2578_v15 = vmov 0.0   ;;  %vm1750_vm3 = vcmp.eq.s32.totalorder %v2835_v24, 4294967295 }
 0x170   : > { %v2792_v2 = vsel %vm1070_vm8, 1.0, %v2578_v15  ;;  %v2820_v17 = vsel %vm1076_vm11, 1.0, %v2578_v15  ;;  %v2865_v11 = vsel %vm1089_vm2, 1.0, %v2578_v15  ;;  %v1752_v40 = vsel %vm1750_vm3, %v2852_v33, 0.0 }
 0x171   : > { %4082 = vst [vmem:[#allocation4_spill] sm:$0xff] %v2792_v2  ;;  %v2812_v13 = vmul.f32 %v2792_v2, %v1106_v0  ;;  %v2842_v27 = vmul.f32 %v2820_v17, %v1117_v18  ;;  %v2868_v39 = vmul.f32 %v2820_v17, %v1428_v30  ;;  %v2878_v43 = vmul.f32 %v2865_v11, %v1768_v36  ;;  %v1202_v18 = vld [vmem:[%s2738_s8 + $0x3] sm:$0x1] }
 0x172   : > { %4089 = vst [vmem:[#allocation11_spill] sm:$0xff] %v2865_v11  ;;  %vm1436_vm8 = vcmp.eq.s32.totalorder %v2786_v62, 0  ;;  %v2883_v51 = vadd.f32 %v1754_v41, %v1752_v40  ;;  %vm1744_vm11 = vcmp.eq.s32.totalorder %v2817_v16, 4294967295  ;;  %v1203_v62 = vfloor.f32 %v1201_v6 }
 0x173   : > { %4083 = vst [vmem:[#allocation5_spill] sm:$0xff] %v2812_v13  ;;  %v1131_v26 = vmul.f32 %v2814_v14, %v2812_v13  ;;  %v2859_v38 = vmul.f32 %v2842_v27, %v2814_v14  ;;  %v2891_v55 = vmul.f32 %v2861_v10, %v2868_v39  ;;  %v1446_v44 = vsel %vm1436_vm8, %v2784_v61, 0.0 }
 0x174   : > { %4087 = vst [vmem:[#allocation9_spill] sm:$0xff] %v2842_v27  ;;  %v2908_v45 = vmul.f32 %v2878_v43, %v2883_v51  ;;  %v1437_v60 = vsel %vm1436_vm8, %v2806_v9, 0.0  ;;  %v1746_v0 = vsel %vm1744_vm11, %v1745_v25, 0.0  ;;  %v1447_v19 = vadd.f32 %v1446_v44, %v1445_v3  ;;  %v1522_v25 = vld [vmem:[%s2738_s8 + $0x8] sm:$0x1] }
 0x175   : > { %v1133_v34 = vperm.slane %v1131_v26, 0  ;;  %4090 = vst [vmem:[#allocation12_spill] sm:$0xff] %v2868_v39  ;;  %v1138_v48 = vperm.slane %v2859_v38, 0  ;;  %v1455_v4 = vperm.slane %v2891_v55, 0  ;;  %v1206_v61 = vfloor.f32 %v1202_v18 }
 0x176   : > { %4091 = vst [vmem:[#allocation13_spill] sm:$0xff] %v2878_v43  ;;  %v2931_v23 = vsel %vm1083_vm7, 1.0, %v2578_v15  ;;  %v1758_v26 = vsel %vm1744_vm11, %v2809_v12, 0.0  ;;  %v1786_v9 = vperm.slane %v2908_v45, 0  ;;  %v2941_v29 = vadd.f32 %v1438_v63, %v1437_v60 }
 0x177   : > { %v2875_v42 = vmul.f32 %v1133_v34, %v1132_v37  ;;  %4092 = vst [vmem:[#allocation14_spill] sm:$0xff] %v2931_v23  ;;  %v2943_v30 = vadd.f32 %v1748_v1, %v1746_v0  ;;  %v2946_v31 = vsub.f32 %v1201_v6, %v1203_v62  ;;  %v2948_v32 = vcvt.f32.s32 %v1203_v62 }
 0x178   : > { %v2950_v15 = vsub.f32 %v1202_v18, %v1206_v61  ;;  %v2952_v34 = vcvt.f32.s32 %v1206_v61  ;;  %v2956_v16 = vmul.f32 %v2924_v5, %v2812_v13  ;;  %v2959_v14 = vmul.f32 %v2931_v23, %v1447_v19  ;;  %v1843_v19 = vld [vmem:[%s2738_s8 + $0xe] sm:$0x1] }
 0x179   : > { %vm1209_vm15 = vcmp.eq.s32.totalorder %v2948_v32, 4294967295  ;;  %v2964_v36 = vsub.f32 1.0, %v2946_v31  ;;  %vm1212_vm0 = vcmp.eq.s32.totalorder %v2948_v32, 4294967294  ;;  %v1524_v37 = vfloor.f32 %v1522_v25 }
 0x17a   : > { %4093 = vst [vmem:[#allocation15_spill] sm:$0xff] %v2959_v14  ;;  %v1213_v40 = vsel %vm1212_vm0, %v2946_v31, 0.0  ;;  %vm1216_vm1 = vcmp.eq.s32.totalorder %v2952_v34, 4294967295  ;;  %v2970_v41 = vsub.f32 1.0, %v2950_v15  ;;  %vm1219_vm2 = vcmp.eq.s32.totalorder %v2952_v34, 4294967294 }
 0x17b   : > { %v2975_v55 = vmul.f32 %v2941_v29, %v2861_v10  ;;  %v2979_v56 = vmul.f32 %v2883_v51, %v2943_v30  ;;  %v1211_v57 = vsel %vm1209_vm15, %v2964_v36, 0.0  ;;  %v1441_v63 = vsel %vm1440_vm13, %v2828_v22, 0.0 }
 0x17c   : > { %v1214_v45 = vadd.f32 %v1213_v40, %v1211_v57  ;;  %v1218_v60 = vsel %vm1216_vm1, %v2970_v41, 0.0  ;;  %v1442_v0 = vsel %vm1430_vm14, %v2801_v7, 0.0  ;;  %v3003_v1 = vmul.f32 %v2959_v14, %v2861_v10  ;;  %v1844_v57 = vld [vmem:[%s2738_s8 + $0xf] sm:$0x1] }
 0x17d   : > { %v359_v35 = vpop.f32.mrf.mxu1  ;;  %v3005_v3 = vsub.f32 %v1522_v25, %v1524_v37  ;;  %v3007_v6 = vcvt.f32.s32 %v1524_v37  ;;  %v1527_v18 = vfloor.f32 %v1523_v50  ;;  %v3019_v10 = vadd.f32 %v1442_v0, %v1441_v63 }
 0x17e   : > { %364 = vst.msk [vmem:[#allocation3 + $0x8] sm:$0xff] %vm333_vm4, %v359_v35  ;;  %v1759_v35 = vadd.f32 %v1758_v26, %v1757_v21  ;;  %v3025_v37 = vmul.f32 %v2792_v2, %v1214_v45  ;;  %vm1222_vm10 = vcmp.eq.s32.totalorder %v2948_v32, 0 }
 0x17f   : > { %v3021_v25 = vcvt.f32.s32 %v1527_v18  ;;  %vm1543_vm14 = vcmp.eq.s32.totalorder %v3007_v6, 0  ;;  %vm1551_vm5 = vcmp.eq.s32.totalorder %v3007_v6, 1 }
 0x180   : > { %4096 = vst [vmem:[#allocation18_spill] sm:$0xff] %v3025_v37  ;;  %v1553_v45 = vsel %vm1543_vm14, %v3005_v3, 0.0 }
 0x181   : > { %4095 = vst [vmem:[#allocation17_spill] sm:$0xff] %v3021_v25  ;;  %vm1540_vm8 = vcmp.eq.s32.totalorder %v3021_v25, 4294967294 }
 0x185   : > { %v361_v46 = vpop.f32.mrf.mxu1  ;;  %v449_v58 = vpop.f32.mrf.mxu0  ;;  %v1137_v12 = vld [vmem:[#allocation3 + $0x8] sm:$0xff] }
 0x186   : > { %454 = vst.msk [vmem:[#allocation3 + $0x20] sm:$0xff] %vm333_vm4, %v449_v58  ;;  %v1139_v53 = vmul.f32 %v1138_v48, %v1137_v12  ;;  %v1220_v46 = vsel %vm1219_vm2, %v2950_v15, 0.0  ;;  %v2990_v58 = vmul.f32 %v2931_v23, %v1759_v35  ;;  %v3013_v62 = vmul.f32 %v1455_v4, %v1137_v12 }
 0x187   : > { %v1845_v4 = vfloor.f32 %v1843_v19  ;;  %vm1530_vm2 = vcmp.eq.s32.totalorder %v3007_v6, 4294967295 }
 0x188   : > { %4094 = vst [vmem:[#allocation16_spill] sm:$0xff] %v2990_v58  ;;  %v3011_v21 = vadd.f32 %v1139_v53, %v2875_v42  ;;  %v3027_v42 = vsub.f32 %v1523_v50, %v1527_v18  ;;  %v3033_v40 = vmul.f32 %v2990_v58, %v2883_v51  ;;  %v3036_v53 = vsub.f32 1.0, %v3005_v3 }
 0x189   : > { %v3044_v50 = vmul.f32 %v2959_v14, %v3019_v10  ;;  %v1763_v51 = vsel %vm1750_vm3, %v2823_v20, 0.0  ;;  %v3054_v63 = vsub.f32 %v1843_v19, %v1845_v4  ;;  %vm1537_vm3 = vcmp.eq.s32.totalorder %v3021_v25, 4294967295 }
 0x18a   : > { %4097 = vst [vmem:[#allocation19_spill] sm:$0xff] %v3027_v42  ;;  %v3061_v18 = vsub.f32 1.0, %v3027_v42  ;;  %v1541_v12 = vsel %vm1540_vm8, %v3027_v42, 0.0  ;;  %vm1231_vm8 = vcmp.eq.s32.totalorder %v2948_v32, 1 }
 0x18b   : > { %v3069_v19 = vsub.f32 1.0, %v3054_v63  ;;  %v1480_v24 = vperm.slane %v3044_v50, 0 }
 0x18c   : > { %4098 = vst [vmem:[#allocation20_spill] sm:$0xff] %v3061_v18 }
 0x18d   : > { %v479_v38 = vpop.f32.mrf.mxu1  ;;  %v451_v52 = vpop.f32.mrf.mxu0  ;;  %v1785_v35 = vld [vmem:[#allocation3 + $0x20] sm:$0xff] }
 0x18e   : > { %484 = vst.msk [vmem:[#allocation3 + $0x28] sm:$0xff] %vm333_vm4, %v479_v38  ;;  %v3017_v38 = vadd.f32 %v1220_v46, %v1218_v60  ;;  %v3040_v46 = vmul.f32 %v1786_v9, %v1785_v35  ;;  %v1552_v60 = vsel %vm1551_vm5, %v3036_v53, 0.0  ;;  %v3056_v9 = vcvt.f32.s32 %v1845_v4 }
 0x18f   : > { %v1762_v35 = vsel %vm1761_vm6, %v2852_v33, 0.0  ;;  %v1554_v26 = vadd.f32 %v1553_v45, %v1552_v60  ;;  %vm1533_vm5 = vcmp.eq.s32.totalorder %v3007_v6, 4294967294 }
 0x190   : > { %v1239_v0 = vmul.f32 %v3017_v38, %v3025_v37  ;;  %vm1851_vm11 = vcmp.eq.s32.totalorder %v3056_v9, 4294967295  ;;  %vm1863_vm12 = vcmp.eq.s32.totalorder %v3056_v9, 0  ;;  %v3078_v48 = vadd.f32 %v1763_v51, %v1762_v35 }
 0x191   : > { %v1864_v2 = vsel %vm1863_vm12, %v3069_v19, 0.0  ;;  %v1865_v14 = vsel %vm1851_vm11, %v3054_v63, 0.0  ;;  %v1223_v35 = vsel %vm1222_vm10, %v2964_v36, 0.0 }
 0x192   : > { %v1866_v60 = vadd.f32 %v1865_v14, %v1864_v2 }
 0x194   : > { %v3113_v14 = vmul.f32 %v2931_v23, %v1866_v60 }
 0x195   : > { %v481_v52 = vpop.f32.mrf.mxu1 }
 0x196   : > { %v1848_v52 = vfloor.f32 %v1844_v57 }
 0x198   : > { %v3073_v61 = vsub.f32 %v1844_v57, %v1848_v52  ;;  %v3075_v44 = vcvt.f32.s32 %v1848_v52  ;;  %v1539_v57 = vsel %vm1537_vm3, %v3061_v18, 0.0  ;;  %v1224_v52 = vsel %vm1209_vm15, %v2946_v31, 0.0 }
 0x199   : > { %v1225_v20 = vadd.f32 %v1224_v52, %v1223_v35  ;;  %v3116_v33 = vadd.f32 %v1541_v12, %v1539_v57  ;;  %vm1872_vm15 = vcmp.eq.s32.totalorder %v3056_v9, 1  ;;  %v1874_v12 = vsel %vm1863_vm12, %v3054_v63, 0.0 }
 0x19a   : > { %v389_v4 = vpop.f32.mrf.mxu2  ;;  %4099 = vst [vmem:[#allocation21_spill] sm:$0xff] %v3073_v61  ;;  %vm1857_vm7 = vcmp.eq.s32.totalorder %v3075_v44, 4294967295  ;;  %v3092_v45 = vsub.f32 1.0, %v3073_v61  ;;  %vm1860_vm0 = vcmp.eq.s32.totalorder %v3075_v44, 4294967294  ;;  %v1781_v52 = vperm.slane %v3033_v40, 0 }
 0x19b   : > { %4100 = vst [vmem:[#allocation22_spill] sm:$0xff] %v3075_v44  ;;  %v1861_v51 = vsel %vm1860_vm0, %v3073_v61, 0.0  ;;  %v1147_v61 = vld [vmem:[#allocation3 + $0x28] sm:$0xff]  ;;  %v3151_v40 = vmul.f32 %v2878_v43, %v3078_v48  ;;  %vm1227_vm12 = vcmp.eq.s32.totalorder %v2952_v34, 0 }
 0x19c   : > { %394 = vst.msk [vmem:[#allocation3 + $0x10] sm:$0xff] %vm333_vm4, %v389_v4  ;;  %v569_v37 = vpop.f32.mrf.mxu0  ;;  %v3104_v4 = vmul.f32 %v2931_v23, %v1554_v26  ;;  %v1859_v13 = vsel %vm1857_vm7, %v3092_v45, 0.0  ;;  %v1794_v26 = vmul.f32 %v3078_v48, %v2990_v58  ;;  %v4103_v58 = vperm.slane %v2956_v16, 0 }
 0x19d   : > { %4101 = vst [vmem:[#allocation23_spill] sm:$0xff] %v3092_v45  ;;  %v3110_v2 = vadd.f32 %v1861_v51, %v1859_v13  ;;  %v3122_v45 = vmul.f32 %v2924_v5, %v2842_v27  ;;  %v1532_v13 = vsel %vm1530_vm2, %v3036_v53, 0.0  ;;  %v1534_v51 = vsel %vm1533_vm5, %v3005_v3, 0.0 }
 0x19e   : > { %574 = vst.msk [vmem:[#allocation3 + $0x40] sm:$0xff] %vm333_vm4, %v569_v37  ;;  %v1241_v37 = vperm.slane %v1239_v0, 0  ;;  %v3128_v0 = vmul.f32 %v2820_v17, %v1225_v20  ;;  %v1570_v23 = vmul.f32 %v3104_v4, %v3116_v33  ;;  %v3140_v20 = vmul.f32 %v3019_v10, %v2868_v39 }
 0x19f   : > { %4102 = vst [vmem:[#allocation24_spill] sm:$0xff] %v3104_v4  ;;  %v1873_v27 = vsel %vm1872_vm15, %v3069_v19, 0.0  ;;  %v1149_v44 = vmul.f32 %v4103_v58, %v1147_v61  ;;  %v1796_v39 = vperm.slane %v1794_v26, 0  ;;  %v1535_v42 = vadd.f32 %v1534_v51, %v1532_v13 }
 0x1a0   : > { %v3153_v4 = vmul.f32 %v1241_v37, %v1147_v61  ;;  %v1875_v22 = vadd.f32 %v1874_v12, %v1873_v27  ;;  %v4104_v16 = vperm.slane %v2939_v28, 0  ;;  %v3160_v50 = vmul.f32 %v3128_v0, %v3017_v38 }
 0x1a1   : > { %v3165_v61 = vmul.f32 %v2910_v59, %v2924_v5  ;;  %v4105_v37 = vperm.slane %v2975_v55, 0  ;;  %v1572_v27 = vperm.slane %v1570_v23, 0  ;;  %v4107_v13 = vperm.slane %v2979_v56, 0 }
 0x1a2   : > { %v391_v60 = vpop.f32.mrf.mxu2  ;;  %v419_v35 = vpop.f32.mrf.mxu3  ;;  %v3171_v28 = vmul.f32 %v2865_v11, %v1875_v22  ;;  %v3178_v5 = vmul.f32 %v2820_v17, %v1535_v42  ;;  %v1232_v55 = vsel %vm1231_vm8, %v2964_v36, 0.0  ;;  %v1233_v23 = vsel %vm1222_vm10, %v2946_v31, 0.0 }
 0x1a3   : > { %v1142_v57 = vld [vmem:[#allocation3 + $0x10] sm:$0xff]  ;;  %424 = vst.msk [vmem:[#allocation3 + $0x18] sm:$0xff] %vm333_vm4, %v419_v35  ;;  %v1886_v60 = vmul.f32 %v3113_v14, %v3110_v2  ;;  %v1153_v35 = vperm.slane %v3122_v45, 0  ;;  %v1544_v22 = vsel %vm1543_vm14, %v3036_v53, 0.0  ;;  %v1545_v42 = vsel %vm1530_vm2, %v3005_v3, 0.0 }
 0x1a4   : > { %v599_v18 = vpop.f32.mrf.mxu1  ;;  %v571_v25 = vpop.f32.mrf.mxu0  ;;  %v1144_v58 = vmul.f32 %v4104_v16, %v1142_v57  ;;  %v1461_v26 = vmul.f32 %v4105_v37, %v1142_v57  ;;  %4106 = vst [vmem:[#allocation25_spill] sm:$0xff] %v3171_v28  ;;  %v1777_v51 = vmul.f32 %v4107_v13, %v1142_v57  ;;  %v1801_v16 = vperm.slane %v3151_v40, 0 }
 0x1a5   : > { %604 = vst.msk [vmem:[#allocation3 + $0x48] sm:$0xff] %vm333_vm4, %v599_v18  ;;  %v1470_v25 = vperm.slane %v3140_v20, 0  ;;  %v1888_v12 = vperm.slane %v1886_v60, 0  ;;  %v1479_v18 = vld [vmem:[#allocation3 + $0x40] sm:$0xff]  ;;  %v1246_v57 = vperm.slane %v3160_v50, 0  ;;  %v1891_v53 = vmul.f32 %v3171_v28, %v3110_v2 }
 0x1a6   : > { %v1145_v56 = vadd.f32 %v1144_v58, %v3011_v21  ;;  %v1462_v36 = vadd.f32 %v1461_v26, %v3013_v62  ;;  %v3194_v32 = vmul.f32 %v1480_v24, %v1479_v18  ;;  %vm1854_vm14 = vcmp.eq.s32.totalorder %v3056_v9, 4294967294 }
 0x1a7   : > { %v3199_v21 = vmul.f32 %v1572_v27, %v1479_v18  ;;  %v3202_v6 = vadd.f32 %v1233_v23, %v1232_v55  ;;  %v3204_v3 = vadd.f32 %v1545_v42, %v1544_v22  ;;  %v1853_v24 = vsel %vm1851_vm11, %v3069_v19, 0.0  ;;  %v1309_v19 = vld [vmem:[%s2738_s8 + $0x5] sm:$0x1] }
 0x1a8   : > { %v3209_v58 = vmul.f32 %v1796_v39, %v1479_v18  ;;  %v1560_v26 = vmul.f32 %v3116_v33, %v3178_v5  ;;  %v1855_v13 = vsel %vm1854_vm14, %v3054_v63, 0.0  ;;  %v3218_v55 = vmul.f32 %v3019_v10, %v2941_v29  ;;  %v1308_v39 = vld [vmem:[%s2738_s8 + $0x4] sm:$0x1] }
 0x1a9   : > { %4108 = vst [vmem:[#allocation26_spill] sm:$0xff] %v3202_v6  ;;  %v3222_v9 = vmul.f32 %v3078_v48, %v2943_v30  ;;  %vm1127_vm11 = vcmp.eq.s32.totalorder %v2760_v49, 1  ;;  %v3227_v23 = vmul.f32 %v1888_v12, %v1479_v18  ;;  %v1893_v63 = vperm.slane %v1891_v53, 0 }
 0x1aa   : > { %v1464_v40 = vld [vmem:[#allocation3 + $0x18] sm:$0xff]  ;;  %v421_v31 = vpop.f32.mrf.mxu3  ;;  %v509_v37 = vpop.f32.mrf.mxu2  ;;  %4109 = vst [vmem:[#allocation27_spill] sm:$0xff] %v3204_v3  ;;  %v3229_v22 = vadd.f32 %v1855_v13, %v1853_v24  ;;  %v3237_v10 = vmul.f32 %v3204_v3, %v3116_v33  ;;  %v1129_v48 = vsel %vm1119_vm9, %v2757_v47, 0.0  ;;  %v1310_v18 = vfloor.f32 %v1308_v39 }
 0x1ab   : > { %514 = vst.msk [vmem:[#allocation3 + $0x30] sm:$0xff] %vm333_vm4, %v509_v37  ;;  %v1782_v62 = vmul.f32 %v1781_v52, %v1464_v40  ;;  %v4110_v31 = vperm.slane %v3003_v1, 0  ;;  %v1150_v52 = vadd.f32 %v1149_v44, %v1145_v56  ;;  %v3233_v1 = vmul.f32 %v3202_v6, %v3017_v38 }
 0x1ac   : > { %v601_v27 = vpop.f32.mrf.mxu1  ;;  %4111 = vst [vmem:[#allocation28_spill] sm:$0xff] %v3229_v22  ;;  %v1800_v12 = vld [vmem:[#allocation3 + $0x48] sm:$0xff]  ;;  %v1128_v56 = vsel %vm1127_vm11, %v2770_v54, 0.0  ;;  %v1313_v42 = vfloor.f32 %v1309_v19  ;;  %v1562_v53 = vperm.slane %v1560_v26, 0  ;;  %v1475_v38 = vperm.slane %v3218_v55, 0 }
 0x1ad   : > { %v1466_v37 = vmul.f32 %v4110_v31, %v1464_v40  ;;  %v1783_v44 = vadd.f32 %v1782_v62, %v1777_v51  ;;  %v3248_v49 = vmul.f32 %v3110_v2, %v3229_v22  ;;  %v1228_v47 = vsel %vm1227_vm12, %v2970_v41, 0.0 }
 0x1ae   : > { %v1229_v54 = vsel %vm1216_vm1, %v2950_v15, 0.0  ;;  %v3256_v51 = vsub.f32 %v1309_v19, %v1313_v42  ;;  %v3258_v62 = vmul.f32 %v1801_v16, %v1800_v12  ;;  %v3260_v26 = vmul.f32 %v1893_v63, %v1800_v12 }
 0x1af   : > { %v1467_v40 = vadd.f32 %v1466_v37, %v1462_v36  ;;  %v3263_v27 = vadd.f32 %v1129_v48, %v1128_v56  ;;  %v3265_v2 = vsub.f32 %v1308_v39, %v1310_v18  ;;  %v1251_v31 = vperm.slane %v3233_v1, 0 }
 0x1b0   : > { %4112 = vst [vmem:[#allocation29_spill] sm:$0xff] %v3256_v51  ;;  %v1567_v37 = vperm.slane %v3237_v10, 0  ;;  %v3270_v55 = vadd.f32 %v3040_v46, %v1783_v44  ;;  %v3279_v63 = vadd.f32 %v1229_v54, %v1228_v47  ;;  %v3281_v39 = vcvt.f32.s32 %v1310_v18  ;;  %v4114_v44 = vld [vmem:[#allocation17_spill] sm:$0xff]  ;;  %v4115_v54 = vld [vmem:[#allocation7_spill] sm:$0xff] }
 0x1b1   : > { %v3277_v16 = vmul.f32 %v3263_v27, %v2910_v59  ;;  %vm1449_vm9 = vcmp.eq.s32.totalorder %v2803_v8, 1  ;;  %v1883_v1 = vperm.slane %v3248_v49, 0  ;;  %v3288_v10 = vsub.f32 1.0, %v3256_v51 }
 0x1b2   : > { %v511_v33 = vpop.f32.mrf.mxu2  ;;  %v539_v13 = vpop.f32.mrf.mxu3  ;;  %v1152_v36 = vld [vmem:[#allocation3 + $0x30] sm:$0xff]  ;;  %v1451_v59 = vsel %vm1440_vm13, %v2801_v7, 0.0  ;;  %v3294_v48 = vsub.f32 1.0, %v3265_v2  ;;  %vm1338_vm0 = vcmp.eq.s32.totalorder %v3281_v39, 1  ;;  %vm1329_vm2 = vcmp.eq.s32.totalorder %v3281_v39, 0 }
 0x1b3   : > { %544 = vst.msk [vmem:[#allocation3 + $0x38] sm:$0xff] %vm333_vm4, %v539_v13  ;;  %v3272_v33 = vcvt.f32.s32 %v1313_v42  ;;  %v1154_v46 = vmul.f32 %v1153_v35, %v1152_v36  ;;  %v1247_v45 = vmul.f32 %v1246_v57, %v1152_v36  ;;  %v1471_v35 = vmul.f32 %v1470_v25, %v1152_v36  ;;  %v1629_v7 = vld [vmem:[%s2738_s8 + $0xa] sm:$0x1]  ;;  %v1630_v57 = vld [vmem:[%s2738_s8 + $0xb] sm:$0x1] }
 0x1b4   : > { %v689_v19 = vpop.f32.mrf.mxu0  ;;  %4113 = vst [vmem:[#allocation30_spill] sm:$0xff] %v3288_v10  ;;  %vm1547_vm5 = vcmp.eq.s32.totalorder %v4114_v44, 0  ;;  %v1563_v12 = vmul.f32 %v1562_v53, %v1152_v36  ;;  %v3308_v56 = vmul.f32 %v3202_v6, %v3279_v63  ;;  %v1339_v18 = vsel %vm1338_vm0, %v3294_v48, 0.0 }
 0x1b5   : > { %694 = vst.msk [vmem:[#allocation3 + $0x60] sm:$0xff] %vm333_vm4, %v689_v19  ;;  %vm1323_vm1 = vcmp.eq.s32.totalorder %v3272_v33, 4294967295  ;;  %vm1326_vm10 = vcmp.eq.s32.totalorder %v3272_v33, 4294967294  ;;  %v1340_v50 = vsel %vm1329_vm2, %v3265_v2, 0.0  ;;  %v1155_v42 = vadd.f32 %v1154_v46, %v1150_v52  ;;  %v4116_v19 = vld [vmem:[#allocation20_spill] sm:$0xff]  ;;  %v4117_v46 = vld [vmem:[#allocation19_spill] sm:$0xff] }
 0x1b6   : > { %v1173_v25 = vperm.slane %v3277_v16, 0  ;;  %v1325_v13 = vsel %vm1323_vm1, %v3288_v10, 0.0  ;;  %v1327_v53 = vsel %vm1326_vm10, %v3256_v51, 0.0  ;;  %v1450_v36 = vsel %vm1449_vm9, %v4115_v54, 0.0 }
 0x1b7   : > { %v1548_v52 = vsel %vm1547_vm5, %v4116_v19, 0.0  ;;  %v1549_v16 = vsel %vm1537_vm3, %v4117_v46, 0.0  ;;  %v1631_v24 = vfloor.f32 %v1629_v7  ;;  %v1248_v60 = vadd.f32 %v1247_v45, %v3153_v4 }
 0x1b8   : > { %v1472_v11 = vadd.f32 %v1471_v35, %v1467_v40  ;;  %v1634_v6 = vfloor.f32 %v1630_v57  ;;  %v4119_v54 = vperm.slane %v3165_v61, 0  ;;  %v1266_v10 = vperm.slane %v3308_v56, 0  ;;  %v4121_v61 = vld [vmem:[#allocation8_spill] sm:$0xff] }
 0x1b9   : > { %v3339_v44 = vadd.f32 %v1327_v53, %v1325_v13  ;;  %v3343_v4 = vadd.f32 %v1549_v16, %v1548_v52  ;;  %v4120_v40 = vperm.slane %v3222_v9, 0  ;;  %vm1770_vm13 = vcmp.eq.s32.totalorder %v4121_v61, 1  ;;  %v4126_v16 = vld [vmem:[#allocation21_spill] sm:$0xff] }
 0x1ba   : > { %v1157_v20 = vld [vmem:[#allocation3 + $0x38] sm:$0xff]  ;;  %v541_v49 = vpop.f32.mrf.mxu3  ;;  %v629_v47 = vpop.f32.mrf.mxu2  ;;  %vm1316_vm0 = vcmp.eq.s32.totalorder %v3281_v39, 4294967295 }
 0x1bb   : > { %634 = vst.msk [vmem:[#allocation3 + $0x50] sm:$0xff] %vm333_vm4, %v629_v47  ;;  %v3333_v49 = vadd.f32 %v1340_v50, %v1339_v18  ;;  %v1159_v43 = vmul.f32 %v4119_v54, %v1157_v20  ;;  %v1252_v51 = vmul.f32 %v1251_v31, %v1157_v20  ;;  %v1476_v19 = vmul.f32 %v1475_v38, %v1157_v20 }
 0x1bc   : > { %v719_v28 = vpop.f32.mrf.mxu1  ;;  %v691_v8 = vpop.f32.mrf.mxu0  ;;  %v1568_v46 = vmul.f32 %v1567_v37, %v1157_v20  ;;  %v3341_v47 = vadd.f32 %v1451_v59, %v1450_v36  ;;  %v1792_v45 = vmul.f32 %v4120_v40, %v1157_v20  ;;  %v1884_v35 = vmul.f32 %v1883_v1, %v1157_v20  ;;  %v1951_v20 = vld [vmem:[%s2738_s8 + $0x11] sm:$0x1] }
 0x1bd   : > { %4118 = vst [vmem:[#allocation7_spill] sm:$0xff] %v3333_v49  ;;  %v3347_v18 = vsub.f32 %v1629_v7, %v1631_v24  ;;  %v3352_v38 = vmul.f32 %v3333_v49, %v3339_v44  ;;  %v3356_v31 = vsub.f32 %v1630_v57, %v1634_v6  ;;  %v3358_v37 = vcvt.f32.s32 %v1634_v6  ;;  %v4123_v57 = vld [vmem:[#allocation10_spill] sm:$0xff]  ;;  %v4137_v49 = vld [vmem:[#allocation15_spill] sm:$0xff] }
 0x1be   : > { %724 = vst.msk [vmem:[#allocation3 + $0x68] sm:$0xff] %vm333_vm4, %v719_v28  ;;  %v3354_v28 = vcvt.f32.s32 %v1631_v24  ;;  %v3360_v59 = vadd.f32 %v1159_v43, %v1155_v42  ;;  %v3362_v9 = vadd.f32 %v1252_v51, %v1248_v60  ;;  %v3364_v1 = vadd.f32 %v1476_v19, %v1472_v11  ;;  %v3381_v51 = vld [vmem:[#allocation3 + $0x60] sm:$0xff] }
 0x1bf   : > { %4122 = vst [vmem:[#allocation8_spill] sm:$0xff] %v3356_v31  ;;  %v3368_v7 = vmul.f32 %v3341_v47, %v2941_v29  ;;  %v3370_v56 = vadd.f32 %v1568_v46, %v1563_v12  ;;  %vm1644_vm3 = vcmp.eq.s32.totalorder %v3358_v37, 4294967295  ;;  %v3374_v24 = vsub.f32 1.0, %v3356_v31  ;;  %v1950_v12 = vld [vmem:[%s2738_s8 + $0x10] sm:$0x1]  ;;  %v4125_v46 = vld [vmem:[#allocation22_spill] sm:$0xff] }
 0x1c0   : > { %vm1647_vm15 = vcmp.eq.s32.totalorder %v3358_v37, 4294967294  ;;  %v1793_v60 = vadd.f32 %v1792_v45, %v3270_v55  ;;  %v3379_v11 = vadd.f32 %v3227_v23, %v1884_v35  ;;  %v3384_v29 = vsub.f32 1.0, %v3347_v18  ;;  %v4124_v55 = vld [vmem:[#allocation6_spill] sm:$0xff]  ;;  %v4128_v35 = vld [vmem:[#allocation23_spill] sm:$0xff] }
 0x1c1   : > { %vm1650_vm8 = vcmp.eq.s32.totalorder %v3354_v28, 0  ;;  %v3390_v50 = vmul.f32 %v1173_v25, %v3381_v51  ;;  %vm1637_vm14 = vcmp.eq.s32.totalorder %v3354_v28, 4294967295  ;;  %v1771_v23 = vsel %vm1770_vm13, %v4123_v57, 0.0 }
 0x1c2   : > { %v631_v43 = vpop.f32.mrf.mxu2  ;;  %v659_v6 = vpop.f32.mrf.mxu3  ;;  %v1772_v42 = vsel %vm1761_vm6, %v4124_v55, 0.0  ;;  %v1646_v53 = vsel %vm1644_vm3, %v3374_v24, 0.0  ;;  %v1648_v25 = vsel %vm1647_vm15, %v3356_v31, 0.0  ;;  %v1651_v36 = vsel %vm1650_vm8, %v3384_v29, 0.0 }
 0x1c3   : > { %664 = vst.msk [vmem:[#allocation3 + $0x58] sm:$0xff] %vm333_vm4, %v659_v6  ;;  %v1652_v19 = vsel %vm1637_vm14, %v3347_v18, 0.0  ;;  %v3412_v52 = vadd.f32 %v1772_v42, %v1771_v23  ;;  %vm1868_vm6 = vcmp.eq.s32.totalorder %v4125_v46, 0  ;;  %v1870_v8 = vsel %vm1857_vm7, %v4126_v16, 0.0 }
 0x1c4   : > { %v721_v13 = vpop.f32.mrf.mxu1  ;;  %v1952_v54 = vfloor.f32 %v1950_v12  ;;  %v3419_v40 = vmul.f32 %v1266_v10, %v3381_v51  ;;  %v1358_v45 = vperm.slane %v3352_v38, 0  ;;  %v1869_v61 = vsel %vm1868_vm6, %v4128_v35, 0.0  ;;  %v809_v6 = vpop.f32.mrf.mxu0 }
 0x1c5   : > { %v1955_v43 = vfloor.f32 %v1951_v20  ;;  %v1490_v57 = vperm.slane %v3368_v7, 0  ;;  %v3426_v23 = vadd.f32 %v1870_v8, %v1869_v61  ;;  %814 = vst.msk [vmem:[#allocation3 + $0x80] sm:$0xff] %vm333_vm4, %v809_v6  ;;  %v3433_v10 = vadd.f32 %v1648_v25, %v1646_v53 }
 0x1c6   : > { %4127 = vst [vmem:[#allocation10_spill] sm:$0xff] %v3419_v40  ;;  %v3428_v55 = vsub.f32 %v1950_v12, %v1952_v54  ;;  %v3430_v42 = vcvt.f32.s32 %v1952_v54  ;;  %v3435_v13 = vadd.f32 %v1652_v19, %v1651_v36  ;;  %v1580_v16 = vmul.f32 %v3343_v4, %v3204_v3 }
 0x1c7   : > { %v3437_v38 = vsub.f32 %v1951_v20, %v1955_v43  ;;  %v3439_v40 = vcvt.f32.s32 %v1955_v43  ;;  %v1804_v7 = vmul.f32 %v3412_v52, %v2943_v30  ;;  %v4132_v20 = vld [vmem:[#allocation5_spill] sm:$0xff]  ;;  %v1896_v36 = vmul.f32 %v3426_v23, %v3229_v22  ;;  %v4136_v22 = vld [vmem:[#allocation18_spill] sm:$0xff] }
 0x1c8   : > { %4129 = vst [vmem:[#allocation6_spill] sm:$0xff] %v3435_v13  ;;  %v3446_v12 = vsub.f32 1.0, %v3428_v55  ;;  %vm1961_vm7 = vcmp.eq.s32.totalorder %v3430_v42, 4294967294  ;;  %vm1958_vm11 = vcmp.eq.s32.totalorder %v3430_v42, 4294967295  ;;  %v1161_v25 = vmul.f32 %v3263_v27, %v4132_v20 }
 0x1c9   : > { %4130 = vst [vmem:[#allocation31_spill] sm:$0xff] %v3437_v38  ;;  %v1962_v53 = vsel %vm1961_vm7, %v3428_v55, 0.0  ;;  %vm1964_vm9 = vcmp.eq.s32.totalorder %v3439_v40, 4294967295  ;;  %v3460_v19 = vsub.f32 1.0, %v3437_v38  ;;  %vm1967_vm10 = vcmp.eq.s32.totalorder %v3439_v40, 4294967294 }
 0x1ca   : > { %4131 = vst [vmem:[#allocation32_spill] sm:$0xff] %v3439_v40  ;;  %v661_v8 = vpop.f32.mrf.mxu3  ;;  %v1960_v30 = vsel %vm1958_vm11, %v3446_v12, 0.0  ;;  %v1798_v54 = vadd.f32 %v3209_v58, %v1793_v60  ;;  %v3465_v61 = vmul.f32 %v1358_v45, %v3381_v51  ;;  %v1672_v43 = vmul.f32 %v3435_v13, %v3433_v10  ;;  %v749_v58 = vpop.f32.mrf.mxu2 }
 0x1cb   : > { %4133 = vst [vmem:[#allocation5_spill] sm:$0xff] %v3460_v19  ;;  %v1968_v6 = vsel %vm1967_vm10, %v3437_v38, 0.0  ;;  %v3470_v8 = vadd.f32 %v1962_v53, %v1960_v30  ;;  %v1966_v20 = vsel %vm1964_vm9, %v3460_v19, 0.0  ;;  %v1254_v35 = vmul.f32 %v3279_v63, %v4136_v22 }
 0x1cc   : > { %4134 = vst [vmem:[#allocation33_spill] sm:$0xff] %v3465_v61  ;;  %v1806_v60 = vperm.slane %v1804_v7, 0  ;;  %v3478_v45 = vadd.f32 %v1968_v6, %v1966_v20  ;;  %v1318_v61 = vsel %vm1316_vm0, %v3294_v48, 0.0  ;;  %vm1319_vm13 = vcmp.eq.s32.totalorder %v3281_v39, 4294967294  ;;  %v811_v53 = vpop.f32.mrf.mxu0  ;;  %v1162_v7 = vld [vmem:[#allocation3 + $0x50] sm:$0xff] }
 0x1cd   : > { %4135 = vst [vmem:[#allocation34_spill] sm:$0xff] %v3470_v8  ;;  %v1582_v30 = vperm.slane %v1580_v16, 0  ;;  %v1898_v38 = vperm.slane %v1896_v36, 0  ;;  %v1163_v19 = vperm.slane %v1161_v25, 0  ;;  %v1320_v22 = vsel %vm1319_vm13, %v3265_v2, 0.0  ;;  %v4138_v36 = vld [vmem:[#allocation4_spill] sm:$0xff] }
 0x1ce   : > { %754 = vst.msk [vmem:[#allocation3 + $0x70] sm:$0xff] %vm333_vm4, %v749_v58  ;;  %v1674_v13 = vperm.slane %v1672_v43, 0  ;;  %v1803_v40 = vadd.f32 %v3258_v62, %v1798_v54  ;;  %v1256_v6 = vperm.slane %v1254_v35, 0  ;;  %v1321_v20 = vadd.f32 %v1320_v22, %v1318_v61  ;;  %v4139_v62 = vld [vmem:[#allocation24_spill] sm:$0xff]  ;;  %v839_v54 = vpop.f32.mrf.mxu1 }
 0x1cf   : > { %v1988_v46 = vmul.f32 %v3478_v45, %v3470_v8  ;;  %v1493_v3 = vmul.f32 %v3341_v47, %v4137_v49  ;;  %vm1658_vm15 = vcmp.eq.s32.totalorder %v3354_v28, 1  ;;  %v1660_v16 = vsel %vm1650_vm8, %v3347_v18, 0.0  ;;  %844 = vst.msk [vmem:[#allocation3 + $0x88] sm:$0xff] %vm333_vm4, %v839_v54  ;;  %v4141_v8 = vld [vmem:[#allocation16_spill] sm:$0xff] }
 0x1d0   : > { %v1807_v25 = vmul.f32 %v1806_v60, %v3381_v51  ;;  %v3497_v43 = vmul.f32 %v4138_v36, %v1321_v20  ;;  %v1585_v22 = vmul.f32 %v4139_v62, %v3343_v4  ;;  %v1659_v35 = vsel %vm1658_vm15, %v3384_v29, 0.0 }
 0x1d1   : > { %v1895_v49 = vadd.f32 %v3260_v26, %v3379_v11  ;;  %v1899_v61 = vmul.f32 %v1898_v38, %v3381_v51  ;;  %v1164_v58 = vmul.f32 %v1163_v19, %v1162_v7  ;;  %v1661_v53 = vadd.f32 %v1660_v16, %v1659_v35  ;;  %v4142_v35 = vld [vmem:[#allocation9_spill] sm:$0xff] }
 0x1d2   : > { %v3507_v60 = vmul.f32 %v1490_v57, %v3381_v51  ;;  %v3510_v20 = vmul.f32 %v1582_v30, %v3381_v51  ;;  %v3513_v36 = vmul.f32 %v1674_v13, %v3381_v51  ;;  %v1809_v62 = vmul.f32 %v3412_v52, %v4141_v8  ;;  %v751_v38 = vpop.f32.mrf.mxu2 }
 0x1d3   : > { %v1990_v31 = vperm.slane %v1988_v46, 0  ;;  %v1257_v26 = vmul.f32 %v1256_v6, %v1162_v7  ;;  %v1495_v11 = vperm.slane %v1493_v3, 0  ;;  %vm1970_vm8 = vcmp.eq.s32.totalorder %v3430_v42, 0  ;;  %v3530_v46 = vld [vmem:[#allocation3 + $0x58] sm:$0xff] }
 0x1d4   : > { %4140 = vst [vmem:[#allocation15_spill] sm:$0xff] %v3513_v36  ;;  %v1808_v19 = vadd.f32 %v1807_v25, %v1803_v40  ;;  %v1346_v57 = vmul.f32 %v3339_v44, %v3497_v43  ;;  %v1587_v16 = vperm.slane %v1585_v22, 0  ;;  %v1166_v30 = vmul.f32 %v3263_v27, %v4142_v35  ;;  %v4143_v36 = vld [vmem:[#allocation14_spill] sm:$0xff]  ;;  %v3532_v40 = vld [vmem:[#allocation3 + $0x68] sm:$0xff] }
 0x1d5   : > { %v3522_v54 = vadd.f32 %v1899_v61, %v1895_v49  ;;  %v1165_v13 = vadd.f32 %v1164_v58, %v3360_v59  ;;  %v3526_v8 = vmul.f32 %v4143_v36, %v1661_v53  ;;  %v1901_v3 = vmul.f32 %v3426_v23, %v3113_v14 }
 0x1d6   : > { %v1811_v6 = vperm.slane %v1809_v62, 0  ;;  %v1971_v25 = vsel %vm1970_vm8, %v3446_v12, 0.0  ;;  %v1972_v27 = vsel %vm1958_vm11, %v3428_v55, 0.0  ;;  %v1168_v59 = vperm.slane %v1166_v30, 0 }
 0x1d7   : > { %v3541_v22 = vmul.f32 %v1990_v31, %v3381_v51  ;;  %v3544_v49 = vadd.f32 %v1257_v26, %v3362_v9  ;;  %v3547_v61 = vmul.f32 %v1495_v11, %v3532_v40  ;;  %v1330_v62 = vsel %vm1329_vm2, %v3294_v48, 0.0  ;;  %v841_v51 = vpop.f32.mrf.mxu1 }
 0x1d8   : > { %v1348_v58 = vperm.slane %v1346_v57, 0  ;;  %v3553_v53 = vmul.f32 %v1587_v16, %v3532_v40  ;;  %v1169_v38 = vmul.f32 %v1168_v59, %v3530_v46  ;;  %v1331_v31 = vsel %vm1316_vm0, %v3265_v2, 0.0  ;;  %v4144_v16 = vld [vmem:[#allocation12_spill] sm:$0xff] }
 0x1d9   : > { %v3561_v9 = vmul.f32 %v3526_v8, %v3433_v10  ;;  %v1903_v26 = vperm.slane %v1901_v3, 0  ;;  %v1973_v11 = vadd.f32 %v1972_v27, %v1971_v25  ;;  %v1332_v35 = vadd.f32 %v1331_v31, %v1330_v62 }
 0x1da   : > { %v1812_v48 = vmul.f32 %v1811_v6, %v3532_v40  ;;  %v1170_v57 = vadd.f32 %v1169_v38, %v1165_v13  ;;  %vm1192_vm2 = vcmask 516096   ;;  %v1483_v30 = vmul.f32 %v3341_v47, %v4144_v16 }
 0x1db   : > { %v3569_v39 = vmul.f32 %v3279_v63, %v3128_v0  ;;  %v3572_v2 = vmul.f32 %v2820_v17, %v1332_v35  ;;  %v1575_v3 = vmul.f32 %v3343_v4, %v3178_v5  ;;  %v1639_v25 = vsel %vm1637_vm14, %v3384_v29, 0.0 }
 0x1dc   : > { %v3579_v6 = vmul.f32 %v1348_v58, %v1162_v7  ;;  %v1175_v13 = vadd.f32 %v3390_v50, %v1170_v57  ;;  %v1485_v27 = vperm.slane %v1483_v30, 0  ;;  %vm1640_vm7 = vcmp.eq.s32.totalorder %v3354_v28, 4294967294  ;;  %v779_v7 = vpop.f32.mrf.mxu3 }
 0x1dd   : > { %v3589_v63 = vmul.f32 %v1903_v26, %v3532_v40  ;;  %v3592_v47 = vmul.f32 %v4143_v36, %v1973_v11  ;;  %v1577_v4 = vperm.slane %v1575_v3, 0  ;;  %v1641_v29 = vsel %vm1640_vm7, %v3347_v18, 0.0  ;;  %784 = vst.msk [vmem:[#allocation3 + $0x78] sm:$0xff] %vm333_vm4, %v779_v7  ;;  %v4145_v3 = vld [vmem:[#allocation30_spill] sm:$0xff] }
 0x1de   : > { %v1176_v50 = vmul.f32 0.5, %v1175_v13  ;;  %v1486_v59 = vmul.f32 %v1485_v27, %v3530_v46  ;;  %v1642_v28 = vadd.f32 %v1641_v29, %v1639_v25  ;;  %vm1235_vm14 = vcmp.eq.s32.totalorder %v2952_v34, 1  ;;  %v4147_v13 = vld [vmem:[#allocation17_spill] sm:$0xff]  ;;  %v4148_v27 = vld [vmem:[#allocation19_spill] sm:$0xff] }
 0x1df   : > { %v1679_v62 = vperm.slane %v3561_v9, 0  ;;  %v3599_v58 = vadd.f32 %v1812_v48, %v1808_v19  ;;  %v1261_v36 = vperm.slane %v3569_v39, 0  ;;  %v1351_v38 = vmul.f32 %v3572_v2, %v3339_v44 }
 0x1e0   : > { %v1178_v18 = vrot.slane %v1176_v50, 1  ;;  %v1179_v31 = vrot.slane %v1176_v50, 2  ;;  %v1180_v51 = vrot.slane %v1176_v50, 3  ;;  %1193 = vst.msk [vmem:[%s3586_s11] sm:$0x1] %vm1192_vm2, %v1176_v50  ;;  %v1482_v26 = vadd.f32 %v3194_v32, %v3364_v1 }
 0x1e1   : > { %v3610_v11 = vmul.f32 %v3592_v47, %v3478_v45  ;;  %v1181_v19 = vrot.slane %v1176_v50, 4  ;;  %v1578_v9 = vmul.f32 %v1577_v4, %v3530_v46  ;;  %v1236_v35 = vsel %vm1235_vm14, %v2970_v41, 0.0  ;;  %v929_v41 = vpop.f32.mrf.mxu0  ;;  %v869_v4 = vpop.f32.mrf.mxu2 }
 0x1e2   : > { %v1182_v44 = vrot.slane %v1176_v50, 5  ;;  %1194 = vst.msk [vmem:[%s3586_s11 + $0x10] sm:$0x1] %vm1192_vm2, %v1178_v18  ;;  %v1487_v48 = vadd.f32 %v1486_v59, %v1482_v26  ;;  %v3617_v57 = vmul.f32 %v2820_v17, %v1642_v28  ;;  %v1237_v32 = vsel %vm1227_vm12, %v2950_v15, 0.0  ;;  %v4149_v59 = vld [vmem:[#allocation20_spill] sm:$0xff] }
 0x1e3   : > { %v1183_v1 = vrot.slane %v1176_v50, 6  ;;  %1195 = vst.msk [vmem:[%s3586_s11 + $0x20] sm:$0x1] %vm1192_vm2, %v1179_v31  ;;  %v1353_v16 = vperm.slane %v1351_v38, 0  ;;  %v1574_v30 = vadd.f32 %v3199_v21, %v3370_v56  ;;  %vm1334_vm11 = vcmp.eq.s32.totalorder %v3272_v33, 0  ;;  %v4146_v56 = vld [vmem:[#allocation29_spill] sm:$0xff] }
 0x1e4   : > { %v1184_v39 = vrot.slane %v1176_v50, 7  ;;  %1196 = vst.msk [vmem:[%s3586_s11 + $0x30] sm:$0x1] %vm1192_vm2, %v1180_v51  ;;  %v1492_v17 = vadd.f32 %v3507_v60, %v1487_v48  ;;  %v1667_v15 = vmul.f32 %v3433_v10, %v3617_v57  ;;  %v3632_v34 = vadd.f32 %v1237_v32, %v1236_v35  ;;  %v781_v10 = vpop.f32.mrf.mxu3 }
 0x1e5   : > { %1197 = vst.msk [vmem:[%s3586_s11 + $0x40] sm:$0x1] %vm1192_vm2, %v1181_v19  ;;  %v1335_v21 = vsel %vm1334_vm11, %v4145_v3, 0.0  ;;  %v1336_v25 = vsel %vm1323_vm1, %v4146_v56, 0.0  ;;  %vm1556_vm12 = vcmp.eq.s32.totalorder %v4147_v13, 1  ;;  %v1558_v60 = vsel %vm1547_vm5, %v4148_v27, 0.0 }
 0x1e6   : > { %v3647_v29 = vmul.f32 %v1679_v62, %v3532_v40  ;;  %1198 = vst.msk [vmem:[%s3586_s11 + $0x50] sm:$0x1] %vm1192_vm2, %v1182_v44  ;;  %v1497_v7 = vadd.f32 %v3547_v61, %v1492_v17  ;;  %v1579_v50 = vadd.f32 %v1578_v9, %v1574_v30  ;;  %v1557_v28 = vsel %vm1556_vm12, %v4149_v59, 0.0  ;;  %v3662_v62 = vpop.f32.mrf.mxu1  ;;  %v4150_v19 = vld [vmem:[#allocation8_spill] sm:$0xff]  ;;  %v4151_v13 = vld [vmem:[#allocation13_spill] sm:$0xff] }
 0x1e7   : > { %1199 = vst.msk [vmem:[%s3586_s11 + $0x60] sm:$0x1] %vm1192_vm2, %v1183_v1  ;;  %v1669_v38 = vperm.slane %v1667_v15, 0  ;;  %v3657_v18 = vmul.f32 %v3632_v34, %v3128_v0  ;;  %v3659_v31 = vadd.f32 %v1558_v60, %v1557_v28  ;;  %vm1654_vm1 = vcmp.eq.s32.totalorder %v3358_v37, 0  ;;  %v1275_v15 = vld [vmem:[#allocation3 + $0x80] sm:$0xff]  ;;  %v4152_v60 = vld [vmem:[#allocation25_spill] sm:$0xff] }
 0x1e8   : > { %1200 = vst.msk [vmem:[%s3586_s11 + $0x70] sm:$0x1] %vm1192_vm2, %v1184_v39  ;;  %v1498_v61 = vmul.f32 0.5, %v1497_v7  ;;  %v3666_v51 = vadd.f32 %v1336_v25, %v1335_v21  ;;  %v1655_v26 = vsel %vm1654_vm1, %v3374_v24, 0.0  ;;  %v1656_v0 = vsel %vm1644_vm3, %v4150_v19, 0.0 }
 0x1e9   : > { %v1995_v9 = vperm.slane %v3610_v11, 0  ;;  %v1262_v35 = vmul.f32 %v1261_v36, %v3530_v46  ;;  %v1354_v44 = vmul.f32 %v1353_v16, %v3530_v46  ;;  %v1590_v48 = vmul.f32 %v3659_v31, %v3178_v5  ;;  %934 = vst.msk [vmem:[#allocation3 + $0xa0] sm:$0xff] %vm333_vm4, %v929_v41  ;;  %v931_v5 = vpop.f32.mrf.mxu0  ;;  %v871_v7 = vpop.f32.mrf.mxu2 }
 0x1ea   : > { %v1500_v32 = vrot.slane %v1498_v61, 1  ;;  %v1501_v1 = vrot.slane %v1498_v61, 2  ;;  %v1502_v30 = vrot.slane %v1498_v61, 3  ;;  %1514 = vst.msk [vmem:[%s3586_s11 + $0x3] sm:$0x1] %vm1192_vm2, %v1498_v61  ;;  %v1366_v39 = vmul.f32 %v3666_v51, %v3572_v2  ;;  %v4156_v5 = vld [vmem:[#allocation7_spill] sm:$0xff] }
 0x1eb   : > { %v1503_v11 = vrot.slane %v1498_v61, 4  ;;  %v1584_v36 = vadd.f32 %v3510_v20, %v1579_v50  ;;  %v1670_v17 = vmul.f32 %v1669_v38, %v3530_v46  ;;  %v3686_v16 = vadd.f32 %v1656_v0, %v1655_v26  ;;  %874 = vst.msk [vmem:[#allocation3 + $0x90] sm:$0xff] %vm333_vm4, %v869_v4  ;;  %v3696_v46 = vld [vmem:[#allocation3 + $0x70] sm:$0xff] }
 0x1ec   : > { %v1504_v41 = vrot.slane %v1498_v61, 5  ;;  %1515 = vst.msk [vmem:[%s3586_s11 + $0x13] sm:$0x1] %vm1192_vm2, %v1500_v32  ;;  %v1276_v21 = vperm.slane %v3657_v18, 0  ;;  %v1592_v25 = vperm.slane %v1590_v48, 0  ;;  %v1814_v27 = vmul.f32 %v3412_v52, %v4151_v13  ;;  %v899_v38 = vpop.f32.mrf.mxu3 }
 0x1ed   : > { %v1505_v20 = vrot.slane %v1498_v61, 6  ;;  %1516 = vst.msk [vmem:[%s3586_s11 + $0x23] sm:$0x1] %vm1192_vm2, %v1501_v1  ;;  %v1906_v10 = vmul.f32 %v4152_v60, %v3426_v23  ;;  %vm1979_vm5 = vcmp.eq.s32.totalorder %v3430_v42, 1  ;;  %v1981_v4 = vsel %vm1970_vm8, %v3428_v55, 0.0  ;;  %v4153_v23 = vld [vmem:[#allocation15_spill] sm:$0xff] }
 0x1ee   : > { %v1506_v50 = vrot.slane %v1498_v61, 7  ;;  %1517 = vst.msk [vmem:[%s3586_s11 + $0x33] sm:$0x1] %vm1192_vm2, %v1502_v30  ;;  %v1368_v52 = vperm.slane %v1366_v39, 0  ;;  %v1816_v59 = vperm.slane %v1814_v27, 0  ;;  %v1980_v28 = vsel %vm1979_vm5, %v3446_v12, 0.0  ;;  %v961_v61 = vpop.f32.mrf.mxu1 }
 0x1ef   : > { %1518 = vst.msk [vmem:[%s3586_s11 + $0x43] sm:$0x1] %vm1192_vm2, %v1503_v11  ;;  %v1676_v18 = vadd.f32 %v4153_v23, %v1670_v17  ;;  %v1589_v26 = vadd.f32 %v3553_v53, %v1584_v36  ;;  %v1593_v42 = vmul.f32 %v1592_v25, %v1275_v15  ;;  %v1682_v55 = vmul.f32 %v3686_v16, %v3617_v57  ;;  %v4154_v53 = vld [vmem:[#allocation26_spill] sm:$0xff]  ;;  %v4155_v11 = vld [vmem:[#allocation27_spill] sm:$0xff] }
 0x1f0   : > { %v1905_v0 = vadd.f32 %v3589_v63, %v3522_v54  ;;  %1519 = vst.msk [vmem:[%s3586_s11 + $0x53] sm:$0x1] %vm1192_vm2, %v1504_v41  ;;  %v1817_v12 = vmul.f32 %v1816_v59, %v3696_v46  ;;  %v1908_v48 = vperm.slane %v1906_v10, 0  ;;  %v1982_v32 = vadd.f32 %v1981_v4, %v1980_v28  ;;  %v4159_v27 = vld [vmem:[#allocation23_spill] sm:$0xff]  ;;  %v4160_v10 = vld [vmem:[#allocation21_spill] sm:$0xff] }
 0x1f1   : > { %v3719_v1 = vmul.f32 %v1995_v9, %v3532_v40  ;;  %v1263_v30 = vadd.f32 %v1262_v35, %v3544_v49  ;;  %1520 = vst.msk [vmem:[%s3586_s11 + $0x63] sm:$0x1] %vm1192_vm2, %v1505_v20  ;;  %v1279_v39 = vmul.f32 %v3632_v34, %v4154_v53  ;;  %v1595_v36 = vmul.f32 %v3659_v31, %v4155_v11  ;;  %v989_v28 = vpop.f32.mrf.mxu2 }
 0x1f2   : > { %v3729_v54 = vadd.f32 %v1354_v44, %v3579_v6  ;;  %1521 = vst.msk [vmem:[%s3586_s11 + $0x73] sm:$0x1] %vm1192_vm2, %v1506_v50  ;;  %v3733_v63 = vmul.f32 %v1276_v21, %v1275_v15  ;;  %v3735_v17 = vmul.f32 %v1368_v52, %v1275_v15  ;;  %v1818_v40 = vadd.f32 %v1817_v12, %v3599_v58  ;;  %v4157_v21 = vld [vmem:[#allocation11_spill] sm:$0xff]  ;;  %v4158_v58 = vld [vmem:[#allocation22_spill] sm:$0xff]  ;;  %v4161_v52 = vld [vmem:[#allocation32_spill] sm:$0xff] }
 0x1f3   : > { %v3738_v49 = vadd.f32 %v1593_v42, %v1589_v26  ;;  %v3741_v9 = vadd.f32 %v3647_v29, %v1676_v18  ;;  %v1684_v35 = vperm.slane %v1682_v55, 0  ;;  %v3745_v41 = vmul.f32 %v4156_v5, %v3666_v51  ;;  %964 = vst.msk [vmem:[#allocation3 + $0xa8] sm:$0xff] %vm333_vm4, %v3662_v62  ;;  %v3764_v18 = vld [vmem:[#allocation3 + $0x88] sm:$0xff]  ;;  %v4162_v42 = vld [vmem:[#allocation6_spill] sm:$0xff] }
 0x1f4   : > { %v1819_v6 = vmul.f32 0.5, %v1818_v40  ;;  %v1909_v44 = vmul.f32 %v1908_v48, %v3696_v46  ;;  %v3751_v25 = vmul.f32 %v4157_v21, %v1982_v32  ;;  %vm1877_vm3 = vcmp.eq.s32.totalorder %v4158_v58, 1  ;;  %904 = vst.msk [vmem:[#allocation3 + $0x98] sm:$0xff] %vm333_vm4, %v899_v38  ;;  %v901_v59 = vpop.f32.mrf.mxu3  ;;  %v1049_v32 = vpop.f32.mrf.mxu0  ;;  %v4166_v58 = vld [vmem:[#allocation28_spill] sm:$0xff] }
 0x1f5   : > { %v1281_v29 = vperm.slane %v1279_v39, 0  ;;  %v1597_v13 = vperm.slane %v1595_v36, 0  ;;  %v1878_v20 = vsel %vm1877_vm3, %v4159_v27, 0.0  ;;  %v1879_v4 = vsel %vm1868_vm6, %v4160_v10, 0.0  ;;  %994 = vst.msk [vmem:[#allocation3 + $0xb0] sm:$0xff] %vm333_vm4, %v989_v28  ;;  %v4163_v39 = vld [vmem:[#allocation5_spill] sm:$0xff] }
 0x1f6   : > { %v1821_v62 = vrot.slane %v1819_v6, 1  ;;  %v1822_v7 = vrot.slane %v1819_v6, 2  ;;  %v1823_v50 = vrot.slane %v1819_v6, 3  ;;  %1835 = vst.msk [vmem:[%s3586_s11 + $0x6] sm:$0x1] %vm1192_vm2, %v1819_v6  ;;  %vm1975_vm10 = vcmp.eq.s32.totalorder %v4161_v52, 0 }
 0x1f7   : > { %v3762_v38 = vmul.f32 %v1684_v35, %v1275_v15  ;;  %v1824_v23 = vrot.slane %v1819_v6, 4  ;;  %v1373_v26 = vperm.slane %v3745_v41, 0  ;;  %v3769_v55 = vmul.f32 %v3686_v16, %v4162_v42  ;;  %v4164_v36 = vld [vmem:[#allocation31_spill] sm:$0xff]  ;;  %1054 = vst.msk [vmem:[#allocation3 + $0xc0] sm:$0xff] %vm333_vm4, %v1049_v32 }
 0x1f8   : > { %v1825_v61 = vrot.slane %v1819_v6, 5  ;;  %1836 = vst.msk [vmem:[%s3586_s11 + $0x16] sm:$0x1] %vm1192_vm2, %v1821_v62  ;;  %v3774_v12 = vadd.f32 %v1909_v44, %v1905_v0  ;;  %v1998_v15 = vmul.f32 %v3751_v25, %v3478_v45  ;;  %v3778_v48 = vadd.f32 %v1879_v4, %v1878_v20  ;;  %v4165_v0 = vld [vmem:[#allocation18_spill] sm:$0xff]  ;;  %v1377_v41 = vld [vmem:[#allocation3 + $0xa0] sm:$0xff] }
 0x1f9   : > { %v1826_v53 = vrot.slane %v1819_v6, 6  ;;  %1837 = vst.msk [vmem:[%s3586_s11 + $0x26] sm:$0x1] %vm1192_vm2, %v1822_v7  ;;  %v1976_v11 = vsel %vm1975_vm10, %v4163_v39, 0.0  ;;  %v1977_v40 = vsel %vm1964_vm9, %v4164_v36, 0.0  ;;  %v1269_v35 = vmul.f32 %v3632_v34, %v4165_v0  ;;  %v1270_v20 = vld [vmem:[#allocation3 + $0x78] sm:$0xff] }
 0x1fa   : > { %v1827_v44 = vrot.slane %v1819_v6, 7  ;;  %1838 = vst.msk [vmem:[%s3586_s11 + $0x36] sm:$0x1] %vm1192_vm2, %v1823_v50  ;;  %v1282_v45 = vmul.f32 %v1281_v29, %v3764_v18  ;;  %v1598_v21 = vmul.f32 %v1597_v13, %v3764_v18  ;;  %v1911_v27 = vmul.f32 %v3778_v48, %v4166_v58  ;;  %v4167_v29 = vld [vmem:[#allocation10_spill] sm:$0xff]  ;;  %v4168_v7 = vld [vmem:[#allocation24_spill] sm:$0xff]  ;;  %v4169_v0 = vld [vmem:[#allocation33_spill] sm:$0xff] }
 0x1fb   : > { %1839 = vst.msk [vmem:[%s3586_s11 + $0x46] sm:$0x1] %vm1192_vm2, %v1824_v23  ;;  %v1271_v10 = vperm.slane %v1269_v35, 0  ;;  %v1361_v4 = vmul.f32 %v3666_v51, %v3497_v43  ;;  %vm1342_vm6 = vcmp.eq.s32.totalorder %v3272_v33, 1  ;;  %v1344_v34 = vsel %vm1334_vm11, %v4146_v56, 0.0  ;;  %v3816_v33 = vld [vmem:[#allocation3 + $0x90] sm:$0xff] }
 0x1fc   : > { %1840 = vst.msk [vmem:[%s3586_s11 + $0x56] sm:$0x1] %vm1192_vm2, %v1825_v61  ;;  %v3806_v6 = vadd.f32 %v1977_v40, %v1976_v11  ;;  %v1268_v13 = vadd.f32 %v4167_v29, %v1263_v30  ;;  %v1343_v62 = vsel %vm1342_vm6, %v4145_v3, 0.0  ;;  %v1600_v50 = vmul.f32 %v3659_v31, %v4168_v7  ;;  %v1019_v30 = vpop.f32.mrf.mxu3 }
 0x1fd   : > { %1841 = vst.msk [vmem:[%s3586_s11 + $0x66] sm:$0x1] %vm1192_vm2, %v1826_v53  ;;  %v1913_v51 = vperm.slane %v1911_v27, 0  ;;  %v1272_v59 = vmul.f32 %v1271_v10, %v1270_v20  ;;  %v1363_v28 = vperm.slane %v1361_v4, 0  ;;  %v3814_v23 = vadd.f32 %v1344_v34, %v1343_v62  ;;  %v991_v53 = vpop.f32.mrf.mxu2  ;;  %v4170_v10 = vld [vmem:[#allocation34_spill] sm:$0xff] }
 0x1fe   : > { %1842 = vst.msk [vmem:[%s3586_s11 + $0x76] sm:$0x1] %vm1192_vm2, %v1827_v44  ;;  %v1689_v56 = vperm.slane %v3769_v55, 0  ;;  %v1602_v61 = vperm.slane %v1600_v50, 0  ;;  %v1692_v3 = vmul.f32 %v3526_v8, %v3686_v16  ;;  %v1916_v31 = vmul.f32 %v3778_v48, %v3113_v14  ;;  %v1051_v14 = vpop.f32.mrf.mxu0 }
 0x1ff   : > { %v2000_v11 = vperm.slane %v1998_v15, 0  ;;  %v1273_v40 = vadd.f32 %v1272_v59, %v1268_v13  ;;  %v1360_v35 = vadd.f32 %v4169_v0, %v3729_v54  ;;  %v1364_v58 = vmul.f32 %v1363_v28, %v1270_v20  ;;  %1024 = vst.msk [vmem:[#allocation3 + $0xb8] sm:$0xff] %vm333_vm4, %v1019_v30 }
 0x200   : > { %v1599_v44 = vadd.f32 %v1598_v21, %v3738_v49  ;;  %v1376_v55 = vmul.f32 %v3814_v23, %v3497_v43  ;;  %v1603_v16 = vmul.f32 %v1602_v61, %v3816_v33  ;;  %v1918_v27 = vperm.slane %v1916_v31, 0 }
 0x201   : > { %v1914_v15 = vmul.f32 %v1913_v51, %v3764_v18  ;;  %v3836_v4 = vmul.f32 %v3806_v6, %v4170_v10  ;;  %v1278_v54 = vadd.f32 %v3733_v63, %v1273_v40  ;;  %v1365_v32 = vadd.f32 %v1364_v58, %v1360_v35  ;;  %v1382_v40 = vld [vmem:[#allocation3 + $0xa8] sm:$0xff] }
 0x202   : > { %v3841_v49 = vadd.f32 %v3719_v1, %v3541_v22  ;;  %v1604_v43 = vadd.f32 %v1603_v16, %v1599_v44  ;;  %v1694_v21 = vperm.slane %v1692_v3, 0  ;;  %v3845_v20 = vadd.f32 %v3762_v38, %v3741_v9 }
 0x203   : > { %v3848_v34 = vmul.f32 %v2000_v11, %v3696_v46  ;;  %v1374_v29 = vmul.f32 %v1373_v26, %v3764_v18  ;;  %v1283_v63 = vadd.f32 %v1282_v45, %v1278_v54  ;;  %v3854_v13 = vmul.f32 %v1689_v56, %v3764_v18 }
 0x204   : > { %v1378_v22 = vperm.slane %v1376_v55, 0  ;;  %v3856_v1 = vmul.f32 0.5, %v1604_v43  ;;  %v1919_v62 = vmul.f32 %v1918_v27, %v3816_v33  ;;  %v1915_v9 = vadd.f32 %v1914_v15, %v3774_v12  ;;  %v1021_v51 = vpop.f32.mrf.mxu3  ;;  %v1922_v55 = vld [vmem:[#allocation3 + $0x98] sm:$0xff]  ;;  %v3900_v15 = vld [vmem:[#allocation3 + $0xb0] sm:$0xff] }
 0x205   : > { %v2005_v38 = vperm.slane %v3836_v4, 0  ;;  %v1284_v46 = vmul.f32 0.5, %v1283_v63  ;;  %v1370_v7 = vadd.f32 %v3735_v17, %v1365_v32  ;;  %v3867_v45 = vmul.f32 %v1694_v21, %v3816_v33 }
 0x206   : > { %v1607_v26 = vrot.slane %v3856_v1, 1  ;;  %1621 = vst.msk [vmem:[%s3586_s11 + $0x4] sm:$0x1] %vm1192_vm2, %v3856_v1  ;;  %v3871_v50 = vmul.f32 %v3806_v6, %v3592_v47  ;;  %v1381_v12 = vmul.f32 %v3814_v23, %v3572_v2  ;;  %vm1663_vm4 = vcmp.eq.s32.totalorder %v3358_v37, 1 }
 0x207   : > { %v1286_v59 = vrot.slane %v1284_v46, 1  ;;  %v1287_v17 = vrot.slane %v1284_v46, 2  ;;  %v1288_v28 = vrot.slane %v1284_v46, 3  ;;  %1300 = vst.msk [vmem:[%s3586_s11 + $0x1] sm:$0x1] %vm1192_vm2, %v1284_v46  ;;  %v1289_v56 = vrot.slane %v1284_v46, 4 }
 0x208   : > { %v1379_v61 = vmul.f32 %v1378_v22, %v1377_v41  ;;  %1622 = vst.msk [vmem:[%s3586_s11 + $0x14] sm:$0x1] %vm1192_vm2, %v1607_v26  ;;  %v1920_v3 = vadd.f32 %v1919_v62, %v1915_v9  ;;  %v1665_v31 = vsel %vm1654_vm1, %v4150_v19, 0.0  ;;  %v1290_v2 = vrot.slane %v1284_v46, 5 }
 0x209   : > { %1301 = vst.msk [vmem:[%s3586_s11 + $0x11] sm:$0x1] %vm1192_vm2, %v1286_v59  ;;  %v1375_v30 = vadd.f32 %v1374_v29, %v1370_v7  ;;  %v1608_v53 = vrot.slane %v3856_v1, 2  ;;  %v1609_v11 = vrot.slane %v3856_v1, 3  ;;  %v1291_v0 = vrot.slane %v1284_v46, 6 }
 0x20a   : > { %1302 = vst.msk [vmem:[%s3586_s11 + $0x21] sm:$0x1] %vm1192_vm2, %v1287_v17  ;;  %v1383_v35 = vperm.slane %v1381_v12, 0  ;;  %v1664_v58 = vsel %vm1663_vm4, %v3374_v24, 0.0  ;;  %v1921_v37 = vmul.f32 %v3778_v48, %v4152_v60  ;;  %v1292_v19 = vrot.slane %v1284_v46, 7 }
 0x20b   : > { %1303 = vst.msk [vmem:[%s3586_s11 + $0x31] sm:$0x1] %vm1192_vm2, %v1288_v28  ;;  %v1666_v44 = vadd.f32 %v1665_v31, %v1664_v58  ;;  %v1386_v16 = vmul.f32 %v3814_v23, %v4156_v5  ;;  %vm1984_vm9 = vcmp.eq.s32.totalorder %v4161_v52, 1  ;;  %v1610_v27 = vrot.slane %v3856_v1, 4 }
 0x20c   : > { %1304 = vst.msk [vmem:[%s3586_s11 + $0x41] sm:$0x1] %vm1192_vm2, %v1289_v56  ;;  %v1384_v24 = vmul.f32 %v1383_v35, %v1382_v40  ;;  %v1923_v14 = vperm.slane %v1921_v37, 0  ;;  %v1985_v60 = vsel %vm1984_vm9, %v4163_v39, 0.0  ;;  %v1986_v23 = vsel %vm1975_vm10, %v4164_v36, 0.0 }
 0x20d   : > { %1305 = vst.msk [vmem:[%s3586_s11 + $0x51] sm:$0x1] %vm1192_vm2, %v1290_v2  ;;  %v1697_v48 = vmul.f32 %v1666_v44, %v3617_v57  ;;  %v1388_v54 = vperm.slane %v1386_v16, 0  ;;  %v1702_v5 = vmul.f32 %v1666_v44, %v4162_v42  ;;  %v1380_v32 = vadd.f32 %v1379_v61, %v1375_v30 }
 0x20e   : > { %1306 = vst.msk [vmem:[%s3586_s11 + $0x61] sm:$0x1] %vm1192_vm2, %v1291_v0  ;;  %v1924_v43 = vmul.f32 %v1923_v14, %v1922_v55  ;;  %v2013_v39 = vmul.f32 %v3751_v25, %v3806_v6  ;;  %v1987_v21 = vadd.f32 %v1986_v23, %v1985_v60  ;;  %v1611_v57 = vrot.slane %v3856_v1, 5 }
 0x20f   : > { %1307 = vst.msk [vmem:[%s3586_s11 + $0x71] sm:$0x1] %vm1192_vm2, %v1292_v19  ;;  %v1699_v29 = vperm.slane %v1697_v48, 0  ;;  %v1389_v42 = vmul.f32 %v1388_v54, %v3900_v15  ;;  %v1707_v52 = vmul.f32 %v1666_v44, %v3526_v8  ;;  %v1691_v36 = vadd.f32 %v3854_v13, %v3845_v20  ;;  %v2029_v44 = vld [vmem:[#allocation3 + $0xc0] sm:$0xff] }
 0x210   : > { %v1612_v63 = vrot.slane %v3856_v1, 6  ;;  %1623 = vst.msk [vmem:[%s3586_s11 + $0x24] sm:$0x1] %vm1192_vm2, %v1608_v53  ;;  %v2010_v6 = vperm.slane %v3871_v50, 0  ;;  %v1925_v22 = vadd.f32 %v1924_v43, %v1920_v3  ;;  %v1613_v62 = vrot.slane %v3856_v1, 7 }
 0x211   : > { %1624 = vst.msk [vmem:[%s3586_s11 + $0x34] sm:$0x1] %vm1192_vm2, %v1609_v11  ;;  %v1385_v9 = vadd.f32 %v1384_v24, %v1380_v32  ;;  %v1704_v46 = vperm.slane %v1702_v5, 0  ;;  %v2018_v8 = vmul.f32 %v1987_v21, %v4170_v10  ;;  %v2002_v7 = vadd.f32 %v3848_v34, %v3841_v49 }
 0x212   : > { %v2006_v20 = vmul.f32 %v2005_v38, %v3764_v18  ;;  %1625 = vst.msk [vmem:[%s3586_s11 + $0x44] sm:$0x1] %vm1192_vm2, %v1610_v27  ;;  %v1926_v13 = vmul.f32 0.5, %v1925_v22  ;;  %v2015_v41 = vperm.slane %v2013_v39, 0  ;;  %v1696_v1 = vadd.f32 %v3867_v45, %v1691_v36  ;;  %v1708_v18 = vld [vmem:[#allocation3 + $0xb8] sm:$0xff] }
 0x213   : > { %1626 = vst.msk [vmem:[%s3586_s11 + $0x54] sm:$0x1] %vm1192_vm2, %v1611_v57  ;;  %v1700_v26 = vmul.f32 %v1699_v29, %v1382_v40  ;;  %v1390_v50 = vadd.f32 %v1389_v42, %v1385_v9  ;;  %v1709_v10 = vperm.slane %v1707_v52, 0  ;;  %v2011_v49 = vmul.f32 %v2010_v6, %v3816_v33 }
 0x214   : > { %1627 = vst.msk [vmem:[%s3586_s11 + $0x64] sm:$0x1] %vm1192_vm2, %v1612_v63  ;;  %v1928_v4 = vrot.slane %v1926_v13, 1  ;;  %v1929_v34 = vrot.slane %v1926_v13, 2  ;;  %v2023_v38 = vmul.f32 %v1987_v21, %v3592_v47  ;;  %v1930_v12 = vrot.slane %v1926_v13, 3 }
 0x215   : > { %1628 = vst.msk [vmem:[%s3586_s11 + $0x74] sm:$0x1] %vm1192_vm2, %v1613_v62  ;;  %v1705_v45 = vmul.f32 %v1704_v46, %v3900_v15  ;;  %v2020_v51 = vperm.slane %v2018_v8, 0  ;;  %v2007_v59 = vadd.f32 %v2006_v20, %v2002_v7  ;;  %v1931_v17 = vrot.slane %v1926_v13, 4 }
 0x216   : > { %1942 = vst.msk [vmem:[%s3586_s11 + $0x7] sm:$0x1] %vm1192_vm2, %v1926_v13  ;;  %v2016_v33 = vmul.f32 %v2015_v41, %v1922_v55  ;;  %v2028_v28 = vmul.f32 %v1987_v21, %v3751_v25  ;;  %v1701_v56 = vadd.f32 %v1700_v26, %v1696_v1  ;;  %v1932_v61 = vrot.slane %v1926_v13, 5 }
 0x217   : > { %1943 = vst.msk [vmem:[%s3586_s11 + $0x17] sm:$0x1] %vm1192_vm2, %v1928_v4  ;;  %v1391_v47 = vmul.f32 0.5, %v1390_v50  ;;  %v1710_v3 = vmul.f32 %v1709_v10, %v1708_v18  ;;  %v2012_v31 = vadd.f32 %v2011_v49, %v2007_v59  ;;  %v1933_v2 = vrot.slane %v1926_v13, 6 }
 0x218   : > { %1944 = vst.msk [vmem:[%s3586_s11 + $0x27] sm:$0x1] %vm1192_vm2, %v1929_v34  ;;  %v2025_v30 = vperm.slane %v2023_v38, 0  ;;  %v1934_v53 = vrot.slane %v1926_v13, 7  ;;  %v1706_v11 = vadd.f32 %v1705_v45, %v1701_v56  ;;  %v2021_v25 = vmul.f32 %v2020_v51, %v3900_v15 }
 0x219   : > { %1945 = vst.msk [vmem:[%s3586_s11 + $0x37] sm:$0x1] %vm1192_vm2, %v1930_v12  ;;  %v2017_v40 = vadd.f32 %v2016_v33, %v2012_v31  ;;  %v1393_v0 = vrot.slane %v1391_v47, 1  ;;  %v2030_v35 = vperm.slane %v2028_v28, 0  ;;  %v1394_v19 = vrot.slane %v1391_v47, 2 }
 0x21a   : > { %1946 = vst.msk [vmem:[%s3586_s11 + $0x47] sm:$0x1] %vm1192_vm2, %v1931_v17  ;;  %v1711_v58 = vadd.f32 %v1710_v3, %v1706_v11  ;;  %v2026_v37 = vmul.f32 %v2025_v30, %v1708_v18  ;;  %v1395_v55 = vrot.slane %v1391_v47, 3  ;;  %v1396_v27 = vrot.slane %v1391_v47, 4 }
 0x21b   : > { %1947 = vst.msk [vmem:[%s3586_s11 + $0x57] sm:$0x1] %vm1192_vm2, %v1932_v61  ;;  %v2022_v16 = vadd.f32 %v2021_v25, %v2017_v40  ;;  %v1397_v24 = vrot.slane %v1391_v47, 5  ;;  %v2031_v14 = vmul.f32 %v2030_v35, %v2029_v44  ;;  %v1398_v48 = vrot.slane %v1391_v47, 6 }
 0x21c   : > { %1948 = vst.msk [vmem:[%s3586_s11 + $0x67] sm:$0x1] %vm1192_vm2, %v1933_v2  ;;  %v1712_v15 = vmul.f32 0.5, %v1711_v58  ;;  %v1399_v54 = vrot.slane %v1391_v47, 7 }
 0x21d   : > { %1949 = vst.msk [vmem:[%s3586_s11 + $0x77] sm:$0x1] %vm1192_vm2, %v1934_v53  ;;  %v2027_v60 = vadd.f32 %v2026_v37, %v2022_v16 }
 0x21e   : > { %1407 = vst.msk [vmem:[%s3586_s11 + $0x2] sm:$0x1] %vm1192_vm2, %v1391_v47  ;;  %v1714_v5 = vrot.slane %v1712_v15, 1  ;;  %v1715_v32 = vrot.slane %v1712_v15, 2  ;;  %v1716_v43 = vrot.slane %v1712_v15, 3  ;;  %v1717_v39 = vrot.slane %v1712_v15, 4 }
 0x21f   : > { %1408 = vst.msk [vmem:[%s3586_s11 + $0x12] sm:$0x1] %vm1192_vm2, %v1393_v0  ;;  %v2032_v23 = vadd.f32 %v2031_v14, %v2027_v60  ;;  %v1718_v21 = vrot.slane %v1712_v15, 5  ;;  %v1719_v29 = vrot.slane %v1712_v15, 6  ;;  %v1720_v42 = vrot.slane %v1712_v15, 7 }
 0x220   : > { %1409 = vst.msk [vmem:[%s3586_s11 + $0x22] sm:$0x1] %vm1192_vm2, %v1394_v19 }
 0x221   : > { %1410 = vst.msk [vmem:[%s3586_s11 + $0x32] sm:$0x1] %vm1192_vm2, %v1395_v55  ;;  %v2033_v57 = vmul.f32 0.5, %v2032_v23 }
 0x222   : > { %1411 = vst.msk [vmem:[%s3586_s11 + $0x42] sm:$0x1] %vm1192_vm2, %v1396_v27 }
 0x223   : > { %1412 = vst.msk [vmem:[%s3586_s11 + $0x52] sm:$0x1] %vm1192_vm2, %v1397_v24  ;;  %v2035_v52 = vrot.slane %v2033_v57, 1  ;;  %v2036_v36 = vrot.slane %v2033_v57, 2  ;;  %v2037_v63 = vrot.slane %v2033_v57, 3  ;;  %v2038_v6 = vrot.slane %v2033_v57, 4 }
 0x224   : > { %1413 = vst.msk [vmem:[%s3586_s11 + $0x62] sm:$0x1] %vm1192_vm2, %v1398_v48  ;;  %v2039_v22 = vrot.slane %v2033_v57, 5  ;;  %v2040_v62 = vrot.slane %v2033_v57, 6  ;;  %v2041_v9 = vrot.slane %v2033_v57, 7 }
 0x225   : > { %1414 = vst.msk [vmem:[%s3586_s11 + $0x72] sm:$0x1] %vm1192_vm2, %v1399_v54 }
 0x226   : > { %1728 = vst.msk [vmem:[%s3586_s11 + $0x5] sm:$0x1] %vm1192_vm2, %v1712_v15 }
 0x227   : > { %1729 = vst.msk [vmem:[%s3586_s11 + $0x15] sm:$0x1] %vm1192_vm2, %v1714_v5 }
 0x228   : > { %1730 = vst.msk [vmem:[%s3586_s11 + $0x25] sm:$0x1] %vm1192_vm2, %v1715_v32 }
 0x229   : > { %1731 = vst.msk [vmem:[%s3586_s11 + $0x35] sm:$0x1] %vm1192_vm2, %v1716_v43 }
 0x22a   : > { %1732 = vst.msk [vmem:[%s3586_s11 + $0x45] sm:$0x1] %vm1192_vm2, %v1717_v39 }
 0x22b   : > { %1733 = vst.msk [vmem:[%s3586_s11 + $0x55] sm:$0x1] %vm1192_vm2, %v1718_v21 }
 0x22c   : > { %1734 = vst.msk [vmem:[%s3586_s11 + $0x65] sm:$0x1] %vm1192_vm2, %v1719_v29 }
 0x22d   : > { %1735 = vst.msk [vmem:[%s3586_s11 + $0x75] sm:$0x1] %vm1192_vm2, %v1720_v42 }
 0x22e   : > { %2049 = vst.msk [vmem:[%s3586_s11 + $0x8] sm:$0x1] %vm1192_vm2, %v2033_v57 }
 0x22f   : > { %2050 = vst.msk [vmem:[%s3586_s11 + $0x18] sm:$0x1] %vm1192_vm2, %v2035_v52 }
 0x230   : > { %2051 = vst.msk [vmem:[%s3586_s11 + $0x28] sm:$0x1] %vm1192_vm2, %v2036_v36 }
 0x231   : > { %2052 = vst.msk [vmem:[%s3586_s11 + $0x38] sm:$0x1] %vm1192_vm2, %v2037_v63 }
 0x232   : > { %2053 = vst.msk [vmem:[%s3586_s11 + $0x48] sm:$0x1] %vm1192_vm2, %v2038_v6 }
 0x233   : > { %2054 = vst.msk [vmem:[%s3586_s11 + $0x58] sm:$0x1] %vm1192_vm2, %v2039_v22 }
 0x234   : > { %2055 = vst.msk [vmem:[%s3586_s11 + $0x68] sm:$0x1] %vm1192_vm2, %v2040_v62 }
 0x235   : > { %2056 = vst.msk [vmem:[%s3586_s11 + $0x78] sm:$0x1] %vm1192_vm2, %v2041_v9 }
 0x236 PF: > { %s14_s17 = sadd.s32 1, %s2550_s17   ;;  %s4171_s15 = smov %s2546_s16 }
 0x237   : > { %p11_p5 = scmp.ge.s32.totalorder %s14_s17, 4   ;;  %s4172_s16 = smov %s4174_s18 }
 0x239   :  { %13 = sbr.rel (!%p11_p5) target bundleno = 2 (0x2), region = 100 }

</bundles_post_ra>
